<compile_context>
chip_gen: v5e
topology: v5e:2x2
jax: 0.10.0
libtpu: 0.0.40
codegen_flags: <defaults>
</compile_context>

<pallas_src>
import jax
import jax.numpy as jnp
from jax import lax
from jax.experimental import pallas as pl
from jax.experimental.pallas import tpu as pltpu


def _round_up(x, m):
    return ((x + m - 1) // m) * m


# -----------------------------------------------------------------------------
# Generic gridded Linear kernel (no activation) -- used for the hoisted BiLSTM
# input projection  gx = x @ W_ih_comb + b_comb
# -----------------------------------------------------------------------------
def _linear_kernel(x_ref, w_ref, b_ref, o_ref):
    y = jnp.dot(x_ref[...], w_ref[...], preferred_element_type=jnp.float32)
    o_ref[...] = (y + b_ref[...]).astype(o_ref.dtype)


def _linear(x2d, w, b, *, block_rows=256):
    R, Din = x2d.shape
    Dout = w.shape[1]
    RB = min(block_rows, _round_up(R, 8))
    Rp = _round_up(R, RB)
    if Rp != R:
        x2d = jnp.pad(x2d, ((0, Rp - R), (0, 0)))
    out = pl.pallas_call(
        _linear_kernel,
        out_shape=jax.ShapeDtypeStruct((Rp, Dout), jnp.float32),
        grid=(Rp // RB,),
        in_specs=[pl.BlockSpec((RB, Din), lambda i: (i, 0)),
                  pl.BlockSpec((Din, Dout), lambda i: (0, 0)),
                  pl.BlockSpec((1, Dout), lambda i: (0, 0))],
        out_specs=pl.BlockSpec((RB, Dout), lambda i: (i, 0)),
        compiler_params=pltpu.CompilerParams(
            dimension_semantics=("parallel",),
            vmem_limit_bytes=32 * 1024 * 1024),
    )(x2d.astype(jnp.float32), w.astype(jnp.float32), b.astype(jnp.float32))
    return out[:R] if Rp != R else out


# -----------------------------------------------------------------------------
# Fused bidirectional LSTM recurrence kernel.
#
# Gate layout (8H columns, blocks of 2H):  [ I | F | G | O ],  and inside each
# 2H block: first H columns = forward direction, last H = backward direction.
# The carried hidden/cell state is (B, 2H) = [h_fwd | h_bwd]; the recurrent
# weight is block-diagonal so both directions share ONE wide MXU dot per step.
# At combined step s, the fwd chain processes time s and the bwd chain time
# T-1-s; `sel_f` picks the fwd gate columns of gx[s] and the bwd gate columns
# of gx[T-1-s].
# -----------------------------------------------------------------------------
def _bilstm_rec_kernel(gx_ref, m_ref, whh_ref, sel_ref, out_ref):
    T, _, G8 = gx_ref.shape
    H2 = G8 // 4          # 2H
    H = H2 // 2

    whh = whh_ref[...]            # (2H, 8H) block-diagonal
    sel_f = sel_ref[...]          # (1, 8H)  1.0 on fwd gate sub-blocks
    sel_b = 1.0 - sel_f

    def step(s, carry):
        h, c = carry                           # (BB, 2H) each, [fwd | bwd]
        tb = T - 1 - s
        # precomputed input gates: fwd columns from time s, bwd from time tb
        gx = gx_ref[s] * sel_f + gx_ref[tb] * sel_b                  # (BB, 8H)
        gates = gx + jnp.dot(h, whh, preferred_element_type=jnp.float32)
        i = jax.nn.sigmoid(gates[:, 0 * H2:1 * H2])
        f = jax.nn.sigmoid(gates[:, 1 * H2:2 * H2])
        g = jnp.tanh(gates[:, 2 * H2:3 * H2])
        o = jax.nn.sigmoid(gates[:, 3 * H2:4 * H2])
        c_new = f * c + i * g
        h_new = o * jnp.tanh(c_new)
        m = m_ref[s]                           # (BB, 2H): [mask[s] | mask[tb]]
        h_out = m * h_new                      # padded positions emit zeros
        h_carry = h_out + (1.0 - m) * h        # state frozen across padding
        c_carry = m * c_new + (1.0 - m) * c
        out_ref[s, :, 0:H] = h_out[:, 0:H]       # fwd output at time s
        out_ref[tb, :, H:H2] = h_out[:, H:H2]    # bwd output at time tb
        return (h_carry, c_carry)

    BB = gx_ref.shape[1]
    init = (jnp.zeros((BB, H2), jnp.float32), jnp.zeros((BB, H2), jnp.float32))
    lax.fori_loop(0, T, step, init, unroll=True)


def bilstm(x_tm, mask_bt, p):
    """x_tm: (T, B, D) time-major, mask_bt: (B, T). Returns (T, B, 2H)."""
    T, B, D = x_tm.shape
    G8 = p["w_hh_comb"].shape[1]        # 8H
    H = G8 // 8
    H2 = 2 * H

    # 1) hoisted input projection: one large gridded MXU GEMM over all rows.
    gx = _linear(x_tm.reshape(T * B, D), p["w_ih_comb"], p["b_comb"])
    gx = gx.reshape(T, B, G8)

    # 2) combined per-step mask: [mask[t] | mask[T-1-t]] broadcast to width H.
    m_tb = jnp.transpose(mask_bt).astype(jnp.float32)                 # (T, B)
    m_f = jnp.broadcast_to(m_tb[:, :, None], (T, B, H))
    m_b = jnp.broadcast_to(m_tb[::-1, :, None], (T, B, H))
    mcomb = jnp.concatenate([m_f, m_b], axis=-1)                      # (T, B, 2H)

    # 3) fused fwd+bwd recurrence, gridded over batch chunks (megacore-friendly).
    BB = B // 2 if (B % 16 == 0) else B
    out = pl.pallas_call(
        _bilstm_rec_kernel,
        out_shape=jax.ShapeDtypeStruct((T, B, H2), jnp.float32),
        grid=(B // BB,),
        in_specs=[pl.BlockSpec((T, BB, G8), lambda i: (0, i, 0)),
                  pl.BlockSpec((T, BB, H2), lambda i: (0, i, 0)),
                  pl.BlockSpec((H2, G8), lambda i: (0, 0)),
                  pl.BlockSpec((1, G8), lambda i: (0, 0))],
        out_specs=pl.BlockSpec((T, BB, H2), lambda i: (0, i, 0)),
        compiler_params=pltpu.CompilerParams(
            dimension_semantics=("parallel",),
            vmem_limit_bytes=48 * 1024 * 1024),
    )(gx, mcomb, p["w_hh_comb"], p["sel_f"])
    return out


# -----------------------------------------------------------------------------
# SoftmaxAttention kernel, gridded over batch.  The transposed similarity is
# recomputed with a second MXU einsum (no in-kernel transpose); softmax divides
# use approximate reciprocal on the EUP.
# -----------------------------------------------------------------------------
def _attention_kernel(p_ref, h_ref, pmr_ref, hmr_ref, pmc_ref, hmc_ref,
                      ap_ref, ah_ref):
    p = p_ref[0]          # (Tp, 2H)
    h = h_ref[0]          # (Th, 2H)
    pm_row = pmr_ref[0]   # (1, Tp)
    hm_row = hmr_ref[0]   # (1, Th)
    pm_col = pmc_ref[0]   # (Tp, 1)
    hm_col = hmc_ref[0]   # (Th, 1)

    sim_ph = jnp.einsum("pd,hd->ph", p, h, preferred_element_type=jnp.float32)
    sim_hp = jnp.einsum("hd,pd->hp", h, p, preferred_element_type=jnp.float32)

    def masked_softmax(z, mask_row):
        # exact port of the torch masked_softmax: softmax(z*mask), re-mask, renorm
        zm = z * mask_row
        zm = zm - jnp.max(zm, axis=-1, keepdims=True)
        e = jnp.exp(zm)
        sm = e * pl.reciprocal(jnp.sum(e, axis=-1, keepdims=True), approx=True)
        sm = sm * mask_row
        return sm * pl.reciprocal(jnp.sum(sm, axis=-1, keepdims=True) + 1e-13,
                                  approx=True)

    ph_attn = masked_softmax(sim_ph, hm_row)     # (Tp, Th)
    hp_attn = masked_softmax(sim_hp, pm_row)     # (Th, Tp)

    att_p = jnp.dot(ph_attn, h, preferred_element_type=jnp.float32) * pm_col
    att_h = jnp.dot(hp_attn, p, preferred_element_type=jnp.float32) * hm_col

    ap_ref[0] = att_p.astype(ap_ref.dtype)
    ah_ref[0] = att_h.astype(ah_ref.dtype)


def soft_attention(enc_p, p_mask, enc_h, h_mask):
    """enc_p: (B, Tp, 2H), enc_h: (B, Th, 2H), masks: (B, T)."""
    B, Tp, D2 = enc_p.shape
    Th = enc_h.shape[1]
    pm = p_mask.astype(jnp.float32)
    hm = h_mask.astype(jnp.float32)
    return pl.pallas_call(
        _attention_kernel,
        out_shape=(jax.ShapeDtypeStruct((B, Tp, D2), jnp.float32),
                   jax.ShapeDtypeStruct((B, Th, D2), jnp.float32)),
        grid=(B,),
        in_specs=[pl.BlockSpec((1, Tp, D2), lambda b: (b, 0, 0)),
                  pl.BlockSpec((1, Th, D2), lambda b: (b, 0, 0)),
                  pl.BlockSpec((1, 1, Tp), lambda b: (b, 0, 0)),
                  pl.BlockSpec((1, 1, Th), lambda b: (b, 0, 0)),
                  pl.BlockSpec((1, Tp, 1), lambda b: (b, 0, 0)),
                  pl.BlockSpec((1, Th, 1), lambda b: (b, 0, 0))],
        out_specs=(pl.BlockSpec((1, Tp, D2), lambda b: (b, 0, 0)),
                   pl.BlockSpec((1, Th, D2), lambda b: (b, 0, 0))),
        compiler_params=pltpu.CompilerParams(
            dimension_semantics=("parallel",),
            vmem_limit_bytes=32 * 1024 * 1024),
    )(enc_p.astype(jnp.float32), enc_h.astype(jnp.float32),
      pm[:, None, :], hm[:, None, :], pm[:, :, None], hm[:, :, None])


# -----------------------------------------------------------------------------
# Fused enhancement + projection kernel:
#   relu( enc@W1 + att@W2 + (enc-att)@W3 + (enc*att)@W4 + b )
# The (B, T, 8H) "enhanced" tensor is never materialized.
# -----------------------------------------------------------------------------
def _enh_proj_kernel(enc_ref, att_ref, w1_ref, w2_ref, w3_ref, w4_ref, b_ref,
                     o_ref):
    e = enc_ref[...]
    a = att_ref[...]
    y = (jnp.dot(e, w1_ref[...], preferred_element_type=jnp.float32)
         + jnp.dot(a, w2_ref[...], preferred_element_type=jnp.float32)
         + jnp.dot(e - a, w3_ref[...], preferred_element_type=jnp.float32)
         + jnp.dot(e * a, w4_ref[...], preferred_element_type=jnp.float32)
         + b_ref[...])
    o_ref[...] = jnp.maximum(y, 0.0).astype(o_ref.dtype)


def enhance_project(enc_bm, att_bm, proj_w, proj_b, *, block_rows=256):
    B, T, D2 = enc_bm.shape
    H = proj_w.shape[1]
    R = B * T
    enc2 = enc_bm.reshape(R, D2).astype(jnp.float32)
    att2 = att_bm.reshape(R, D2).astype(jnp.float32)
    w1 = proj_w[0 * D2:1 * D2]
    w2 = proj_w[1 * D2:2 * D2]
    w3 = proj_w[2 * D2:3 * D2]
    w4 = proj_w[3 * D2:4 * D2]

    RB = min(block_rows, _round_up(R, 8))
    Rp = _round_up(R, RB)
    if Rp != R:
        enc2 = jnp.pad(enc2, ((0, Rp - R), (0, 0)))
        att2 = jnp.pad(att2, ((0, Rp - R), (0, 0)))

    out = pl.pallas_call(
        _enh_proj_kernel,
        out_shape=jax.ShapeDtypeStruct((Rp, H), jnp.float32),
        grid=(Rp // RB,),
        in_specs=[pl.BlockSpec((RB, D2), lambda i: (i, 0)),
                  pl.BlockSpec((RB, D2), lambda i: (i, 0)),
                  pl.BlockSpec((D2, H), lambda i: (0, 0)),
                  pl.BlockSpec((D2, H), lambda i: (0, 0)),
                  pl.BlockSpec((D2, H), lambda i: (0, 0)),
                  pl.BlockSpec((D2, H), lambda i: (0, 0)),
                  pl.BlockSpec((1, H), lambda i: (0, 0))],
        out_specs=pl.BlockSpec((RB, H), lambda i: (i, 0)),
        compiler_params=pltpu.CompilerParams(
            dimension_semantics=("parallel",),
            vmem_limit_bytes=32 * 1024 * 1024),
    )(enc2, att2, w1, w2, w3, w4, proj_b.astype(jnp.float32))
    out = out[:R] if Rp != R else out
    return out.reshape(B, T, H)


# -----------------------------------------------------------------------------
# ESIM forward (glue in plain JAX, hot paths in the Pallas kernels above)
# -----------------------------------------------------------------------------
def esim_forward(params, premises, premises_lengths, hypotheses,
                 hypotheses_lengths):
    del premises_lengths, hypotheses_lengths  # get_mask keys off token == 0
    p_mask = (premises != 0).astype(jnp.float32)   # (B, Tp)
    h_mask = (hypotheses != 0).astype(jnp.float32)

    emb = params["embedding"]
    emb_p_tm = jnp.transpose(emb[premises], (1, 0, 2))      # (Tp, B, D)
    emb_h_tm = jnp.transpose(emb[hypotheses], (1, 0, 2))

    enc_p_tm = bilstm(emb_p_tm, p_mask, params["enc"])      # (Tp, B, 2H)
    enc_h_tm = bilstm(emb_h_tm, h_mask, params["enc"])

    enc_p = jnp.transpose(enc_p_tm, (1, 0, 2))              # (B, Tp, 2H)
    enc_h = jnp.transpose(enc_h_tm, (1, 0, 2))

    att_p, att_h = soft_attention(enc_p, p_mask, enc_h, h_mask)

    proj_p = enhance_project(enc_p, att_p, params["proj_w"], params["proj_b"])
    proj_h = enhance_project(enc_h, att_h, params["proj_w"], params["proj_b"])

    v_ai_tm = bilstm(jnp.transpose(proj_p, (1, 0, 2)), p_mask, params["comp"])
    v_bj_tm = bilstm(jnp.transpose(proj_h, (1, 0, 2)), h_mask, params["comp"])

    v_ai = jnp.transpose(v_ai_tm, (1, 0, 2))                # (B, Tp, 2H)
    v_bj = jnp.transpose(v_bj_tm, (1, 0, 2))
    # TODO(synk): reference forward() has no pooling/classifier and no return
    # statement, so the computation chain ends at (v_ai, v_bj).
    return v_ai, v_bj


# -----------------------------------------------------------------------------
# Parameter construction (per-direction torch-style weights + the combined
# layouts consumed by the fused BiLSTM kernel)
# -----------------------------------------------------------------------------
def _uniform(key, shape, scale=0.1):
    return jax.random.uniform(key, shape, jnp.float32, -scale, scale)


def combine_bilstm_params(w_ih_f, w_hh_f, b_f, w_ih_b, w_hh_b, b_b):
    H = w_hh_f.shape[0]

    def interleave_cols(cf, cb):   # (*,4H),(*,4H) -> (*,8H) gate-blocked fwd|bwd
        parts = []
        for k in range(4):
            parts.append(cf[:, k * H:(k + 1) * H])
            parts.append(cb[:, k * H:(k + 1) * H])
        return jnp.concatenate(parts, axis=-1)

    w_ih_comb = interleave_cols(w_ih_f, w_ih_b)          # (D, 8H)
    b_comb = interleave_cols(b_f, b_b)                   # (1, 8H)

    whh = jnp.zeros((2 * H, 8 * H), jnp.float32)         # block-diagonal
    sel = jnp.zeros((1, 8 * H), jnp.float32)
    for k in range(4):
        whh = whh.at[0:H, 2 * H * k:2 * H * k + H].set(w_hh_f[:, k * H:(k + 1) * H])
        whh = whh.at[H:2 * H, 2 * H * k + H:2 * H * (k + 1)].set(w_hh_b[:, k * H:(k + 1) * H])
        sel = sel.at[:, 2 * H * k:2 * H * k + H].set(1.0)
    return dict(w_ih_comb=w_ih_comb, b_comb=b_comb, w_hh_comb=whh, sel_f=sel)


def init_bilstm_params(key, d_in, h):
    ks = jax.random.split(key, 6)
    raw = dict(
        w_ih_f=_uniform(ks[0], (d_in, 4 * h)),   # transposed vs torch (4H, D)
        w_hh_f=_uniform(ks[1], (h, 4 * h)),
        b_f=_uniform(ks[2], (1, 4 * h)),         # b_ih + b_hh folded together
        w_ih_b=_uniform(ks[3], (d_in, 4 * h)),
        w_hh_b=_uniform(ks[4], (h, 4 * h)),
        b_b=_uniform(ks[5], (1, 4 * h)),
    )
    p = dict(raw=raw)
    p.update(combine_bilstm_params(**raw))
    return p


# -----------------------------------------------------------------------------
# Pure-JAX reference (mirrors the PyTorch module) for a correctness check
# -----------------------------------------------------------------------------
def _ref_bilstm(x_btd, mask_bt, raw):
    B, T, _ = x_btd.shape
    H = raw["w_hh_f"].shape[0]

    def run(w_ih, w_hh, b, reverse):
        def step(carry, t):
            h, c = carry
            xt = x_btd[:, t, :]
            m = mask_bt[:, t][:, None]
            gates = xt @ w_ih + h @ w_hh + b
            i = jax.nn.sigmoid(gates[:, 0:H])
            f = jax.nn.sigmoid(gates[:, H:2 * H])
            g = jnp.tanh(gates[:, 2 * H:3 * H])
            o = jax.nn.sigmoid(gates[:, 3 * H:4 * H])
            c_new = f * c + i * g
            h_new = o * jnp.tanh(c_new)
            h_out = m * h_new
            h = h_out + (1.0 - m) * h
            c = m * c_new + (1.0 - m) * c
            return (h, c), h_out

        ts = jnp.arange(T)[::-1] if reverse else jnp.arange(T)
        init = (jnp.zeros((B, H), jnp.float32), jnp.zeros((B, H), jnp.float32))
        _, hs = lax.scan(step, init, ts)            # (T, B, H) in scan order
        if reverse:
            hs = hs[::-1]
        return jnp.transpose(hs, (1, 0, 2))         # (B, T, H)

    of = run(raw["w_ih_f"], raw["w_hh_f"], raw["b_f"], False)
    ob = run(raw["w_ih_b"], raw["w_hh_b"], raw["b_b"], True)
    return jnp.concatenate([of, ob], axis=-1)


def _ref_masked_softmax(t, mask):
    sm = jax.nn.softmax(t * mask, axis=-1)
    sm = sm * mask
    return sm / (jnp.sum(sm, axis=-1, keepdims=True) + 1e-13)


def esim_reference(params, premises, hypotheses):
    p_mask = (premises != 0).astype(jnp.float32)
    h_mask = (hypotheses != 0).astype(jnp.float32)
    emb = params["embedding"]
    enc_p = _ref_bilstm(emb[premises], p_mask, params["enc"]["raw"])
    enc_h = _ref_bilstm(emb[hypotheses], h_mask, params["enc"]["raw"])
    sim = jnp.einsum("bpd,bhd->bph", enc_p, enc_h)
    ph = _ref_masked_softmax(sim, h_mask[:, None, :])
    hp = _ref_masked_softmax(jnp.swapaxes(sim, 1, 2), p_mask[:, None, :])
    att_p = jnp.einsum("bph,bhd->bpd", ph, enc_h) * p_mask[:, :, None]
    att_h = jnp.einsum("bhp,bpd->bhd", hp, enc_p) * h_mask[:, :, None]
    enh_p = jnp.concatenate([enc_p, att_p, enc_p - att_p, enc_p * att_p], -1)
    enh_h = jnp.concatenate([enc_h, att_h, enc_h - att_h, enc_h * att_h], -1)
    proj_p = jax.nn.relu(enh_p @ params["proj_w"] + params["proj_b"])
    proj_h = jax.nn.relu(enh_h @ params["proj_w"] + params["proj_b"])
    v_ai = _ref_bilstm(proj_p, p_mask, params["comp"]["raw"])
    v_bj = _ref_bilstm(proj_h, h_mask, params["comp"]["raw"])
    return v_ai, v_bj


if __name__ == "__main__":
    VOCAB, EMB_DIM, HIDDEN, B, T = 50, 32, 32, 2, 8
    key = jax.random.PRNGKey(0)
    k_emb, k_enc, k_comp, k_pw, k_pb, k_tp, k_th = jax.random.split(key, 7)

    embedding = _uniform(k_emb, (VOCAB, EMB_DIM), 0.5).at[0].set(0.0)  # padding_idx=0
    params = dict(
        embedding=embedding,
        enc=init_bilstm_params(k_enc, EMB_DIM, HIDDEN),
        comp=init_bilstm_params(k_comp, HIDDEN, HIDDEN),
        proj_w=_uniform(k_pw, (4 * 2 * HIDDEN, HIDDEN)),
        proj_b=_uniform(k_pb, (1, HIDDEN)),
    )

    premises_lengths = jnp.array([T, 5], jnp.int32)
    hypotheses_lengths = jnp.array([T, 6], jnp.int32)
    premises = jax.random.randint(k_tp, (B, T), 1, VOCAB)
    hypotheses = jax.random.randint(k_th, (B, T), 1, VOCAB)
    pos = jnp.arange(T)[None, :]
    premises = jnp.where(pos < premises_lengths[:, None], premises, 0)
    hypotheses = jnp.where(pos < hypotheses_lengths[:, None], hypotheses, 0)

    fwd = jax.jit(esim_forward)
    v_ai, v_bj = fwd(params, premises, premises_lengths,
                     hypotheses, hypotheses_lengths)
    jax.block_until_ready((v_ai, v_bj))

    assert v_ai.shape == (B, T, 2 * HIDDEN) and v_bj.shape == (B, T, 2 * HIDDEN)
    assert bool(jnp.all(jnp.isfinite(v_ai))) and bool(jnp.all(jnp.isfinite(v_bj)))

    # Cross-check against a pure-JAX reference of the original module.
    r_ai, r_bj = jax.jit(esim_reference)(params, premises, hypotheses)
    err = max(float(jnp.max(jnp.abs(v_ai - r_ai))),
              float(jnp.max(jnp.abs(v_bj - r_bj))))
    assert err < 2e-2, f"mismatch vs pure-JAX reference: max abs err {err}"

    print("KERNEL_OK")
</pallas_src>

<mosaic_0001>
module attributes {stable_mosaic.version = 11 : i64} {
  func.func @_linear_kernel(%arg0: i32, %arg1: memref<16x32xf32, #tpu.memory_space<vmem>>, %arg2: memref<32x256xf32, #tpu.memory_space<vmem>>, %arg3: memref<1x256xf32, #tpu.memory_space<vmem>>, %arg4: memref<16x256xf32, #tpu.memory_space<vmem>>) attributes {dimension_semantics = [#tpu.dimension_semantics<parallel>], iteration_bounds = array<i64: 1>, scalar_prefetch = 0 : i64, scratch_operands = 0 : i64, tpu.core_type = #tpu.core_type<tc>, window_params = [{transform_indices = @transform_0, window_bounds = array<i64: 16, 32>}, {pipeline_mode = #tpu.pipeline_mode<synchronous>, transform_indices = @transform_1, window_bounds = array<i64: 32, 256>}, {pipeline_mode = #tpu.pipeline_mode<synchronous>, transform_indices = @transform_2, window_bounds = array<i64: 1, 256>}, {transform_indices = @transform_3, window_bounds = array<i64: 16, 256>}]} {
    %c0 = arith.constant 0 : index
    %c0_0 = arith.constant 0 : index
    %0 = vector.load %arg1[%c0, %c0_0] : memref<16x32xf32, #tpu.memory_space<vmem>>, vector<16x32xf32>
    %c0_1 = arith.constant 0 : index
    %c0_2 = arith.constant 0 : index
    %1 = vector.load %arg2[%c0_1, %c0_2] : memref<32x256xf32, #tpu.memory_space<vmem>>, vector<32x256xf32>
    %cst = arith.constant dense<0.000000e+00> : vector<16x256xf32>
    %2 = tpu.matmul %0, %1, %cst {dimension_numbers = #tpu.dot_dimension_numbers<[1], [0], [0], [1], [0, 0, 1, 1], [], []>} : vector<16x32xf32>, vector<32x256xf32>, vector<16x256xf32> -> vector<16x256xf32>
    %c0_3 = arith.constant 0 : index
    %c0_4 = arith.constant 0 : index
    %3 = vector.load %arg3[%c0_3, %c0_4] : memref<1x256xf32, #tpu.memory_space<vmem>>, vector<1x256xf32>
    %4 = vector.broadcast %3 : vector<1x256xf32> to vector<16x256xf32>
    %5 = arith.addf %2, %4 : vector<16x256xf32>
    %c0_5 = arith.constant 0 : index
    %c0_6 = arith.constant 0 : index
    %6 = vector.load %arg4[%c0_5, %c0_6] : memref<16x256xf32, #tpu.memory_space<vmem>>, vector<16x256xf32>
    tpu.vector_store %arg4[%c0_5, %c0_6], %5 {strides = array<i32>} : memref<16x256xf32, #tpu.memory_space<vmem>>, vector<16x256xf32>,
    return
  }
  func.func @transform_0(%arg0: i32) -> (i32, i32) {
    %c0_i32 = arith.constant 0 : i32
    %c0_i32_0 = arith.constant 0 : i32
    return %arg0, %c0_i32 : i32, i32
  }
  func.func @transform_1(%arg0: i32) -> (i32, i32) {
    %c0_i32 = arith.constant 0 : i32
    %c0_i32_0 = arith.constant 0 : i32
    %c0_i32_1 = arith.constant 0 : i32
    return %c0_i32, %c0_i32_0 : i32, i32
  }
  func.func @transform_2(%arg0: i32) -> (i32, i32) {
    %c0_i32 = arith.constant 0 : i32
    %c0_i32_0 = arith.constant 0 : i32
    %c0_i32_1 = arith.constant 0 : i32
    return %c0_i32, %c0_i32_0 : i32, i32
  }
  func.func @transform_3(%arg0: i32) -> (i32, i32) {
    %c0_i32 = arith.constant 0 : i32
    %c0_i32_0 = arith.constant 0 : i32
    return %arg0, %c0_i32 : i32, i32
  }
}

module attributes {stable_mosaic.version = 11 : i64} {
  func.func @_attention_kernel(%arg0: i32, %arg1: memref<1x8x64xf32, #tpu.memory_space<vmem>>, %arg2: memref<1x8x64xf32, #tpu.memory_space<vmem>>, %arg3: memref<1x1x8xf32, #tpu.memory_space<vmem>>, %arg4: memref<1x1x8xf32, #tpu.memory_space<vmem>>, %arg5: memref<1x8x1xf32, #tpu.memory_space<vmem>>, %arg6: memref<1x8x1xf32, #tpu.memory_space<vmem>>, %arg7: memref<1x8x64xf32, #tpu.memory_space<vmem>>, %arg8: memref<1x8x64xf32, #tpu.memory_space<vmem>>) attributes {dimension_semantics = [#tpu.dimension_semantics<parallel>], iteration_bounds = array<i64: 2>, scalar_prefetch = 0 : i64, scratch_operands = 0 : i64, tpu.core_type = #tpu.core_type<tc>, window_params = [{transform_indices = @transform_0, window_bounds = array<i64: 1, 8, 64>}, {transform_indices = @transform_1, window_bounds = array<i64: 1, 8, 64>}, {transform_indices = @transform_2, window_bounds = array<i64: 1, 1, 8>}, {transform_indices = @transform_3, window_bounds = array<i64: 1, 1, 8>}, {transform_indices = @transform_4, window_bounds = array<i64: 1, 8, 1>}, {transform_indices = @transform_5, window_bounds = array<i64: 1, 8, 1>}, {transform_indices = @transform_6, window_bounds = array<i64: 1, 8, 64>}, {transform_indices = @transform_7, window_bounds = array<i64: 1, 8, 64>}]} {
    %c0 = arith.constant 0 : index
    %c0_0 = arith.constant 0 : index
    %c0_1 = arith.constant 0 : index
    %0 = vector.load %arg1[%c0, %c0_0, %c0_1] : memref<1x8x64xf32, #tpu.memory_space<vmem>>, vector<1x8x64xf32>
    %1 = vector.shape_cast %0 : vector<1x8x64xf32> to vector<8x64xf32>
    %c0_2 = arith.constant 0 : index
    %c0_3 = arith.constant 0 : index
    %c0_4 = arith.constant 0 : index
    %2 = vector.load %arg2[%c0_2, %c0_3, %c0_4] : memref<1x8x64xf32, #tpu.memory_space<vmem>>, vector<1x8x64xf32>
    %3 = vector.shape_cast %2 : vector<1x8x64xf32> to vector<8x64xf32>
    %c0_5 = arith.constant 0 : index
    %c0_6 = arith.constant 0 : index
    %c0_7 = arith.constant 0 : index
    %4 = vector.load %arg3[%c0_5, %c0_6, %c0_7] : memref<1x1x8xf32, #tpu.memory_space<vmem>>, vector<1x1x8xf32>
    %5 = vector.shape_cast %4 : vector<1x1x8xf32> to vector<1x8xf32>
    %c0_8 = arith.constant 0 : index
    %c0_9 = arith.constant 0 : index
    %c0_10 = arith.constant 0 : index
    %6 = vector.load %arg4[%c0_8, %c0_9, %c0_10] : memref<1x1x8xf32, #tpu.memory_space<vmem>>, vector<1x1x8xf32>
    %7 = vector.shape_cast %6 : vector<1x1x8xf32> to vector<1x8xf32>
    %c0_11 = arith.constant 0 : index
    %c0_12 = arith.constant 0 : index
    %c0_13 = arith.constant 0 : index
    %8 = vector.load %arg5[%c0_11, %c0_12, %c0_13] : memref<1x8x1xf32, #tpu.memory_space<vmem>>, vector<1x8x1xf32>
    %9 = vector.shape_cast %8 : vector<1x8x1xf32> to vector<8x1xf32>
    %c0_14 = arith.constant 0 : index
    %c0_15 = arith.constant 0 : index
    %c0_16 = arith.constant 0 : index
    %10 = vector.load %arg6[%c0_14, %c0_15, %c0_16] : memref<1x8x1xf32, #tpu.memory_space<vmem>>, vector<1x8x1xf32>
    %11 = vector.shape_cast %10 : vector<1x8x1xf32> to vector<8x1xf32>
    "tpu.trace_start"() <{level = 10 : i32, message = "pd,hd->ph"}> : () -> ()
    %cst = arith.constant dense<0.000000e+00> : vector<8x8xf32>
    %12 = tpu.matmul %1, %3, %cst {dimension_numbers = #tpu.dot_dimension_numbers<[1], [1], [0], [0], [0, 0, 1, 0], [], []>} : vector<8x64xf32>, vector<8x64xf32>, vector<8x8xf32> -> vector<8x8xf32>
    "tpu.trace_stop"() : () -> ()
    "tpu.trace_start"() <{level = 10 : i32, message = "hd,pd->hp"}> : () -> ()
    %cst_17 = arith.constant dense<0.000000e+00> : vector<8x8xf32>
    %13 = tpu.matmul %3, %1, %cst_17 {dimension_numbers = #tpu.dot_dimension_numbers<[1], [1], [0], [0], [0, 0, 1, 0], [], []>} : vector<8x64xf32>, vector<8x64xf32>, vector<8x8xf32> -> vector<8x8xf32>
    "tpu.trace_stop"() : () -> ()
    %14 = vector.broadcast %7 : vector<1x8xf32> to vector<8x8xf32>
    %15 = arith.mulf %12, %14 : vector<8x8xf32>
    %cst_18 = arith.constant dense<0xFF800000> : vector<8xf32>
    %16 = vector.multi_reduction <maximumf>, %15, %cst_18 [1] : vector<8x8xf32> to vector<8xf32>
    %17 = vector.shape_cast %16 : vector<8xf32> to vector<8x1xf32>
    %18 = vector.broadcast %17 : vector<8x1xf32> to vector<8x8xf32>
    %19 = arith.subf %15, %18 : vector<8x8xf32>
    %20 = math.exp %19 : vector<8x8xf32>
    %cst_19 = arith.constant dense<0.000000e+00> : vector<8xf32>
    %21 = vector.multi_reduction <add>, %20, %cst_19 [1] : vector<8x8xf32> to vector<8xf32>
    %22 = vector.shape_cast %21 : vector<8xf32> to vector<8x1xf32>
    %23 = tpu.reciprocal %22 {approx = true} : vector<8x1xf32> -> vector<8x1xf32>
    %24 = vector.broadcast %23 : vector<8x1xf32> to vector<8x8xf32>
    %25 = arith.mulf %20, %24 : vector<8x8xf32>
    %26 = vector.broadcast %7 : vector<1x8xf32> to vector<8x8xf32>
    %27 = arith.mulf %25, %26 : vector<8x8xf32>
    %cst_20 = arith.constant dense<0.000000e+00> : vector<8xf32>
    %28 = vector.multi_reduction <add>, %27, %cst_20 [1] : vector<8x8xf32> to vector<8xf32>
    %29 = vector.shape_cast %28 : vector<8xf32> to vector<8x1xf32>
    %cst_21 = arith.constant 9.99999982E-14 : f32
    %30 = vector.broadcast %cst_21 : f32 to vector<8x1xf32>
    %31 = arith.addf %29, %30 : vector<8x1xf32>
    %32 = tpu.reciprocal %31 {approx = true} : vector<8x1xf32> -> vector<8x1xf32>
    %33 = vector.broadcast %32 : vector<8x1xf32> to vector<8x8xf32>
    %34 = arith.mulf %27, %33 : vector<8x8xf32>
    %35 = vector.broadcast %5 : vector<1x8xf32> to vector<8x8xf32>
    %36 = arith.mulf %13, %35 : vector<8x8xf32>
    %cst_22 = arith.constant dense<0xFF800000> : vector<8xf32>
    %37 = vector.multi_reduction <maximumf>, %36, %cst_22 [1] : vector<8x8xf32> to vector<8xf32>
    %38 = vector.shape_cast %37 : vector<8xf32> to vector<8x1xf32>
    %39 = vector.broadcast %38 : vector<8x1xf32> to vector<8x8xf32>
    %40 = arith.subf %36, %39 : vector<8x8xf32>
    %41 = math.exp %40 : vector<8x8xf32>
    %cst_23 = arith.constant dense<0.000000e+00> : vector<8xf32>
    %42 = vector.multi_reduction <add>, %41, %cst_23 [1] : vector<8x8xf32> to vector<8xf32>
    %43 = vector.shape_cast %42 : vector<8xf32> to vector<8x1xf32>
    %44 = tpu.reciprocal %43 {approx = true} : vector<8x1xf32> -> vector<8x1xf32>
    %45 = vector.broadcast %44 : vector<8x1xf32> to vector<8x8xf32>
    %46 = arith.mulf %41, %45 : vector<8x8xf32>
    %47 = vector.broadcast %5 : vector<1x8xf32> to vector<8x8xf32>
    %48 = arith.mulf %46, %47 : vector<8x8xf32>
    %cst_24 = arith.constant dense<0.000000e+00> : vector<8xf32>
    %49 = vector.multi_reduction <add>, %48, %cst_24 [1] : vector<8x8xf32> to vector<8xf32>
    %50 = vector.shape_cast %49 : vector<8xf32> to vector<8x1xf32>
    %cst_25 = arith.constant 9.99999982E-14 : f32
    %51 = vector.broadcast %cst_25 : f32 to vector<8x1xf32>
    %52 = arith.addf %50, %51 : vector<8x1xf32>
    %53 = tpu.reciprocal %52 {approx = true} : vector<8x1xf32> -> vector<8x1xf32>
    %54 = vector.broadcast %53 : vector<8x1xf32> to vector<8x8xf32>
    %55 = arith.mulf %48, %54 : vector<8x8xf32>
    %cst_26 = arith.constant dense<0.000000e+00> : vector<8x64xf32>
    %56 = tpu.matmul %34, %3, %cst_26 {dimension_numbers = #tpu.dot_dimension_numbers<[1], [0], [0], [1], [0, 0, 1, 1], [], []>} : vector<8x8xf32>, vector<8x64xf32>, vector<8x64xf32> -> vector<8x64xf32>
    %57 = vector.broadcast %9 : vector<8x1xf32> to vector<8x64xf32>
    %58 = arith.mulf %56, %57 : vector<8x64xf32>
    %cst_27 = arith.constant dense<0.000000e+00> : vector<8x64xf32>
    %59 = tpu.matmul %55, %1, %cst_27 {dimension_numbers = #tpu.dot_dimension_numbers<[1], [0], [0], [1], [0, 0, 1, 1], [], []>} : vector<8x8xf32>, vector<8x64xf32>, vector<8x64xf32> -> vector<8x64xf32>
    %60 = vector.broadcast %11 : vector<8x1xf32> to vector<8x64xf32>
    %61 = arith.mulf %59, %60 : vector<8x64xf32>
    %c0_28 = arith.constant 0 : index
    %c0_29 = arith.constant 0 : index
    %c0_30 = arith.constant 0 : index
    %62 = vector.load %arg7[%c0_28, %c0_29, %c0_30] : memref<1x8x64xf32, #tpu.memory_space<vmem>>, vector<1x8x64xf32>
    %63 = vector.shape_cast %62 : vector<1x8x64xf32> to vector<8x64xf32>
    %64 = vector.shape_cast %58 : vector<8x64xf32> to vector<1x8x64xf32>
    tpu.vector_store %arg7[%c0_28, %c0_29, %c0_30], %64 {strides = array<i32>} : memref<1x8x64xf32, #tpu.memory_space<vmem>>, vector<1x8x64xf32>,
    %c0_31 = arith.constant 0 : index
    %c0_32 = arith.constant 0 : index
    %c0_33 = arith.constant 0 : index
    %65 = vector.load %arg8[%c0_31, %c0_32, %c0_33] : memref<1x8x64xf32, #tpu.memory_space<vmem>>, vector<1x8x64xf32>
    %66 = vector.shape_cast %65 : vector<1x8x64xf32> to vector<8x64xf32>
    %67 = vector.shape_cast %61 : vector<8x64xf32> to vector<1x8x64xf32>
    tpu.vector_store %arg8[%c0_31, %c0_32, %c0_33], %67 {strides = array<i32>} : memref<1x8x64xf32, #tpu.memory_space<vmem>>, vector<1x8x64xf32>,
    return
  }
  func.func @transform_0(%arg0: i32) -> (i32, i32, i32) {
    %c0_i32 = arith.constant 0 : i32
    %c0_i32_0 = arith.constant 0 : i32
    %c0_i32_1 = arith.constant 0 : i32
    return %arg0, %c0_i32, %c0_i32_0 : i32, i32, i32
  }
  func.func @transform_1(%arg0: i32) -> (i32, i32, i32) {
    %c0_i32 = arith.constant 0 : i32
    %c0_i32_0 = arith.constant 0 : i32
    %c0_i32_1 = arith.constant 0 : i32
    return %arg0, %c0_i32, %c0_i32_0 : i32, i32, i32
  }
  func.func @transform_2(%arg0: i32) -> (i32, i32, i32) {
    %c0_i32 = arith.constant 0 : i32
    %c0_i32_0 = arith.constant 0 : i32
    %c0_i32_1 = arith.constant 0 : i32
    return %arg0, %c0_i32, %c0_i32_0 : i32, i32, i32
  }
  func.func @transform_3(%arg0: i32) -> (i32, i32, i32) {
    %c0_i32 = arith.constant 0 : i32
    %c0_i32_0 = arith.constant 0 : i32
    %c0_i32_1 = arith.constant 0 : i32
    return %arg0, %c0_i32, %c0_i32_0 : i32, i32, i32
  }
  func.func @transform_4(%arg0: i32) -> (i32, i32, i32) {
    %c0_i32 = arith.constant 0 : i32
    %c0_i32_0 = arith.constant 0 : i32
    %c0_i32_1 = arith.constant 0 : i32
    return %arg0, %c0_i32, %c0_i32_0 : i32, i32, i32
  }
  func.func @transform_5(%arg0: i32) -> (i32, i32, i32) {
    %c0_i32 = arith.constant 0 : i32
    %c0_i32_0 = arith.constant 0 : i32
    %c0_i32_1 = arith.constant 0 : i32
    return %arg0, %c0_i32, %c0_i32_0 : i32, i32, i32
  }
  func.func @transform_6(%arg0: i32) -> (i32, i32, i32) {
    %c0_i32 = arith.constant 0 : i32
    %c0_i32_0 = arith.constant 0 : i32
    %c0_i32_1 = arith.constant 0 : i32
    return %arg0, %c0_i32, %c0_i32_0 : i32, i32, i32
  }
  func.func @transform_7(%arg0: i32) -> (i32, i32, i32) {
    %c0_i32 = arith.constant 0 : i32
    %c0_i32_0 = arith.constant 0 : i32
    %c0_i32_1 = arith.constant 0 : i32
    return %arg0, %c0_i32, %c0_i32_0 : i32, i32, i32
  }
}

module attributes {stable_mosaic.version = 11 : i64} {
  func.func @_bilstm_rec_kernel(%arg0: i32, %arg1: memref<8x2x256xf32, #tpu.memory_space<vmem>>, %arg2: memref<8x2x64xf32, #tpu.memory_space<vmem>>, %arg3: memref<64x256xf32, #tpu.memory_space<vmem>>, %arg4: memref<1x256xf32, #tpu.memory_space<vmem>>, %arg5: memref<8x2x64xf32, #tpu.memory_space<vmem>>) attributes {dimension_semantics = [#tpu.dimension_semantics<parallel>], iteration_bounds = array<i64: 1>, scalar_prefetch = 0 : i64, scratch_operands = 0 : i64, tpu.core_type = #tpu.core_type<tc>, window_params = [{transform_indices = @transform_0, window_bounds = array<i64: 8, 2, 256>}, {transform_indices = @transform_1, window_bounds = array<i64: 8, 2, 64>}, {pipeline_mode = #tpu.pipeline_mode<synchronous>, transform_indices = @transform_2, window_bounds = array<i64: 64, 256>}, {pipeline_mode = #tpu.pipeline_mode<synchronous>, transform_indices = @transform_3, window_bounds = array<i64: 1, 256>}, {transform_indices = @transform_4, window_bounds = array<i64: 8, 2, 64>}]} {
    %c0 = arith.constant 0 : index
    %c0_0 = arith.constant 0 : index
    %0 = vector.load %arg3[%c0, %c0_0] : memref<64x256xf32, #tpu.memory_space<vmem>>, vector<64x256xf32>
    %c0_1 = arith.constant 0 : index
    %c0_2 = arith.constant 0 : index
    %1 = vector.load %arg4[%c0_1, %c0_2] : memref<1x256xf32, #tpu.memory_space<vmem>>, vector<1x256xf32>
    %cst = arith.constant 1.000000e+00 : f32
    %2 = vector.broadcast %cst : f32 to vector<1x256xf32>
    %3 = arith.subf %2, %1 : vector<1x256xf32>
    %cst_3 = arith.constant 0.000000e+00 : f32
    %4 = vector.broadcast %cst_3 : f32 to vector<2x64xf32>
    %cst_4 = arith.constant 0.000000e+00 : f32
    %5 = vector.broadcast %cst_4 : f32 to vector<2x64xf32>
    %c0_i32 = arith.constant 0 : i32
    %c7_i32 = arith.constant 7 : i32
    %6 = arith.subi %c7_i32, %c0_i32 : i32
    %7 = arith.index_cast %c0_i32 : i32 to index
    %c0_5 = arith.constant 0 : index
    %c0_6 = arith.constant 0 : index
    %8 = vector.load %arg1[%7, %c0_5, %c0_6] : memref<8x2x256xf32, #tpu.memory_space<vmem>>, vector<1x2x256xf32>
    %9 = vector.shape_cast %8 : vector<1x2x256xf32> to vector<2x256xf32>
    %10 = vector.broadcast %1 : vector<1x256xf32> to vector<2x256xf32>
    %11 = arith.mulf %9, %10 : vector<2x256xf32>
    %12 = arith.index_cast %6 : i32 to index
    %c0_7 = arith.constant 0 : index
    %c0_8 = arith.constant 0 : index
    %13 = vector.load %arg1[%12, %c0_7, %c0_8] : memref<8x2x256xf32, #tpu.memory_space<vmem>>, vector<1x2x256xf32>
    %14 = vector.shape_cast %13 : vector<1x2x256xf32> to vector<2x256xf32>
    %15 = vector.broadcast %3 : vector<1x256xf32> to vector<2x256xf32>
    %16 = arith.mulf %14, %15 : vector<2x256xf32>
    %17 = arith.addf %11, %16 : vector<2x256xf32>
    %cst_9 = arith.constant dense<0.000000e+00> : vector<2x256xf32>
    %18 = tpu.matmul %4, %0, %cst_9 {dimension_numbers = #tpu.dot_dimension_numbers<[1], [0], [0], [1], [0, 0, 1, 1], [], []>} : vector<2x64xf32>, vector<64x256xf32>, vector<2x256xf32> -> vector<2x256xf32>
    %19 = arith.addf %17, %18 : vector<2x256xf32>
    %20 = vector.extract_strided_slice %19 {offsets = [0, 0], sizes = [2, 64], strides = [1, 1]} : vector<2x256xf32> to vector<2x64xf32>
    %21 = arith.negf %20 : vector<2x64xf32>
    %22 = math.exp %21 : vector<2x64xf32>
    %cst_10 = arith.constant 1.000000e+00 : f32
    %23 = vector.broadcast %cst_10 : f32 to vector<2x64xf32>
    %24 = arith.addf %23, %22 : vector<2x64xf32>
    %25 = arith.divf %23, %24 : vector<2x64xf32>
    %26 = vector.extract_strided_slice %19 {offsets = [0, 64], sizes = [2, 64], strides = [1, 1]} : vector<2x256xf32> to vector<2x64xf32>
    %27 = arith.negf %26 : vector<2x64xf32>
    %28 = math.exp %27 : vector<2x64xf32>
    %cst_11 = arith.constant 1.000000e+00 : f32
    %29 = vector.broadcast %cst_11 : f32 to vector<2x64xf32>
    %30 = arith.addf %29, %28 : vector<2x64xf32>
    %31 = arith.divf %29, %30 : vector<2x64xf32>
    %32 = vector.extract_strided_slice %19 {offsets = [0, 128], sizes = [2, 64], strides = [1, 1]} : vector<2x256xf32> to vector<2x64xf32>
    %33 = math.tanh %32 : vector<2x64xf32>
    %34 = vector.extract_strided_slice %19 {offsets = [0, 192], sizes = [2, 64], strides = [1, 1]} : vector<2x256xf32> to vector<2x64xf32>
    %35 = arith.negf %34 : vector<2x64xf32>
    %36 = math.exp %35 : vector<2x64xf32>
    %cst_12 = arith.constant 1.000000e+00 : f32
    %37 = vector.broadcast %cst_12 : f32 to vector<2x64xf32>
    %38 = arith.addf %37, %36 : vector<2x64xf32>
    %39 = arith.divf %37, %38 : vector<2x64xf32>
    %40 = arith.mulf %31, %5 : vector<2x64xf32>
    %41 = arith.mulf %25, %33 : vector<2x64xf32>
    %42 = arith.addf %40, %41 : vector<2x64xf32>
    %43 = math.tanh %42 : vector<2x64xf32>
    %44 = arith.mulf %39, %43 : vector<2x64xf32>
    %45 = arith.index_cast %c0_i32 : i32 to index
    %c0_13 = arith.constant 0 : index
    %c0_14 = arith.constant 0 : index
    %46 = vector.load %arg2[%45, %c0_13, %c0_14] : memref<8x2x64xf32, #tpu.memory_space<vmem>>, vector<1x2x64xf32>
    %47 = vector.shape_cast %46 : vector<1x2x64xf32> to vector<2x64xf32>
    %48 = arith.mulf %47, %44 : vector<2x64xf32>
    %cst_15 = arith.constant 1.000000e+00 : f32
    %49 = vector.broadcast %cst_15 : f32 to vector<2x64xf32>
    %50 = arith.subf %49, %47 : vector<2x64xf32>
    %51 = arith.mulf %50, %4 : vector<2x64xf32>
    %52 = arith.addf %48, %51 : vector<2x64xf32>
    %53 = arith.mulf %47, %42 : vector<2x64xf32>
    %cst_16 = arith.constant 1.000000e+00 : f32
    %54 = vector.broadcast %cst_16 : f32 to vector<2x64xf32>
    %55 = arith.subf %54, %47 : vector<2x64xf32>
    %56 = arith.mulf %55, %5 : vector<2x64xf32>
    %57 = arith.addf %53, %56 : vector<2x64xf32>
    %58 = vector.extract_strided_slice %48 {offsets = [0, 0], sizes = [2, 32], strides = [1, 1]} : vector<2x64xf32> to vector<2x32xf32>
    %59 = arith.index_cast %c0_i32 : i32 to index
    %c0_17 = arith.constant 0 : index
    %c0_18 = arith.constant 0 : index
    %60 = vector.load %arg5[%59, %c0_17, %c0_18] : memref<8x2x64xf32, #tpu.memory_space<vmem>>, vector<1x2x32xf32>
    %61 = vector.shape_cast %60 : vector<1x2x32xf32> to vector<2x32xf32>
    %62 = vector.shape_cast %58 : vector<2x32xf32> to vector<1x2x32xf32>
    tpu.vector_store %arg5[%59, %c0_17, %c0_18], %62 {strides = array<i32>} : memref<8x2x64xf32, #tpu.memory_space<vmem>>, vector<1x2x32xf32>,
    %63 = vector.extract_strided_slice %48 {offsets = [0, 32], sizes = [2, 32], strides = [1, 1]} : vector<2x64xf32> to vector<2x32xf32>
    %64 = arith.index_cast %6 : i32 to index
    %c0_19 = arith.constant 0 : index
    %c32 = arith.constant 32 : index
    %65 = vector.load %arg5[%64, %c0_19, %c32] : memref<8x2x64xf32, #tpu.memory_space<vmem>>, vector<1x2x32xf32>
    %66 = vector.shape_cast %65 : vector<1x2x32xf32> to vector<2x32xf32>
    %67 = vector.shape_cast %63 : vector<2x32xf32> to vector<1x2x32xf32>
    tpu.vector_store %arg5[%64, %c0_19, %c32], %67 {strides = array<i32>} : memref<8x2x64xf32, #tpu.memory_space<vmem>>, vector<1x2x32xf32>,
    %c1_i32 = arith.constant 1 : i32
    %c7_i32_20 = arith.constant 7 : i32
    %68 = arith.subi %c7_i32_20, %c1_i32 : i32
    %69 = arith.index_cast %c1_i32 : i32 to index
    %c0_21 = arith.constant 0 : index
    %c0_22 = arith.constant 0 : index
    %70 = vector.load %arg1[%69, %c0_21, %c0_22] : memref<8x2x256xf32, #tpu.memory_space<vmem>>, vector<1x2x256xf32>
    %71 = vector.shape_cast %70 : vector<1x2x256xf32> to vector<2x256xf32>
    %72 = vector.broadcast %1 : vector<1x256xf32> to vector<2x256xf32>
    %73 = arith.mulf %71, %72 : vector<2x256xf32>
    %74 = arith.index_cast %68 : i32 to index
    %c0_23 = arith.constant 0 : index
    %c0_24 = arith.constant 0 : index
    %75 = vector.load %arg1[%74, %c0_23, %c0_24] : memref<8x2x256xf32, #tpu.memory_space<vmem>>, vector<1x2x256xf32>
    %76 = vector.shape_cast %75 : vector<1x2x256xf32> to vector<2x256xf32>
    %77 = vector.broadcast %3 : vector<1x256xf32> to vector<2x256xf32>
    %78 = arith.mulf %76, %77 : vector<2x256xf32>
    %79 = arith.addf %73, %78 : vector<2x256xf32>
    %cst_25 = arith.constant dense<0.000000e+00> : vector<2x256xf32>
    %80 = tpu.matmul %52, %0, %cst_25 {dimension_numbers = #tpu.dot_dimension_numbers<[1], [0], [0], [1], [0, 0, 1, 1], [], []>} : vector<2x64xf32>, vector<64x256xf32>, vector<2x256xf32> -> vector<2x256xf32>
    %81 = arith.addf %79, %80 : vector<2x256xf32>
    %82 = vector.extract_strided_slice %81 {offsets = [0, 0], sizes = [2, 64], strides = [1, 1]} : vector<2x256xf32> to vector<2x64xf32>
    %83 = arith.negf %82 : vector<2x64xf32>
    %84 = math.exp %83 : vector<2x64xf32>
    %cst_26 = arith.constant 1.000000e+00 : f32
    %85 = vector.broadcast %cst_26 : f32 to vector<2x64xf32>
    %86 = arith.addf %85, %84 : vector<2x64xf32>
    %87 = arith.divf %85, %86 : vector<2x64xf32>
    %88 = vector.extract_strided_slice %81 {offsets = [0, 64], sizes = [2, 64], strides = [1, 1]} : vector<2x256xf32> to vector<2x64xf32>
    %89 = arith.negf %88 : vector<2x64xf32>
    %90 = math.exp %89 : vector<2x64xf32>
    %cst_27 = arith.constant 1.000000e+00 : f32
    %91 = vector.broadcast %cst_27 : f32 to vector<2x64xf32>
    %92 = arith.addf %91, %90 : vector<2x64xf32>
    %93 = arith.divf %91, %92 : vector<2x64xf32>
    %94 = vector.extract_strided_slice %81 {offsets = [0, 128], sizes = [2, 64], strides = [1, 1]} : vector<2x256xf32> to vector<2x64xf32>
    %95 = math.tanh %94 : vector<2x64xf32>
    %96 = vector.extract_strided_slice %81 {offsets = [0, 192], sizes = [2, 64], strides = [1, 1]} : vector<2x256xf32> to vector<2x64xf32>
    %97 = arith.negf %96 : vector<2x64xf32>
    %98 = math.exp %97 : vector<2x64xf32>
    %cst_28 = arith.constant 1.000000e+00 : f32
    %99 = vector.broadcast %cst_28 : f32 to vector<2x64xf32>
    %100 = arith.addf %99, %98 : vector<2x64xf32>
    %101 = arith.divf %99, %100 : vector<2x64xf32>
    %102 = arith.mulf %93, %57 : vector<2x64xf32>
    %103 = arith.mulf %87, %95 : vector<2x64xf32>
    %104 = arith.addf %102, %103 : vector<2x64xf32>
    %105 = math.tanh %104 : vector<2x64xf32>
    %106 = arith.mulf %101, %105 : vector<2x64xf32>
    %107 = arith.index_cast %c1_i32 : i32 to index
    %c0_29 = arith.constant 0 : index
    %c0_30 = arith.constant 0 : index
    %108 = vector.load %arg2[%107, %c0_29, %c0_30] : memref<8x2x64xf32, #tpu.memory_space<vmem>>, vector<1x2x64xf32>
    %109 = vector.shape_cast %108 : vector<1x2x64xf32> to vector<2x64xf32>
    %110 = arith.mulf %109, %106 : vector<2x64xf32>
    %cst_31 = arith.constant 1.000000e+00 : f32
    %111 = vector.broadcast %cst_31 : f32 to vector<2x64xf32>
    %112 = arith.subf %111, %109 : vector<2x64xf32>
    %113 = arith.mulf %112, %52 : vector<2x64xf32>
    %114 = arith.addf %110, %113 : vector<2x64xf32>
    %115 = arith.mulf %109, %104 : vector<2x64xf32>
    %cst_32 = arith.constant 1.000000e+00 : f32
    %116 = vector.broadcast %cst_32 : f32 to vector<2x64xf32>
    %117 = arith.subf %116, %109 : vector<2x64xf32>
    %118 = arith.mulf %117, %57 : vector<2x64xf32>
    %119 = arith.addf %115, %118 : vector<2x64xf32>
    %120 = vector.extract_strided_slice %110 {offsets = [0, 0], sizes = [2, 32], strides = [1, 1]} : vector<2x64xf32> to vector<2x32xf32>
    %121 = arith.index_cast %c1_i32 : i32 to index
    %c0_33 = arith.constant 0 : index
    %c0_34 = arith.constant 0 : index
    %122 = vector.load %arg5[%121, %c0_33, %c0_34] : memref<8x2x64xf32, #tpu.memory_space<vmem>>, vector<1x2x32xf32>
    %123 = vector.shape_cast %122 : vector<1x2x32xf32> to vector<2x32xf32>
    %124 = vector.shape_cast %120 : vector<2x32xf32> to vector<1x2x32xf32>
    tpu.vector_store %arg5[%121, %c0_33, %c0_34], %124 {strides = array<i32>} : memref<8x2x64xf32, #tpu.memory_space<vmem>>, vector<1x2x32xf32>,
    %125 = vector.extract_strided_slice %110 {offsets = [0, 32], sizes = [2, 32], strides = [1, 1]} : vector<2x64xf32> to vector<2x32xf32>
    %126 = arith.index_cast %68 : i32 to index
    %c0_35 = arith.constant 0 : index
    %c32_36 = arith.constant 32 : index
    %127 = vector.load %arg5[%126, %c0_35, %c32_36] : memref<8x2x64xf32, #tpu.memory_space<vmem>>, vector<1x2x32xf32>
    %128 = vector.shape_cast %127 : vector<1x2x32xf32> to vector<2x32xf32>
    %129 = vector.shape_cast %125 : vector<2x32xf32> to vector<1x2x32xf32>
    tpu.vector_store %arg5[%126, %c0_35, %c32_36], %129 {strides = array<i32>} : memref<8x2x64xf32, #tpu.memory_space<vmem>>, vector<1x2x32xf32>,
    %c2_i32 = arith.constant 2 : i32
    %c7_i32_37 = arith.constant 7 : i32
    %130 = arith.subi %c7_i32_37, %c2_i32 : i32
    %131 = arith.index_cast %c2_i32 : i32 to index
    %c0_38 = arith.constant 0 : index
    %c0_39 = arith.constant 0 : index
    %132 = vector.load %arg1[%131, %c0_38, %c0_39] : memref<8x2x256xf32, #tpu.memory_space<vmem>>, vector<1x2x256xf32>
    %133 = vector.shape_cast %132 : vector<1x2x256xf32> to vector<2x256xf32>
    %134 = vector.broadcast %1 : vector<1x256xf32> to vector<2x256xf32>
    %135 = arith.mulf %133, %134 : vector<2x256xf32>
    %136 = arith.index_cast %130 : i32 to index
    %c0_40 = arith.constant 0 : index
    %c0_41 = arith.constant 0 : index
    %137 = vector.load %arg1[%136, %c0_40, %c0_41] : memref<8x2x256xf32, #tpu.memory_space<vmem>>, vector<1x2x256xf32>
    %138 = vector.shape_cast %137 : vector<1x2x256xf32> to vector<2x256xf32>
    %139 = vector.broadcast %3 : vector<1x256xf32> to vector<2x256xf32>
    %140 = arith.mulf %138, %139 : vector<2x256xf32>
    %141 = arith.addf %135, %140 : vector<2x256xf32>
    %cst_42 = arith.constant dense<0.000000e+00> : vector<2x256xf32>
    %142 = tpu.matmul %114, %0, %cst_42 {dimension_numbers = #tpu.dot_dimension_numbers<[1], [0], [0], [1], [0, 0, 1, 1], [], []>} : vector<2x64xf32>, vector<64x256xf32>, vector<2x256xf32> -> vector<2x256xf32>
    %143 = arith.addf %141, %142 : vector<2x256xf32>
    %144 = vector.extract_strided_slice %143 {offsets = [0, 0], sizes = [2, 64], strides = [1, 1]} : vector<2x256xf32> to vector<2x64xf32>
    %145 = arith.negf %144 : vector<2x64xf32>
    %146 = math.exp %145 : vector<2x64xf32>
    %cst_43 = arith.constant 1.000000e+00 : f32
    %147 = vector.broadcast %cst_43 : f32 to vector<2x64xf32>
    %148 = arith.addf %147, %146 : vector<2x64xf32>
    %149 = arith.divf %147, %148 : vector<2x64xf32>
    %150 = vector.extract_strided_slice %143 {offsets = [0, 64], sizes = [2, 64], strides = [1, 1]} : vector<2x256xf32> to vector<2x64xf32>
    %151 = arith.negf %150 : vector<2x64xf32>
    %152 = math.exp %151 : vector<2x64xf32>
    %cst_44 = arith.constant 1.000000e+00 : f32
    %153 = vector.broadcast %cst_44 : f32 to vector<2x64xf32>
    %154 = arith.addf %153, %152 : vector<2x64xf32>
    %155 = arith.divf %153, %154 : vector<2x64xf32>
    %156 = vector.extract_strided_slice %143 {offsets = [0, 128], sizes = [2, 64], strides = [1, 1]} : vector<2x256xf32> to vector<2x64xf32>
    %157 = math.tanh %156 : vector<2x64xf32>
    %158 = vector.extract_strided_slice %143 {offsets = [0, 192], sizes = [2, 64], strides = [1, 1]} : vector<2x256xf32> to vector<2x64xf32>
    %159 = arith.negf %158 : vector<2x64xf32>
    %160 = math.exp %159 : vector<2x64xf32>
    %cst_45 = arith.constant 1.000000e+00 : f32
    %161 = vector.broadcast %cst_45 : f32 to vector<2x64xf32>
    %162 = arith.addf %161, %160 : vector<2x64xf32>
    %163 = arith.divf %161, %162 : vector<2x64xf32>
    %164 = arith.mulf %155, %119 : vector<2x64xf32>
    %165 = arith.mulf %149, %157 : vector<2x64xf32>
    %166 = arith.addf %164, %165 : vector<2x64xf32>
    %167 = math.tanh %166 : vector<2x64xf32>
    %168 = arith.mulf %163, %167 : vector<2x64xf32>
    %169 = arith.index_cast %c2_i32 : i32 to index
    %c0_46 = arith.constant 0 : index
    %c0_47 = arith.constant 0 : index
    %170 = vector.load %arg2[%169, %c0_46, %c0_47] : memref<8x2x64xf32, #tpu.memory_space<vmem>>, vector<1x2x64xf32>
    %171 = vector.shape_cast %170 : vector<1x2x64xf32> to vector<2x64xf32>
    %172 = arith.mulf %171, %168 : vector<2x64xf32>
    %cst_48 = arith.constant 1.000000e+00 : f32
    %173 = vector.broadcast %cst_48 : f32 to vector<2x64xf32>
    %174 = arith.subf %173, %171 : vector<2x64xf32>
    %175 = arith.mulf %174, %114 : vector<2x64xf32>
    %176 = arith.addf %172, %175 : vector<2x64xf32>
    %177 = arith.mulf %171, %166 : vector<2x64xf32>
    %cst_49 = arith.constant 1.000000e+00 : f32
    %178 = vector.broadcast %cst_49 : f32 to vector<2x64xf32>
    %179 = arith.subf %178, %171 : vector<2x64xf32>
    %180 = arith.mulf %179, %119 : vector<2x64xf32>
    %181 = arith.addf %177, %180 : vector<2x64xf32>
    %182 = vector.extract_strided_slice %172 {offsets = [0, 0], sizes = [2, 32], strides = [1, 1]} : vector<2x64xf32> to vector<2x32xf32>
    %183 = arith.index_cast %c2_i32 : i32 to index
    %c0_50 = arith.constant 0 : index
    %c0_51 = arith.constant 0 : index
    %184 = vector.load %arg5[%183, %c0_50, %c0_51] : memref<8x2x64xf32, #tpu.memory_space<vmem>>, vector<1x2x32xf32>
    %185 = vector.shape_cast %184 : vector<1x2x32xf32> to vector<2x32xf32>
    %186 = vector.shape_cast %182 : vector<2x32xf32> to vector<1x2x32xf32>
    tpu.vector_store %arg5[%183, %c0_50, %c0_51], %186 {strides = array<i32>} : memref<8x2x64xf32, #tpu.memory_space<vmem>>, vector<1x2x32xf32>,
    %187 = vector.extract_strided_slice %172 {offsets = [0, 32], sizes = [2, 32], strides = [1, 1]} : vector<2x64xf32> to vector<2x32xf32>
    %188 = arith.index_cast %130 : i32 to index
    %c0_52 = arith.constant 0 : index
    %c32_53 = arith.constant 32 : index
    %189 = vector.load %arg5[%188, %c0_52, %c32_53] : memref<8x2x64xf32, #tpu.memory_space<vmem>>, vector<1x2x32xf32>
    %190 = vector.shape_cast %189 : vector<1x2x32xf32> to vector<2x32xf32>
    %191 = vector.shape_cast %187 : vector<2x32xf32> to vector<1x2x32xf32>
    tpu.vector_store %arg5[%188, %c0_52, %c32_53], %191 {strides = array<i32>} : memref<8x2x64xf32, #tpu.memory_space<vmem>>, vector<1x2x32xf32>,
    %c3_i32 = arith.constant 3 : i32
    %c7_i32_54 = arith.constant 7 : i32
    %192 = arith.subi %c7_i32_54, %c3_i32 : i32
    %193 = arith.index_cast %c3_i32 : i32 to index
    %c0_55 = arith.constant 0 : index
    %c0_56 = arith.constant 0 : index
    %194 = vector.load %arg1[%193, %c0_55, %c0_56] : memref<8x2x256xf32, #tpu.memory_space<vmem>>, vector<1x2x256xf32>
    %195 = vector.shape_cast %194 : vector<1x2x256xf32> to vector<2x256xf32>
    %196 = vector.broadcast %1 : vector<1x256xf32> to vector<2x256xf32>
    %197 = arith.mulf %195, %196 : vector<2x256xf32>
    %198 = arith.index_cast %192 : i32 to index
    %c0_57 = arith.constant 0 : index
    %c0_58 = arith.constant 0 : index
    %199 = vector.load %arg1[%198, %c0_57, %c0_58] : memref<8x2x256xf32, #tpu.memory_space<vmem>>, vector<1x2x256xf32>
    %200 = vector.shape_cast %199 : vector<1x2x256xf32> to vector<2x256xf32>
    %201 = vector.broadcast %3 : vector<1x256xf32> to vector<2x256xf32>
    %202 = arith.mulf %200, %201 : vector<2x256xf32>
    %203 = arith.addf %197, %202 : vector<2x256xf32>
    %cst_59 = arith.constant dense<0.000000e+00> : vector<2x256xf32>
    %204 = tpu.matmul %176, %0, %cst_59 {dimension_numbers = #tpu.dot_dimension_numbers<[1], [0], [0], [1], [0, 0, 1, 1], [], []>} : vector<2x64xf32>, vector<64x256xf32>, vector<2x256xf32> -> vector<2x256xf32>
    %205 = arith.addf %203, %204 : vector<2x256xf32>
    %206 = vector.extract_strided_slice %205 {offsets = [0, 0], sizes = [2, 64], strides = [1, 1]} : vector<2x256xf32> to vector<2x64xf32>
    %207 = arith.negf %206 : vector<2x64xf32>
    %208 = math.exp %207 : vector<2x64xf32>
    %cst_60 = arith.constant 1.000000e+00 : f32
    %209 = vector.broadcast %cst_60 : f32 to vector<2x64xf32>
    %210 = arith.addf %209, %208 : vector<2x64xf32>
    %211 = arith.divf %209, %210 : vector<2x64xf32>
    %212 = vector.extract_strided_slice %205 {offsets = [0, 64], sizes = [2, 64], strides = [1, 1]} : vector<2x256xf32> to vector<2x64xf32>
    %213 = arith.negf %212 : vector<2x64xf32>
    %214 = math.exp %213 : vector<2x64xf32>
    %cst_61 = arith.constant 1.000000e+00 : f32
    %215 = vector.broadcast %cst_61 : f32 to vector<2x64xf32>
    %216 = arith.addf %215, %214 : vector<2x64xf32>
    %217 = arith.divf %215, %216 : vector<2x64xf32>
    %218 = vector.extract_strided_slice %205 {offsets = [0, 128], sizes = [2, 64], strides = [1, 1]} : vector<2x256xf32> to vector<2x64xf32>
    %219 = math.tanh %218 : vector<2x64xf32>
    %220 = vector.extract_strided_slice %205 {offsets = [0, 192], sizes = [2, 64], strides = [1, 1]} : vector<2x256xf32> to vector<2x64xf32>
    %221 = arith.negf %220 : vector<2x64xf32>
    %222 = math.exp %221 : vector<2x64xf32>
    %cst_62 = arith.constant 1.000000e+00 : f32
    %223 = vector.broadcast %cst_62 : f32 to vector<2x64xf32>
    %224 = arith.addf %223, %222 : vector<2x64xf32>
    %225 = arith.divf %223, %224 : vector<2x64xf32>
    %226 = arith.mulf %217, %181 : vector<2x64xf32>
    %227 = arith.mulf %211, %219 : vector<2x64xf32>
    %228 = arith.addf %226, %227 : vector<2x64xf32>
    %229 = math.tanh %228 : vector<2x64xf32>
    %230 = arith.mulf %225, %229 : vector<2x64xf32>
    %231 = arith.index_cast %c3_i32 : i32 to index
    %c0_63 = arith.constant 0 : index
    %c0_64 = arith.constant 0 : index
    %232 = vector.load %arg2[%231, %c0_63, %c0_64] : memref<8x2x64xf32, #tpu.memory_space<vmem>>, vector<1x2x64xf32>
    %233 = vector.shape_cast %232 : vector<1x2x64xf32> to vector<2x64xf32>
    %234 = arith.mulf %233, %230 : vector<2x64xf32>
    %cst_65 = arith.constant 1.000000e+00 : f32
    %235 = vector.broadcast %cst_65 : f32 to vector<2x64xf32>
    %236 = arith.subf %235, %233 : vector<2x64xf32>
    %237 = arith.mulf %236, %176 : vector<2x64xf32>
    %238 = arith.addf %234, %237 : vector<2x64xf32>
    %239 = arith.mulf %233, %228 : vector<2x64xf32>
    %cst_66 = arith.constant 1.000000e+00 : f32
    %240 = vector.broadcast %cst_66 : f32 to vector<2x64xf32>
    %241 = arith.subf %240, %233 : vector<2x64xf32>
    %242 = arith.mulf %241, %181 : vector<2x64xf32>
    %243 = arith.addf %239, %242 : vector<2x64xf32>
    %244 = vector.extract_strided_slice %234 {offsets = [0, 0], sizes = [2, 32], strides = [1, 1]} : vector<2x64xf32> to vector<2x32xf32>
    %245 = arith.index_cast %c3_i32 : i32 to index
    %c0_67 = arith.constant 0 : index
    %c0_68 = arith.constant 0 : index
    %246 = vector.load %arg5[%245, %c0_67, %c0_68] : memref<8x2x64xf32, #tpu.memory_space<vmem>>, vector<1x2x32xf32>
    %247 = vector.shape_cast %246 : vector<1x2x32xf32> to vector<2x32xf32>
    %248 = vector.shape_cast %244 : vector<2x32xf32> to vector<1x2x32xf32>
    tpu.vector_store %arg5[%245, %c0_67, %c0_68], %248 {strides = array<i32>} : memref<8x2x64xf32, #tpu.memory_space<vmem>>, vector<1x2x32xf32>,
    %249 = vector.extract_strided_slice %234 {offsets = [0, 32], sizes = [2, 32], strides = [1, 1]} : vector<2x64xf32> to vector<2x32xf32>
    %250 = arith.index_cast %192 : i32 to index
    %c0_69 = arith.constant 0 : index
    %c32_70 = arith.constant 32 : index
    %251 = vector.load %arg5[%250, %c0_69, %c32_70] : memref<8x2x64xf32, #tpu.memory_space<vmem>>, vector<1x2x32xf32>
    %252 = vector.shape_cast %251 : vector<1x2x32xf32> to vector<2x32xf32>
    %253 = vector.shape_cast %249 : vector<2x32xf32> to vector<1x2x32xf32>
    tpu.vector_store %arg5[%250, %c0_69, %c32_70], %253 {strides = array<i32>} : memref<8x2x64xf32, #tpu.memory_space<vmem>>, vector<1x2x32xf32>,
    %c4_i32 = arith.constant 4 : i32
    %c7_i32_71 = arith.constant 7 : i32
    %254 = arith.subi %c7_i32_71, %c4_i32 : i32
    %255 = arith.index_cast %c4_i32 : i32 to index
    %c0_72 = arith.constant 0 : index
    %c0_73 = arith.constant 0 : index
    %256 = vector.load %arg1[%255, %c0_72, %c0_73] : memref<8x2x256xf32, #tpu.memory_space<vmem>>, vector<1x2x256xf32>
    %257 = vector.shape_cast %256 : vector<1x2x256xf32> to vector<2x256xf32>
    %258 = vector.broadcast %1 : vector<1x256xf32> to vector<2x256xf32>
    %259 = arith.mulf %257, %258 : vector<2x256xf32>
    %260 = arith.index_cast %254 : i32 to index
    %c0_74 = arith.constant 0 : index
    %c0_75 = arith.constant 0 : index
    %261 = vector.load %arg1[%260, %c0_74, %c0_75] : memref<8x2x256xf32, #tpu.memory_space<vmem>>, vector<1x2x256xf32>
    %262 = vector.shape_cast %261 : vector<1x2x256xf32> to vector<2x256xf32>
    %263 = vector.broadcast %3 : vector<1x256xf32> to vector<2x256xf32>
    %264 = arith.mulf %262, %263 : vector<2x256xf32>
    %265 = arith.addf %259, %264 : vector<2x256xf32>
    %cst_76 = arith.constant dense<0.000000e+00> : vector<2x256xf32>
    %266 = tpu.matmul %238, %0, %cst_76 {dimension_numbers = #tpu.dot_dimension_numbers<[1], [0], [0], [1], [0, 0, 1, 1], [], []>} : vector<2x64xf32>, vector<64x256xf32>, vector<2x256xf32> -> vector<2x256xf32>
    %267 = arith.addf %265, %266 : vector<2x256xf32>
    %268 = vector.extract_strided_slice %267 {offsets = [0, 0], sizes = [2, 64], strides = [1, 1]} : vector<2x256xf32> to vector<2x64xf32>
    %269 = arith.negf %268 : vector<2x64xf32>
    %270 = math.exp %269 : vector<2x64xf32>
    %cst_77 = arith.constant 1.000000e+00 : f32
    %271 = vector.broadcast %cst_77 : f32 to vector<2x64xf32>
    %272 = arith.addf %271, %270 : vector<2x64xf32>
    %273 = arith.divf %271, %272 : vector<2x64xf32>
    %274 = vector.extract_strided_slice %267 {offsets = [0, 64], sizes = [2, 64], strides = [1, 1]} : vector<2x256xf32> to vector<2x64xf32>
    %275 = arith.negf %274 : vector<2x64xf32>
    %276 = math.exp %275 : vector<2x64xf32>
    %cst_78 = arith.constant 1.000000e+00 : f32
    %277 = vector.broadcast %cst_78 : f32 to vector<2x64xf32>
    %278 = arith.addf %277, %276 : vector<2x64xf32>
    %279 = arith.divf %277, %278 : vector<2x64xf32>
    %280 = vector.extract_strided_slice %267 {offsets = [0, 128], sizes = [2, 64], strides = [1, 1]} : vector<2x256xf32> to vector<2x64xf32>
    %281 = math.tanh %280 : vector<2x64xf32>
    %282 = vector.extract_strided_slice %267 {offsets = [0, 192], sizes = [2, 64], strides = [1, 1]} : vector<2x256xf32> to vector<2x64xf32>
    %283 = arith.negf %282 : vector<2x64xf32>
    %284 = math.exp %283 : vector<2x64xf32>
    %cst_79 = arith.constant 1.000000e+00 : f32
    %285 = vector.broadcast %cst_79 : f32 to vector<2x64xf32>
    %286 = arith.addf %285, %284 : vector<2x64xf32>
    %287 = arith.divf %285, %286 : vector<2x64xf32>
    %288 = arith.mulf %279, %243 : vector<2x64xf32>
    %289 = arith.mulf %273, %281 : vector<2x64xf32>
    %290 = arith.addf %288, %289 : vector<2x64xf32>
    %291 = math.tanh %290 : vector<2x64xf32>
    %292 = arith.mulf %287, %291 : vector<2x64xf32>
    %293 = arith.index_cast %c4_i32 : i32 to index
    %c0_80 = arith.constant 0 : index
    %c0_81 = arith.constant 0 : index
    %294 = vector.load %arg2[%293, %c0_80, %c0_81] : memref<8x2x64xf32, #tpu.memory_space<vmem>>, vector<1x2x64xf32>
    %295 = vector.shape_cast %294 : vector<1x2x64xf32> to vector<2x64xf32>
    %296 = arith.mulf %295, %292 : vector<2x64xf32>
    %cst_82 = arith.constant 1.000000e+00 : f32
    %297 = vector.broadcast %cst_82 : f32 to vector<2x64xf32>
    %298 = arith.subf %297, %295 : vector<2x64xf32>
    %299 = arith.mulf %298, %238 : vector<2x64xf32>
    %300 = arith.addf %296, %299 : vector<2x64xf32>
    %301 = arith.mulf %295, %290 : vector<2x64xf32>
    %cst_83 = arith.constant 1.000000e+00 : f32
    %302 = vector.broadcast %cst_83 : f32 to vector<2x64xf32>
    %303 = arith.subf %302, %295 : vector<2x64xf32>
    %304 = arith.mulf %303, %243 : vector<2x64xf32>
    %305 = arith.addf %301, %304 : vector<2x64xf32>
    %306 = vector.extract_strided_slice %296 {offsets = [0, 0], sizes = [2, 32], strides = [1, 1]} : vector<2x64xf32> to vector<2x32xf32>
    %307 = arith.index_cast %c4_i32 : i32 to index
    %c0_84 = arith.constant 0 : index
    %c0_85 = arith.constant 0 : index
    %308 = vector.load %arg5[%307, %c0_84, %c0_85] : memref<8x2x64xf32, #tpu.memory_space<vmem>>, vector<1x2x32xf32>
    %309 = vector.shape_cast %308 : vector<1x2x32xf32> to vector<2x32xf32>
    %310 = vector.shape_cast %306 : vector<2x32xf32> to vector<1x2x32xf32>
    tpu.vector_store %arg5[%307, %c0_84, %c0_85], %310 {strides = array<i32>} : memref<8x2x64xf32, #tpu.memory_space<vmem>>, vector<1x2x32xf32>,
    %311 = vector.extract_strided_slice %296 {offsets = [0, 32], sizes = [2, 32], strides = [1, 1]} : vector<2x64xf32> to vector<2x32xf32>
    %312 = arith.index_cast %254 : i32 to index
    %c0_86 = arith.constant 0 : index
    %c32_87 = arith.constant 32 : index
    %313 = vector.load %arg5[%312, %c0_86, %c32_87] : memref<8x2x64xf32, #tpu.memory_space<vmem>>, vector<1x2x32xf32>
    %314 = vector.shape_cast %313 : vector<1x2x32xf32> to vector<2x32xf32>
    %315 = vector.shape_cast %311 : vector<2x32xf32> to vector<1x2x32xf32>
    tpu.vector_store %arg5[%312, %c0_86, %c32_87], %315 {strides = array<i32>} : memref<8x2x64xf32, #tpu.memory_space<vmem>>, vector<1x2x32xf32>,
    %c5_i32 = arith.constant 5 : i32
    %c7_i32_88 = arith.constant 7 : i32
    %316 = arith.subi %c7_i32_88, %c5_i32 : i32
    %317 = arith.index_cast %c5_i32 : i32 to index
    %c0_89 = arith.constant 0 : index
    %c0_90 = arith.constant 0 : index
    %318 = vector.load %arg1[%317, %c0_89, %c0_90] : memref<8x2x256xf32, #tpu.memory_space<vmem>>, vector<1x2x256xf32>
    %319 = vector.shape_cast %318 : vector<1x2x256xf32> to vector<2x256xf32>
    %320 = vector.broadcast %1 : vector<1x256xf32> to vector<2x256xf32>
    %321 = arith.mulf %319, %320 : vector<2x256xf32>
    %322 = arith.index_cast %316 : i32 to index
    %c0_91 = arith.constant 0 : index
    %c0_92 = arith.constant 0 : index
    %323 = vector.load %arg1[%322, %c0_91, %c0_92] : memref<8x2x256xf32, #tpu.memory_space<vmem>>, vector<1x2x256xf32>
    %324 = vector.shape_cast %323 : vector<1x2x256xf32> to vector<2x256xf32>
    %325 = vector.broadcast %3 : vector<1x256xf32> to vector<2x256xf32>
    %326 = arith.mulf %324, %325 : vector<2x256xf32>
    %327 = arith.addf %321, %326 : vector<2x256xf32>
    %cst_93 = arith.constant dense<0.000000e+00> : vector<2x256xf32>
    %328 = tpu.matmul %300, %0, %cst_93 {dimension_numbers = #tpu.dot_dimension_numbers<[1], [0], [0], [1], [0, 0, 1, 1], [], []>} : vector<2x64xf32>, vector<64x256xf32>, vector<2x256xf32> -> vector<2x256xf32>
    %329 = arith.addf %327, %328 : vector<2x256xf32>
    %330 = vector.extract_strided_slice %329 {offsets = [0, 0], sizes = [2, 64], strides = [1, 1]} : vector<2x256xf32> to vector<2x64xf32>
    %331 = arith.negf %330 : vector<2x64xf32>
    %332 = math.exp %331 : vector<2x64xf32>
    %cst_94 = arith.constant 1.000000e+00 : f32
    %333 = vector.broadcast %cst_94 : f32 to vector<2x64xf32>
    %334 = arith.addf %333, %332 : vector<2x64xf32>
    %335 = arith.divf %333, %334 : vector<2x64xf32>
    %336 = vector.extract_strided_slice %329 {offsets = [0, 64], sizes = [2, 64], strides = [1, 1]} : vector<2x256xf32> to vector<2x64xf32>
    %337 = arith.negf %336 : vector<2x64xf32>
    %338 = math.exp %337 : vector<2x64xf32>
    %cst_95 = arith.constant 1.000000e+00 : f32
    %339 = vector.broadcast %cst_95 : f32 to vector<2x64xf32>
    %340 = arith.addf %339, %338 : vector<2x64xf32>
    %341 = arith.divf %339, %340 : vector<2x64xf32>
    %342 = vector.extract_strided_slice %329 {offsets = [0, 128], sizes = [2, 64], strides = [1, 1]} : vector<2x256xf32> to vector<2x64xf32>
    %343 = math.tanh %342 : vector<2x64xf32>
    %344 = vector.extract_strided_slice %329 {offsets = [0, 192], sizes = [2, 64], strides = [1, 1]} : vector<2x256xf32> to vector<2x64xf32>
    %345 = arith.negf %344 : vector<2x64xf32>
    %346 = math.exp %345 : vector<2x64xf32>
    %cst_96 = arith.constant 1.000000e+00 : f32
    %347 = vector.broadcast %cst_96 : f32 to vector<2x64xf32>
    %348 = arith.addf %347, %346 : vector<2x64xf32>
    %349 = arith.divf %347, %348 : vector<2x64xf32>
    %350 = arith.mulf %341, %305 : vector<2x64xf32>
    %351 = arith.mulf %335, %343 : vector<2x64xf32>
    %352 = arith.addf %350, %351 : vector<2x64xf32>
    %353 = math.tanh %352 : vector<2x64xf32>
    %354 = arith.mulf %349, %353 : vector<2x64xf32>
    %355 = arith.index_cast %c5_i32 : i32 to index
    %c0_97 = arith.constant 0 : index
    %c0_98 = arith.constant 0 : index
    %356 = vector.load %arg2[%355, %c0_97, %c0_98] : memref<8x2x64xf32, #tpu.memory_space<vmem>>, vector<1x2x64xf32>
    %357 = vector.shape_cast %356 : vector<1x2x64xf32> to vector<2x64xf32>
    %358 = arith.mulf %357, %354 : vector<2x64xf32>
    %cst_99 = arith.constant 1.000000e+00 : f32
    %359 = vector.broadcast %cst_99 : f32 to vector<2x64xf32>
    %360 = arith.subf %359, %357 : vector<2x64xf32>
    %361 = arith.mulf %360, %300 : vector<2x64xf32>
    %362 = arith.addf %358, %361 : vector<2x64xf32>
    %363 = arith.mulf %357, %352 : vector<2x64xf32>
    %cst_100 = arith.constant 1.000000e+00 : f32
    %364 = vector.broadcast %cst_100 : f32 to vector<2x64xf32>
    %365 = arith.subf %364, %357 : vector<2x64xf32>
    %366 = arith.mulf %365, %305 : vector<2x64xf32>
    %367 = arith.addf %363, %366 : vector<2x64xf32>
    %368 = vector.extract_strided_slice %358 {offsets = [0, 0], sizes = [2, 32], strides = [1, 1]} : vector<2x64xf32> to vector<2x32xf32>
    %369 = arith.index_cast %c5_i32 : i32 to index
    %c0_101 = arith.constant 0 : index
    %c0_102 = arith.constant 0 : index
    %370 = vector.load %arg5[%369, %c0_101, %c0_102] : memref<8x2x64xf32, #tpu.memory_space<vmem>>, vector<1x2x32xf32>
    %371 = vector.shape_cast %370 : vector<1x2x32xf32> to vector<2x32xf32>
    %372 = vector.shape_cast %368 : vector<2x32xf32> to vector<1x2x32xf32>
    tpu.vector_store %arg5[%369, %c0_101, %c0_102], %372 {strides = array<i32>} : memref<8x2x64xf32, #tpu.memory_space<vmem>>, vector<1x2x32xf32>,
    %373 = vector.extract_strided_slice %358 {offsets = [0, 32], sizes = [2, 32], strides = [1, 1]} : vector<2x64xf32> to vector<2x32xf32>
    %374 = arith.index_cast %316 : i32 to index
    %c0_103 = arith.constant 0 : index
    %c32_104 = arith.constant 32 : index
    %375 = vector.load %arg5[%374, %c0_103, %c32_104] : memref<8x2x64xf32, #tpu.memory_space<vmem>>, vector<1x2x32xf32>
    %376 = vector.shape_cast %375 : vector<1x2x32xf32> to vector<2x32xf32>
    %377 = vector.shape_cast %373 : vector<2x32xf32> to vector<1x2x32xf32>
    tpu.vector_store %arg5[%374, %c0_103, %c32_104], %377 {strides = array<i32>} : memref<8x2x64xf32, #tpu.memory_space<vmem>>, vector<1x2x32xf32>,
    %c6_i32 = arith.constant 6 : i32
    %c7_i32_105 = arith.constant 7 : i32
    %378 = arith.subi %c7_i32_105, %c6_i32 : i32
    %379 = arith.index_cast %c6_i32 : i32 to index
    %c0_106 = arith.constant 0 : index
    %c0_107 = arith.constant 0 : index
    %380 = vector.load %arg1[%379, %c0_106, %c0_107] : memref<8x2x256xf32, #tpu.memory_space<vmem>>, vector<1x2x256xf32>
    %381 = vector.shape_cast %380 : vector<1x2x256xf32> to vector<2x256xf32>
    %382 = vector.broadcast %1 : vector<1x256xf32> to vector<2x256xf32>
    %383 = arith.mulf %381, %382 : vector<2x256xf32>
    %384 = arith.index_cast %378 : i32 to index
    %c0_108 = arith.constant 0 : index
    %c0_109 = arith.constant 0 : index
    %385 = vector.load %arg1[%384, %c0_108, %c0_109] : memref<8x2x256xf32, #tpu.memory_space<vmem>>, vector<1x2x256xf32>
    %386 = vector.shape_cast %385 : vector<1x2x256xf32> to vector<2x256xf32>
    %387 = vector.broadcast %3 : vector<1x256xf32> to vector<2x256xf32>
    %388 = arith.mulf %386, %387 : vector<2x256xf32>
    %389 = arith.addf %383, %388 : vector<2x256xf32>
    %cst_110 = arith.constant dense<0.000000e+00> : vector<2x256xf32>
    %390 = tpu.matmul %362, %0, %cst_110 {dimension_numbers = #tpu.dot_dimension_numbers<[1], [0], [0], [1], [0, 0, 1, 1], [], []>} : vector<2x64xf32>, vector<64x256xf32>, vector<2x256xf32> -> vector<2x256xf32>
    %391 = arith.addf %389, %390 : vector<2x256xf32>
    %392 = vector.extract_strided_slice %391 {offsets = [0, 0], sizes = [2, 64], strides = [1, 1]} : vector<2x256xf32> to vector<2x64xf32>
    %393 = arith.negf %392 : vector<2x64xf32>
    %394 = math.exp %393 : vector<2x64xf32>
    %cst_111 = arith.constant 1.000000e+00 : f32
    %395 = vector.broadcast %cst_111 : f32 to vector<2x64xf32>
    %396 = arith.addf %395, %394 : vector<2x64xf32>
    %397 = arith.divf %395, %396 : vector<2x64xf32>
    %398 = vector.extract_strided_slice %391 {offsets = [0, 64], sizes = [2, 64], strides = [1, 1]} : vector<2x256xf32> to vector<2x64xf32>
    %399 = arith.negf %398 : vector<2x64xf32>
    %400 = math.exp %399 : vector<2x64xf32>
    %cst_112 = arith.constant 1.000000e+00 : f32
    %401 = vector.broadcast %cst_112 : f32 to vector<2x64xf32>
    %402 = arith.addf %401, %400 : vector<2x64xf32>
    %403 = arith.divf %401, %402 : vector<2x64xf32>
    %404 = vector.extract_strided_slice %391 {offsets = [0, 128], sizes = [2, 64], strides = [1, 1]} : vector<2x256xf32> to vector<2x64xf32>
    %405 = math.tanh %404 : vector<2x64xf32>
    %406 = vector.extract_strided_slice %391 {offsets = [0, 192], sizes = [2, 64], strides = [1, 1]} : vector<2x256xf32> to vector<2x64xf32>
    %407 = arith.negf %406 : vector<2x64xf32>
    %408 = math.exp %407 : vector<2x64xf32>
    %cst_113 = arith.constant 1.000000e+00 : f32
    %409 = vector.broadcast %cst_113 : f32 to vector<2x64xf32>
    %410 = arith.addf %409, %408 : vector<2x64xf32>
    %411 = arith.divf %409, %410 : vector<2x64xf32>
    %412 = arith.mulf %403, %367 : vector<2x64xf32>
    %413 = arith.mulf %397, %405 : vector<2x64xf32>
    %414 = arith.addf %412, %413 : vector<2x64xf32>
    %415 = math.tanh %414 : vector<2x64xf32>
    %416 = arith.mulf %411, %415 : vector<2x64xf32>
    %417 = arith.index_cast %c6_i32 : i32 to index
    %c0_114 = arith.constant 0 : index
    %c0_115 = arith.constant 0 : index
    %418 = vector.load %arg2[%417, %c0_114, %c0_115] : memref<8x2x64xf32, #tpu.memory_space<vmem>>, vector<1x2x64xf32>
    %419 = vector.shape_cast %418 : vector<1x2x64xf32> to vector<2x64xf32>
    %420 = arith.mulf %419, %416 : vector<2x64xf32>
    %cst_116 = arith.constant 1.000000e+00 : f32
    %421 = vector.broadcast %cst_116 : f32 to vector<2x64xf32>
    %422 = arith.subf %421, %419 : vector<2x64xf32>
    %423 = arith.mulf %422, %362 : vector<2x64xf32>
    %424 = arith.addf %420, %423 : vector<2x64xf32>
    %425 = arith.mulf %419, %414 : vector<2x64xf32>
    %cst_117 = arith.constant 1.000000e+00 : f32
    %426 = vector.broadcast %cst_117 : f32 to vector<2x64xf32>
    %427 = arith.subf %426, %419 : vector<2x64xf32>
    %428 = arith.mulf %427, %367 : vector<2x64xf32>
    %429 = arith.addf %425, %428 : vector<2x64xf32>
    %430 = vector.extract_strided_slice %420 {offsets = [0, 0], sizes = [2, 32], strides = [1, 1]} : vector<2x64xf32> to vector<2x32xf32>
    %431 = arith.index_cast %c6_i32 : i32 to index
    %c0_118 = arith.constant 0 : index
    %c0_119 = arith.constant 0 : index
    %432 = vector.load %arg5[%431, %c0_118, %c0_119] : memref<8x2x64xf32, #tpu.memory_space<vmem>>, vector<1x2x32xf32>
    %433 = vector.shape_cast %432 : vector<1x2x32xf32> to vector<2x32xf32>
    %434 = vector.shape_cast %430 : vector<2x32xf32> to vector<1x2x32xf32>
    tpu.vector_store %arg5[%431, %c0_118, %c0_119], %434 {strides = array<i32>} : memref<8x2x64xf32, #tpu.memory_space<vmem>>, vector<1x2x32xf32>,
    %435 = vector.extract_strided_slice %420 {offsets = [0, 32], sizes = [2, 32], strides = [1, 1]} : vector<2x64xf32> to vector<2x32xf32>
    %436 = arith.index_cast %378 : i32 to index
    %c0_120 = arith.constant 0 : index
    %c32_121 = arith.constant 32 : index
    %437 = vector.load %arg5[%436, %c0_120, %c32_121] : memref<8x2x64xf32, #tpu.memory_space<vmem>>, vector<1x2x32xf32>
    %438 = vector.shape_cast %437 : vector<1x2x32xf32> to vector<2x32xf32>
    %439 = vector.shape_cast %435 : vector<2x32xf32> to vector<1x2x32xf32>
    tpu.vector_store %arg5[%436, %c0_120, %c32_121], %439 {strides = array<i32>} : memref<8x2x64xf32, #tpu.memory_space<vmem>>, vector<1x2x32xf32>,
    %c7_i32_122 = arith.constant 7 : i32
    %c7_i32_123 = arith.constant 7 : i32
    %440 = arith.subi %c7_i32_123, %c7_i32_122 : i32
    %441 = arith.index_cast %c7_i32_122 : i32 to index
    %c0_124 = arith.constant 0 : index
    %c0_125 = arith.constant 0 : index
    %442 = vector.load %arg1[%441, %c0_124, %c0_125] : memref<8x2x256xf32, #tpu.memory_space<vmem>>, vector<1x2x256xf32>
    %443 = vector.shape_cast %442 : vector<1x2x256xf32> to vector<2x256xf32>
    %444 = vector.broadcast %1 : vector<1x256xf32> to vector<2x256xf32>
    %445 = arith.mulf %443, %444 : vector<2x256xf32>
    %446 = arith.index_cast %440 : i32 to index
    %c0_126 = arith.constant 0 : index
    %c0_127 = arith.constant 0 : index
    %447 = vector.load %arg1[%446, %c0_126, %c0_127] : memref<8x2x256xf32, #tpu.memory_space<vmem>>, vector<1x2x256xf32>
    %448 = vector.shape_cast %447 : vector<1x2x256xf32> to vector<2x256xf32>
    %449 = vector.broadcast %3 : vector<1x256xf32> to vector<2x256xf32>
    %450 = arith.mulf %448, %449 : vector<2x256xf32>
    %451 = arith.addf %445, %450 : vector<2x256xf32>
    %cst_128 = arith.constant dense<0.000000e+00> : vector<2x256xf32>
    %452 = tpu.matmul %424, %0, %cst_128 {dimension_numbers = #tpu.dot_dimension_numbers<[1], [0], [0], [1], [0, 0, 1, 1], [], []>} : vector<2x64xf32>, vector<64x256xf32>, vector<2x256xf32> -> vector<2x256xf32>
    %453 = arith.addf %451, %452 : vector<2x256xf32>
    %454 = vector.extract_strided_slice %453 {offsets = [0, 0], sizes = [2, 64], strides = [1, 1]} : vector<2x256xf32> to vector<2x64xf32>
    %455 = arith.negf %454 : vector<2x64xf32>
    %456 = math.exp %455 : vector<2x64xf32>
    %cst_129 = arith.constant 1.000000e+00 : f32
    %457 = vector.broadcast %cst_129 : f32 to vector<2x64xf32>
    %458 = arith.addf %457, %456 : vector<2x64xf32>
    %459 = arith.divf %457, %458 : vector<2x64xf32>
    %460 = vector.extract_strided_slice %453 {offsets = [0, 64], sizes = [2, 64], strides = [1, 1]} : vector<2x256xf32> to vector<2x64xf32>
    %461 = arith.negf %460 : vector<2x64xf32>
    %462 = math.exp %461 : vector<2x64xf32>
    %cst_130 = arith.constant 1.000000e+00 : f32
    %463 = vector.broadcast %cst_130 : f32 to vector<2x64xf32>
    %464 = arith.addf %463, %462 : vector<2x64xf32>
    %465 = arith.divf %463, %464 : vector<2x64xf32>
    %466 = vector.extract_strided_slice %453 {offsets = [0, 128], sizes = [2, 64], strides = [1, 1]} : vector<2x256xf32> to vector<2x64xf32>
    %467 = math.tanh %466 : vector<2x64xf32>
    %468 = vector.extract_strided_slice %453 {offsets = [0, 192], sizes = [2, 64], strides = [1, 1]} : vector<2x256xf32> to vector<2x64xf32>
    %469 = arith.negf %468 : vector<2x64xf32>
    %470 = math.exp %469 : vector<2x64xf32>
    %cst_131 = arith.constant 1.000000e+00 : f32
    %471 = vector.broadcast %cst_131 : f32 to vector<2x64xf32>
    %472 = arith.addf %471, %470 : vector<2x64xf32>
    %473 = arith.divf %471, %472 : vector<2x64xf32>
    %474 = arith.mulf %465, %429 : vector<2x64xf32>
    %475 = arith.mulf %459, %467 : vector<2x64xf32>
    %476 = arith.addf %474, %475 : vector<2x64xf32>
    %477 = math.tanh %476 : vector<2x64xf32>
    %478 = arith.mulf %473, %477 : vector<2x64xf32>
    %479 = arith.index_cast %c7_i32_122 : i32 to index
    %c0_132 = arith.constant 0 : index
    %c0_133 = arith.constant 0 : index
    %480 = vector.load %arg2[%479, %c0_132, %c0_133] : memref<8x2x64xf32, #tpu.memory_space<vmem>>, vector<1x2x64xf32>
    %481 = vector.shape_cast %480 : vector<1x2x64xf32> to vector<2x64xf32>
    %482 = arith.mulf %481, %478 : vector<2x64xf32>
    %cst_134 = arith.constant 1.000000e+00 : f32
    %483 = vector.broadcast %cst_134 : f32 to vector<2x64xf32>
    %484 = arith.subf %483, %481 : vector<2x64xf32>
    %485 = arith.mulf %484, %424 : vector<2x64xf32>
    %486 = arith.addf %482, %485 : vector<2x64xf32>
    %487 = arith.mulf %481, %476 : vector<2x64xf32>
    %cst_135 = arith.constant 1.000000e+00 : f32
    %488 = vector.broadcast %cst_135 : f32 to vector<2x64xf32>
    %489 = arith.subf %488, %481 : vector<2x64xf32>
    %490 = arith.mulf %489, %429 : vector<2x64xf32>
    %491 = arith.addf %487, %490 : vector<2x64xf32>
    %492 = vector.extract_strided_slice %482 {offsets = [0, 0], sizes = [2, 32], strides = [1, 1]} : vector<2x64xf32> to vector<2x32xf32>
    %493 = arith.index_cast %c7_i32_122 : i32 to index
    %c0_136 = arith.constant 0 : index
    %c0_137 = arith.constant 0 : index
    %494 = vector.load %arg5[%493, %c0_136, %c0_137] : memref<8x2x64xf32, #tpu.memory_space<vmem>>, vector<1x2x32xf32>
    %495 = vector.shape_cast %494 : vector<1x2x32xf32> to vector<2x32xf32>
    %496 = vector.shape_cast %492 : vector<2x32xf32> to vector<1x2x32xf32>
    tpu.vector_store %arg5[%493, %c0_136, %c0_137], %496 {strides = array<i32>} : memref<8x2x64xf32, #tpu.memory_space<vmem>>, vector<1x2x32xf32>,
    %497 = vector.extract_strided_slice %482 {offsets = [0, 32], sizes = [2, 32], strides = [1, 1]} : vector<2x64xf32> to vector<2x32xf32>
    %498 = arith.index_cast %440 : i32 to index
    %c0_138 = arith.constant 0 : index
    %c32_139 = arith.constant 32 : index
    %499 = vector.load %arg5[%498, %c0_138, %c32_139] : memref<8x2x64xf32, #tpu.memory_space<vmem>>, vector<1x2x32xf32>
    %500 = vector.shape_cast %499 : vector<1x2x32xf32> to vector<2x32xf32>
    %501 = vector.shape_cast %497 : vector<2x32xf32> to vector<1x2x32xf32>
    tpu.vector_store %arg5[%498, %c0_138, %c32_139], %501 {strides = array<i32>} : memref<8x2x64xf32, #tpu.memory_space<vmem>>, vector<1x2x32xf32>,
    %c8_i32 = arith.constant 8 : i32
    return
  }
  func.func @transform_0(%arg0: i32) -> (i32, i32, i32) {
    %c0_i32 = arith.constant 0 : i32
    %c0_i32_0 = arith.constant 0 : i32
    %c0_i32_1 = arith.constant 0 : i32
    return %c0_i32, %arg0, %c0_i32_0 : i32, i32, i32
  }
  func.func @transform_1(%arg0: i32) -> (i32, i32, i32) {
    %c0_i32 = arith.constant 0 : i32
    %c0_i32_0 = arith.constant 0 : i32
    %c0_i32_1 = arith.constant 0 : i32
    return %c0_i32, %arg0, %c0_i32_0 : i32, i32, i32
  }
  func.func @transform_2(%arg0: i32) -> (i32, i32) {
    %c0_i32 = arith.constant 0 : i32
    %c0_i32_0 = arith.constant 0 : i32
    %c0_i32_1 = arith.constant 0 : i32
    return %c0_i32, %c0_i32_0 : i32, i32
  }
  func.func @transform_3(%arg0: i32) -> (i32, i32) {
    %c0_i32 = arith.constant 0 : i32
    %c0_i32_0 = arith.constant 0 : i32
    %c0_i32_1 = arith.constant 0 : i32
    return %c0_i32, %c0_i32_0 : i32, i32
  }
  func.func @transform_4(%arg0: i32) -> (i32, i32, i32) {
    %c0_i32 = arith.constant 0 : i32
    %c0_i32_0 = arith.constant 0 : i32
    %c0_i32_1 = arith.constant 0 : i32
    return %c0_i32, %arg0, %c0_i32_0 : i32, i32, i32
  }
}

module attributes {stable_mosaic.version = 11 : i64} {
  func.func @_enh_proj_kernel(%arg0: i32, %arg1: memref<16x64xf32, #tpu.memory_space<vmem>>, %arg2: memref<16x64xf32, #tpu.memory_space<vmem>>, %arg3: memref<64x32xf32, #tpu.memory_space<vmem>>, %arg4: memref<64x32xf32, #tpu.memory_space<vmem>>, %arg5: memref<64x32xf32, #tpu.memory_space<vmem>>, %arg6: memref<64x32xf32, #tpu.memory_space<vmem>>, %arg7: memref<1x32xf32, #tpu.memory_space<vmem>>, %arg8: memref<16x32xf32, #tpu.memory_space<vmem>>) attributes {dimension_semantics = [#tpu.dimension_semantics<parallel>], iteration_bounds = array<i64: 1>, scalar_prefetch = 0 : i64, scratch_operands = 0 : i64, tpu.core_type = #tpu.core_type<tc>, window_params = [{transform_indices = @transform_0, window_bounds = array<i64: 16, 64>}, {transform_indices = @transform_1, window_bounds = array<i64: 16, 64>}, {pipeline_mode = #tpu.pipeline_mode<synchronous>, transform_indices = @transform_2, window_bounds = array<i64: 64, 32>}, {pipeline_mode = #tpu.pipeline_mode<synchronous>, transform_indices = @transform_3, window_bounds = array<i64: 64, 32>}, {pipeline_mode = #tpu.pipeline_mode<synchronous>, transform_indices = @transform_4, window_bounds = array<i64: 64, 32>}, {pipeline_mode = #tpu.pipeline_mode<synchronous>, transform_indices = @transform_5, window_bounds = array<i64: 64, 32>}, {pipeline_mode = #tpu.pipeline_mode<synchronous>, transform_indices = @transform_6, window_bounds = array<i64: 1, 32>}, {transform_indices = @transform_7, window_bounds = array<i64: 16, 32>}]} {
    %c0 = arith.constant 0 : index
    %c0_0 = arith.constant 0 : index
    %0 = vector.load %arg1[%c0, %c0_0] : memref<16x64xf32, #tpu.memory_space<vmem>>, vector<16x64xf32>
    %c0_1 = arith.constant 0 : index
    %c0_2 = arith.constant 0 : index
    %1 = vector.load %arg2[%c0_1, %c0_2] : memref<16x64xf32, #tpu.memory_space<vmem>>, vector<16x64xf32>
    %c0_3 = arith.constant 0 : index
    %c0_4 = arith.constant 0 : index
    %2 = vector.load %arg3[%c0_3, %c0_4] : memref<64x32xf32, #tpu.memory_space<vmem>>, vector<64x32xf32>
    %cst = arith.constant dense<0.000000e+00> : vector<16x32xf32>
    %3 = tpu.matmul %0, %2, %cst {dimension_numbers = #tpu.dot_dimension_numbers<[1], [0], [0], [1], [0, 0, 1, 1], [], []>} : vector<16x64xf32>, vector<64x32xf32>, vector<16x32xf32> -> vector<16x32xf32>
    %c0_5 = arith.constant 0 : index
    %c0_6 = arith.constant 0 : index
    %4 = vector.load %arg4[%c0_5, %c0_6] : memref<64x32xf32, #tpu.memory_space<vmem>>, vector<64x32xf32>
    %cst_7 = arith.constant dense<0.000000e+00> : vector<16x32xf32>
    %5 = tpu.matmul %1, %4, %cst_7 {dimension_numbers = #tpu.dot_dimension_numbers<[1], [0], [0], [1], [0, 0, 1, 1], [], []>} : vector<16x64xf32>, vector<64x32xf32>, vector<16x32xf32> -> vector<16x32xf32>
    %6 = arith.addf %3, %5 : vector<16x32xf32>
    %7 = arith.subf %0, %1 : vector<16x64xf32>
    %c0_8 = arith.constant 0 : index
    %c0_9 = arith.constant 0 : index
    %8 = vector.load %arg5[%c0_8, %c0_9] : memref<64x32xf32, #tpu.memory_space<vmem>>, vector<64x32xf32>
    %cst_10 = arith.constant dense<0.000000e+00> : vector<16x32xf32>
    %9 = tpu.matmul %7, %8, %cst_10 {dimension_numbers = #tpu.dot_dimension_numbers<[1], [0], [0], [1], [0, 0, 1, 1], [], []>} : vector<16x64xf32>, vector<64x32xf32>, vector<16x32xf32> -> vector<16x32xf32>
    %10 = arith.addf %6, %9 : vector<16x32xf32>
    %11 = arith.mulf %0, %1 : vector<16x64xf32>
    %c0_11 = arith.constant 0 : index
    %c0_12 = arith.constant 0 : index
    %12 = vector.load %arg6[%c0_11, %c0_12] : memref<64x32xf32, #tpu.memory_space<vmem>>, vector<64x32xf32>
    %cst_13 = arith.constant dense<0.000000e+00> : vector<16x32xf32>
    %13 = tpu.matmul %11, %12, %cst_13 {dimension_numbers = #tpu.dot_dimension_numbers<[1], [0], [0], [1], [0, 0, 1, 1], [], []>} : vector<16x64xf32>, vector<64x32xf32>, vector<16x32xf32> -> vector<16x32xf32>
    %14 = arith.addf %10, %13 : vector<16x32xf32>
    %c0_14 = arith.constant 0 : index
    %c0_15 = arith.constant 0 : index
    %15 = vector.load %arg7[%c0_14, %c0_15] : memref<1x32xf32, #tpu.memory_space<vmem>>, vector<1x32xf32>
    %16 = vector.broadcast %15 : vector<1x32xf32> to vector<16x32xf32>
    %17 = arith.addf %14, %16 : vector<16x32xf32>
    %cst_16 = arith.constant 0.000000e+00 : f32
    %18 = vector.broadcast %cst_16 : f32 to vector<16x32xf32>
    %19 = arith.maximumf %17, %18 : vector<16x32xf32>
    %c0_17 = arith.constant 0 : index
    %c0_18 = arith.constant 0 : index
    %20 = vector.load %arg8[%c0_17, %c0_18] : memref<16x32xf32, #tpu.memory_space<vmem>>, vector<16x32xf32>
    tpu.vector_store %arg8[%c0_17, %c0_18], %19 {strides = array<i32>} : memref<16x32xf32, #tpu.memory_space<vmem>>, vector<16x32xf32>,
    return
  }
  func.func @transform_0(%arg0: i32) -> (i32, i32) {
    %c0_i32 = arith.constant 0 : i32
    %c0_i32_0 = arith.constant 0 : i32
    return %arg0, %c0_i32 : i32, i32
  }
  func.func @transform_1(%arg0: i32) -> (i32, i32) {
    %c0_i32 = arith.constant 0 : i32
    %c0_i32_0 = arith.constant 0 : i32
    return %arg0, %c0_i32 : i32, i32
  }
  func.func @transform_2(%arg0: i32) -> (i32, i32) {
    %c0_i32 = arith.constant 0 : i32
    %c0_i32_0 = arith.constant 0 : i32
    %c0_i32_1 = arith.constant 0 : i32
    return %c0_i32, %c0_i32_0 : i32, i32
  }
  func.func @transform_3(%arg0: i32) -> (i32, i32) {
    %c0_i32 = arith.constant 0 : i32
    %c0_i32_0 = arith.constant 0 : i32
    %c0_i32_1 = arith.constant 0 : i32
    return %c0_i32, %c0_i32_0 : i32, i32
  }
  func.func @transform_4(%arg0: i32) -> (i32, i32) {
    %c0_i32 = arith.constant 0 : i32
    %c0_i32_0 = arith.constant 0 : i32
    %c0_i32_1 = arith.constant 0 : i32
    return %c0_i32, %c0_i32_0 : i32, i32
  }
  func.func @transform_5(%arg0: i32) -> (i32, i32) {
    %c0_i32 = arith.constant 0 : i32
    %c0_i32_0 = arith.constant 0 : i32
    %c0_i32_1 = arith.constant 0 : i32
    return %c0_i32, %c0_i32_0 : i32, i32
  }
  func.func @transform_6(%arg0: i32) -> (i32, i32) {
    %c0_i32 = arith.constant 0 : i32
    %c0_i32_0 = arith.constant 0 : i32
    %c0_i32_1 = arith.constant 0 : i32
    return %c0_i32, %c0_i32_0 : i32, i32
  }
  func.func @transform_7(%arg0: i32) -> (i32, i32) {
    %c0_i32 = arith.constant 0 : i32
    %c0_i32_0 = arith.constant 0 : i32
    return %arg0, %c0_i32 : i32, i32
  }
}

</mosaic_0001>

<bundles_post_ra>
// kernel: esim_forward.17
= control target key start
LH: loop header
LB: loop body
LE: loop exit
PB: predicated region body
PF: predicated region fallthrough
CT: control target
= control target key end

     0   :  { %vm46_vm0 = vcmask 523264   ;;  %vm195_vm1 = vcmask 261120   ;;  %s376_s4 = inlined_call_operand.vmem [shape: f32[64,32], index: 4, kind: input, shape index: {}]   ;;  %s377_s5 = inlined_call_operand.vmem [shape: f32[64,32], index: 5, kind: input, shape index: {}]   ;;  %s378_s3 = inlined_call_operand.vmem [shape: f32[64,32], index: 3, kind: input, shape index: {}]   ;;  %s379_s2 = inlined_call_operand.vmem [shape: f32[64,32], index: 2, kind: input, shape index: {}]   ;;  %s380_s0 = inlined_call_operand.vmem [shape: f32[16,64], index: 0, kind: input, shape index: {}]   ;;  %s381_s1 = inlined_call_operand.vmem [shape: f32[16,64], index: 1, kind: input, shape index: {}]   ;;  %s382_s6 = inlined_call_operand.vmem [shape: f32[1,32], index: 6, kind: input, shape index: {}]   ;;  %s383_s7 = inlined_call_operand.vmem [shape: f32[16,32], index: 7, kind: output, shape index: {}]  }
   0x1   :  { %v114_v0 = vld [vmem:[%s376_s4 + $0x38] sm:$0xff]  ;;  %v113_v1 = vld [vmem:[%s376_s4 + $0x30] sm:$0xff]  ;;  %v112_v5 = vld [vmem:[%s376_s4 + $0x28] sm:$0xff] }
   0x2   :  { %v155_v2 = vld [vmem:[%s377_s5 + $0x38] sm:$0xff]  ;;  %129 = vmatpush.msra.mxu2 %v114_v0  ;;  %v154_v6 = vld [vmem:[%s377_s5 + $0x30] sm:$0xff]  ;;  %v153_v9 = vld [vmem:[%s377_s5 + $0x28] sm:$0xff] }
   0x3   :  { %170 = vmatpush.msra.mxu3 %v155_v2  ;;  %v45_v3 = vld [vmem:[%s378_s3 + $0x38] sm:$0xff]  ;;  %v44_v7 = vld [vmem:[%s378_s3 + $0x30] sm:$0xff]  ;;  %v43_v10 = vld [vmem:[%s378_s3 + $0x28] sm:$0xff] }
   0x4   :  { %v37_v4 = vld [vmem:[%s379_s2 + $0x38] sm:$0xff]  ;;  %61 = vmatpush.msra.mxu0 %v45_v3  ;;  %v36_v8 = vld [vmem:[%s379_s2 + $0x30] sm:$0xff]  ;;  %130 = vmatpush.msra.mxu2 %v113_v1  ;;  %v111_v11 = vld [vmem:[%s376_s4 + $0x20] sm:$0xff] }
   0x5   :  { %90 = vmatpush.msra.mxu1 %v37_v4  ;;  %171 = vmatpush.msra.mxu3 %v154_v6  ;;  %v35_v12 = vld [vmem:[%s379_s2 + $0x28] sm:$0xff]  ;;  %v152_v13 = vld [vmem:[%s377_s5 + $0x20] sm:$0xff]  ;;  %v110_v16 = vld [vmem:[%s376_s4 + $0x18] sm:$0xff] }
   0x6   :  { %62 = vmatpush.msra.mxu0 %v44_v7  ;;  %131 = vmatpush.msra.mxu2 %v112_v5  ;;  %v42_v14 = vld [vmem:[%s378_s3 + $0x20] sm:$0xff]  ;;  %v151_v17 = vld [vmem:[%s377_s5 + $0x18] sm:$0xff]  ;;  %v109_v20 = vld [vmem:[%s376_s4 + $0x10] sm:$0xff] }
   0x7   :  { %91 = vmatpush.msra.mxu1 %v36_v8  ;;  %172 = vmatpush.msra.mxu3 %v153_v9  ;;  %v34_v15 = vld [vmem:[%s379_s2 + $0x20] sm:$0xff]  ;;  %v41_v18 = vld [vmem:[%s378_s3 + $0x18] sm:$0xff]  ;;  %v150_v21 = vld [vmem:[%s377_s5 + $0x10] sm:$0xff] }
   0x8   :  { %63 = vmatpush.msra.mxu0 %v43_v10  ;;  %132 = vmatpush.msra.mxu2 %v111_v11  ;;  %v33_v19 = vld [vmem:[%s379_s2 + $0x18] sm:$0xff]  ;;  %v40_v22 = vld [vmem:[%s378_s3 + $0x10] sm:$0xff]  ;;  %v26_v24 = vld [vmem:[%s380_s0] sm:$0xff] }
   0x9   :  { %92 = vmatpush.msra.mxu1 %v35_v12  ;;  %173 = vmatpush.msra.mxu3 %v152_v13  ;;  %v32_v23 = vld [vmem:[%s379_s2 + $0x10] sm:$0xff]  ;;  %v28_v25 = vld [vmem:[%s381_s1] sm:$0xff]  ;;  %v108_v26 = vld [vmem:[%s376_s4 + $0x8] sm:$0xff] }
   0xa   :  { %64 = vmatpush.msra.mxu0 %v42_v14  ;;  %133 = vmatpush.msra.mxu2 %v110_v16  ;;  %v149_v27 = vld [vmem:[%s377_s5 + $0x8] sm:$0xff]  ;;  %v107_v30 = vld [vmem:[%s376_s4] sm:$0xff]  ;;  %v105_v31 = vsub.f32 %v26_v24, %v28_v25  ;;  %v146_v33 = vmul.f32 %v28_v25, %v26_v24 }
   0xb   :  { %93 = vmatpush.msra.mxu1 %v34_v15  ;;  %174 = vmatpush.msra.mxu3 %v151_v17  ;;  %v39_v28 = vld [vmem:[%s378_s3 + $0x8] sm:$0xff]  ;;  %v148_v32 = vld [vmem:[%s377_s5] sm:$0xff] }
   0xc   :  { %65 = vmatpush.msra.mxu0 %v41_v18  ;;  %134 = vmatpush.msra.mxu2 %v109_v20  ;;  %v31_v29 = vld [vmem:[%s379_s2 + $0x8] sm:$0xff]  ;;  %v38_v34 = vld [vmem:[%s378_s3] sm:$0xff] }
   0xd   :  { %94 = vmatpush.msra.mxu1 %v33_v19  ;;  %175 = vmatpush.msra.mxu3 %v150_v21  ;;  %v30_v35 = vld [vmem:[%s379_s2] sm:$0xff]  ;;  %v27_v36 = vld [vmem:[%s380_s0 + $0x8] sm:$0xff] }
   0xe   :  { %66 = vmatpush.msra.mxu0 %v40_v22  ;;  %135 = vmatpush.msra.mxu2 %v108_v26  ;;  %v29_v37 = vld [vmem:[%s381_s1 + $0x8] sm:$0xff]  ;;  %v210_v46 = vld [vmem:[%s382_s6] ss:$0 sm:$0xff] }
   0xf   :  { %95 = vmatpush.msra.mxu1 %v32_v23  ;;  %176 = vmatpush.msra.mxu3 %v149_v27  ;;  %v106_v38 = vsub.f32 %v27_v36, %v29_v37  ;;  %v147_v39 = vmul.f32 %v29_v37, %v27_v36 }
  0x10   :  { %67 = vmatpush.msra.mxu0 %v39_v28  ;;  %136 = vmatpush.msra.mxu2 %v107_v30 }
  0x11   :  { %96 = vmatpush.msra.mxu1 %v31_v29  ;;  %177 = vmatpush.msra.mxu3 %v148_v32 }
  0x12   :  { %206 = vmatmul.msk.f32.vlgmr.msra.gmra.mxu2 %vm46_vm0, %v105_v31  ;;  %208 = vmatmul.msk.f32.vlgmr.msra.gmra.mxu3 %vm46_vm0, %v146_v33 }
  0x13   :  { %68 = vmatpush.msra.mxu0 %v38_v34  ;;  %97 = vmatpush.msra.mxu1 %v30_v35 }
  0x14   :  { %202 = vmatmul.msk.f32.vlgmr.msra.gmra.mxu0 %vm46_vm0, %v28_v25  ;;  %204 = vmatmul.msk.f32.vlgmr.msra.gmra.mxu1 %vm46_vm0, %v26_v24 }
  0x1a   :  { %207 = vmatmul.msk.f32.gmra.mxu2 %vm46_vm0, %v106_v38  ;;  %209 = vmatmul.msk.f32.gmra.mxu3 %vm46_vm0, %v147_v39 }
  0x1c   :  { %203 = vmatmul.msk.f32.gmra.mxu0 %vm46_vm0, %v29_v37  ;;  %205 = vmatmul.msk.f32.gmra.mxu1 %vm46_vm0, %v27_v36 }
  0x91   :  { %v70_v40 = vpop.f32.mrf.mxu0  ;;  %v99_v41 = vpop.f32.mrf.mxu1 }
  0x92   :  { %v100_v42 = vadd.f32 %v99_v41, %v70_v40 }
  0x95   :  { %v138_v43 = vpop.f32.mrf.mxu2  ;;  %v179_v44 = vpop.f32.mrf.mxu3 }
  0x96   :  { %v144_v45 = vadd.f32 %v138_v43, %v100_v42 }
  0x98   :  { %v185_v47 = vadd.f32 %v179_v44, %v144_v45 }
  0x99   :  { %v73_v48 = vpop.f32.mrf.mxu0  ;;  %v102_v49 = vpop.f32.mrf.mxu1 }
  0x9a   :  { %v191_v50 = vadd.f32 %v210_v46, %v185_v47  ;;  %v103_v51 = vadd.f32 %v102_v49, %v73_v48 }
  0x9c   :  { %v193_v52 = vmax.f32 %v191_v50, 0.0 }
  0x9d   :  { %v141_v53 = vpop.f32.mrf.mxu2  ;;  %v182_v54 = vpop.f32.mrf.mxu3 }
  0x9e   :  { %196 = vst.msk [vmem:[%s383_s7] sm:$0xff] %vm195_vm1, %v193_v52  ;;  %v145_v55 = vadd.f32 %v141_v53, %v103_v51 }
  0xa0   :  { %v186_v56 = vadd.f32 %v182_v54, %v145_v55 }
  0xa2   :  { %v192_v57 = vadd.f32 %v210_v46, %v186_v56 }
  0xa4   :  { %v194_v58 = vmax.f32 %v192_v57, 0.0 }
  0xa6   :  { %197 = vst.msk [vmem:[%s383_s7 + $0x8] sm:$0xff] %vm195_vm1, %v194_v58 }

// kernel: esim_forward.13
= control target key start
LH: loop header
LB: loop body
LE: loop exit
PB: predicated region body
PF: predicated region fallthrough
CT: control target
= control target key end

     0   :  { %vm30_vm0 = vcmask 261120   ;;  %s168_s1 = inlined_call_operand.vmem [shape: f32[32,256], index: 1, kind: input, shape index: {}]   ;;  %s169_s0 = inlined_call_operand.vmem [shape: f32[16,32], index: 0, kind: input, shape index: {}]   ;;  %s170_s2 = inlined_call_operand.vmem [shape: f32[1,256], index: 2, kind: input, shape index: {}]   ;;  %s171_s3 = inlined_call_operand.vmem [shape: f32[16,256], index: 3, kind: output, shape index: {}]  }
   0x1   :  { %v22_v0 = vld [vmem:[%s168_s1 + $0x30] sm:$0xff]  ;;  %v23_v1 = vld [vmem:[%s168_s1 + $0x38] sm:$0xff]  ;;  %v20_v2 = vld [vmem:[%s168_s1 + $0x20] sm:$0xff] }
   0x2   :  { %95 = vmatpush.msra.mxu2 %v22_v0  ;;  %99 = vmatpush.msra.mxu3 %v23_v1  ;;  %v21_v3 = vld [vmem:[%s168_s1 + $0x28] sm:$0xff]  ;;  %v18_v4 = vld [vmem:[%s168_s1 + $0x10] sm:$0xff]  ;;  %v19_v5 = vld [vmem:[%s168_s1 + $0x18] sm:$0xff] }
   0x3   :  { %49 = vmatpush.msra.mxu0 %v22_v0  ;;  %72 = vmatpush.msra.mxu1 %v23_v1  ;;  %v16_v6 = vld [vmem:[%s168_s1] sm:$0xff]  ;;  %v17_v7 = vld [vmem:[%s168_s1 + $0x8] sm:$0xff] }
   0x4   :  { %96 = vmatpush.msra.mxu2 %v20_v2  ;;  %100 = vmatpush.msra.mxu3 %v21_v3  ;;  %v15_v8 = vld [vmem:[%s169_s0 + $0x8] sm:$0xff]  ;;  %v14_v9 = vld [vmem:[%s169_s0] sm:$0xff] }
   0x5   :  { %50 = vmatpush.msra.mxu0 %v20_v2  ;;  %73 = vmatpush.msra.mxu1 %v21_v3  ;;  %v24_v10 = vld [vmem:[%s170_s2] sm:$0x3] }
   0x6   :  { %97 = vmatpush.msra.mxu2 %v18_v4  ;;  %101 = vmatpush.msra.mxu3 %v19_v5  ;;  %v26_v11 = vperm.slane %v24_v10, 0  ;;  %v27_v12 = vperm.slane %v24_v10, 1 }
   0x7   :  { %51 = vmatpush.msra.mxu0 %v18_v4  ;;  %74 = vmatpush.msra.mxu1 %v19_v5 }
   0x8   :  { %98 = vmatpush.msra.mxu2 %v16_v6  ;;  %102 = vmatpush.msra.mxu3 %v17_v7 }
   0x9   :  { %92 = vmatmul.msk.f32.vlgmr.msra.gmra.mxu2 %vm30_vm0, %v15_v8  ;;  %94 = vmatmul.msk.f32.vlgmr.msra.gmra.mxu3 %vm30_vm0, %v15_v8 }
   0xa   :  { %52 = vmatpush.msra.mxu0 %v16_v6  ;;  %75 = vmatpush.msra.mxu1 %v17_v7 }
   0xb   :  { %91 = vmatmul.msk.f32.vlgmr.msra.gmra.mxu0 %vm30_vm0, %v14_v9  ;;  %93 = vmatmul.msk.f32.vlgmr.msra.gmra.mxu1 %vm30_vm0, %v14_v9 }
  0x88   :  { %v54_v13 = vpop.f32.mrf.mxu0  ;;  %v77_v14 = vpop.f32.mrf.mxu1 }
  0x89   :  { %v55_v15 = vadd.f32 %v54_v13, %v26_v11  ;;  %v78_v16 = vadd.f32 %v77_v14, %v27_v12 }
  0x8b   :  { %83 = vst [vmem:[%s171_s3] sm:$0xff] %v55_v15 }
  0x8c   :  { %v57_v17 = vpop.f32.mrf.mxu2  ;;  %84 = vst [vmem:[%s171_s3 + $0x8] sm:$0xff] %v78_v16  ;;  %v80_v18 = vpop.f32.mrf.mxu3 }
  0x8d   :  { %v58_v19 = vadd.f32 %v57_v17, %v26_v11  ;;  %v81_v20 = vadd.f32 %v80_v18, %v27_v12 }
  0x8f   :  { %85 = vst [vmem:[%s171_s3 + $0x10] sm:$0xff] %v58_v19 }
  0x90   :  { %86 = vst [vmem:[%s171_s3 + $0x18] sm:$0xff] %v81_v20 }

// kernel: esim_forward.15
= control target key start
LH: loop header
LB: loop body
LE: loop exit
PB: predicated region body
PF: predicated region fallthrough
CT: control target
= control target key end

     0   :  { %s753_s24 = smov 0   ;;  %s810_s0 = inlined_call_operand.vmem [shape: f32[2,8,64], index: 0, kind: input, shape index: {}]   ;;  %s811_s1 = inlined_call_operand.vmem [shape: f32[2,8,64], index: 1, kind: input, shape index: {}]   ;;  %s812_s2 = inlined_call_operand.vmem [shape: f32[2,1,8], index: 2, kind: input, shape index: {}]   ;;  %s813_s3 = inlined_call_operand.vmem [shape: f32[2,1,8], index: 3, kind: input, shape index: {}]   ;;  %s814_s4 = inlined_call_operand.vmem [shape: f32[2,8,1], index: 4, kind: input, shape index: {}]   ;;  %s815_s5 = inlined_call_operand.vmem [shape: f32[2,8,1], index: 5, kind: input, shape index: {}]   ;;  %s816_s6 = inlined_call_operand.vmem [shape: f32[2,8,64], index: 6, kind: output, shape index: {0}]   ;;  %s817_s7 = inlined_call_operand.vmem [shape: f32[2,8,64], index: 7, kind: output, shape index: {1}]  }
   0x1 LB: > { %s660_s25 = sadd.s32 4294967295, %s710_s24   ;;  %p664_p0 = scmp.ge.s32.totalorder %s710_s24, 1  ;;  %s710_s24 = sphi %s753_s24, %s18_s24  }
   0x2   : > { %p282_p1 = scmp.lt.s32.totalorder %s710_s24, 3 }
   0x4   : > { %p283_p2 = pnand %p664_p0, %p282_p1 }
   0x5   : > { %p334_p3 = scmp.lt.s32.totalorder (!%p283_p2), %s660_s25, 1 }
   0x6   : > { %286 = sbr.rel (%p283_p2) target bundleno = 673 (0x2a1), region = 44 }
   0xb   : > { %s819_s25 = smov (!%p334_p3, %s660_s25), 1  ;;  %vm370_vm0 = vcmask 523264   ;;  %vm421_vm1 = vcmask 64512   ;;  %v712_v32 = vmov 0  }
   0xc   : > { %s761_s26 = sshll.u32 %s819_s25, 3  ;;  %s347_s29 = scalar_lea.vmem %s813_s3, %s819_s25  ;;  %688 = vset.pattern.permute.xlu0 %v712_v32  ;;  %689 = vset.pattern.permute.xlu1 %v712_v32 }
   0xd   : > { %s341_s9 = scalar_lea.vmem %s811_s1, %s761_s26  ;;  %s337_s12 = scalar_lea.vmem %s810_s0, %s761_s26  ;;  %v690_v2 = vld [vmem:[%s347_s29] ss:$0 sm:$0xff] }
   0xe   : > { %v365_v0 = vld [vmem:[%s341_s9] sm:$0xff]  ;;  %s344_s15 = scalar_lea.vmem %s812_s2, %s819_s25  ;;  %s351_s18 = scalar_lea.vmem %s814_s4, %s761_s26 }
   0xf   : > { %v364_v1 = vld [vmem:[%s337_s12] sm:$0xff]  ;;  %671 = vmatpush.xpose.msk.msra.mxu0 %vm370_vm0, %v365_v0  ;;  %480 = vmatpush.msra.mxu2 %v365_v0  ;;  %s355_s21 = scalar_lea.vmem %s815_s5, %s761_s26  ;;  %s359_s25 = scalar_lea.vmem %s816_s6, %s761_s26 }
  0x10   : > { %673 = vmatpush.xpose.msk.msra.mxu1 %vm370_vm0, %v364_v1  ;;  %509 = vmatpush.msra.mxu3 %v364_v1  ;;  %v691_v5 = vld [vmem:[%s344_s15] ss:$0 sm:$0xff]  ;;  %s363_s29 = scalar_lea.vmem %s817_s7, %s761_s26 }
  0x11   : > { %v368_v30 = vld [vmem:[%s351_s18] sm:$0xff] }
  0x12   : > { %672 = vmatmul.msk.f32.vlgmr.msra.gmra.mxu0 %vm370_vm0, %v364_v1  ;;  %v369_v31 = vld [vmem:[%s355_s21] sm:$0xff] }
  0x13   : > { %674 = vmatmul.msk.f32.vlgmr.msra.gmra.mxu1 %vm370_vm0, %v365_v0 }
  0x8f   : > { %v394_v3 = vpop.f32.mrf.mxu0 }
  0x90   : > { %v420_v4 = vmul.f32 %v690_v2, %v394_v3  ;;  %v414_v6 = vpop.f32.mrf.mxu1 }
  0x91   : > { %v443_v8 = vmul.f32 %v691_v5, %v414_v6 }
  0x92   : > { %v422_v7 = vsel %vm421_vm1, %v420_v4, -inf }
  0x93   : > { %423 = vmax.xlane.f32.xlu0 %v422_v7  ;;  %v444_v9 = vsel %vm421_vm1, %v443_v8, -inf }
  0x9b   : > { %445 = vmax.xlane.f32.xlu0 %v444_v9 }
  0xaf   : > { %487 = vperm.xlu0 %688, %v368_v30  }
 0x106   : > { %v424_v10 = vpop.xlane.xlu0 %423 }
 0x107   : > { %v425_v11 = vsub.f32 %v420_v4, %v424_v10 }
 0x109   : > { %v426_v12 = vmul.f32 1.442695, %v425_v11 }
 0x10b   : > { %692 = vpow2.f32 %v426_v12 }
 0x10e   : > { %v446_v13 = vpop.xlane.xlu0 %445 }
 0x10f   : > { %v447_v14 = vsub.f32 %v443_v8, %v446_v13 }
 0x111   : > { %v693_v15 = vpop.eup %692  ;;  %v448_v16 = vmul.f32 1.442695, %v447_v14 }
 0x112   : > { %v428_v17 = vsel %vm421_vm1, %v693_v15, 0.0 }
 0x113   : > { %694 = vpow2.f32 %v448_v16  ;;  %429 = vadd.xlane.f32.xlu1 %v428_v17 }
 0x119   : > { %v695_v18 = vpop.eup %694 }
 0x11a   : > { %v450_v19 = vsel %vm421_vm1, %v695_v18, 0.0 }
 0x11b   : > { %451 = vadd.xlane.f32.xlu1 %v450_v19 }
 0x121   : > { %v488_v41 = vpop.permute.xlu0 %487 }
 0x134   : > { %516 = vperm.xlu1 %689, %v369_v31  }
 0x186   : > { %v430_v20 = vpop.xlane.xlu1 %429 }
 0x187   : > { %696 = vrcp.f32 %v430_v20 }
 0x18d   : > { %v697_v21 = vpop.eup %696 }
 0x18e   : > { %v452_v22 = vpop.xlane.xlu1 %451  ;;  %v432_v23 = vmul.f32 %v697_v21, %v693_v15 }
 0x18f   : > { %698 = vrcp.f32 %v452_v22 }
 0x190   : > { %v433_v24 = vmul.f32 %v690_v2, %v432_v23 }
 0x192   : > { %v434_v25 = vsel %vm421_vm1, %v433_v24, 0.0 }
 0x193   : > { %435 = vadd.xlane.f32.xlu2 %v434_v25 }
 0x195   : > { %v699_v26 = vpop.eup %698 }
 0x196   : > { %v454_v27 = vmul.f32 %v699_v26, %v695_v18 }
 0x198   : > { %v455_v28 = vmul.f32 %v691_v5, %v454_v27 }
 0x19a   : > { %v456_v29 = vsel %vm421_vm1, %v455_v28, 0.0 }
 0x19b   : > { %457 = vadd.xlane.f32.xlu2 %v456_v29 }
 0x1a6   : > { %v517_v44 = vpop.permute.xlu1 %516 }
 0x206   : > { %v436_v33 = vpop.xlane.xlu2 %435 }
 0x207   : > { %v437_v34 = vadd.f32 1e-13, %v436_v33 }
 0x209   : > { %700 = vrcp.f32 %v437_v34 }
 0x20e   : > { %v458_v35 = vpop.xlane.xlu2 %457 }
 0x20f   : > { %v701_v36 = vpop.eup %700  ;;  %v459_v37 = vadd.f32 1e-13, %v458_v35 }
 0x210   : > { %v439_v38 = vmul.f32 %v701_v36, %v433_v24 }
 0x211   : > { %702 = vrcp.f32 %v459_v37 }
 0x212   : > { %675 = vmatmul.msk.f32.vlgmr.msra.gmra.mxu2 %vm421_vm1, %v439_v38 }
 0x217   : > { %v703_v39 = vpop.eup %702 }
 0x218   : > { %v461_v40 = vmul.f32 %v703_v39, %v455_v28 }
 0x21a   : > { %676 = vmatmul.msk.f32.vlgmr.msra.gmra.mxu3 %vm421_vm1, %v461_v40 }
 0x295   : > { %v482_v42 = vpop.f32.mrf.mxu2 }
 0x296   : > { %v490_v43 = vmul.f32 %v488_v41, %v482_v42 }
 0x298   : > { %520 = vst.msk [vmem:[%s359_s25] sm:$0xff] %vm370_vm0, %v490_v43 }
 0x29d   : > { %v511_v45 = vpop.f32.mrf.mxu3 }
 0x29e   : > { %v519_v46 = vmul.f32 %v517_v44, %v511_v45 }
 0x2a0   : > { %521 = vst.msk [vmem:[%s363_s29] sm:$0xff] %vm370_vm0, %v519_v46 }
 0x2a1 PF: > { %s18_s24 = sadd.s32 1, %s710_s24  }
 0x2a2   : > { %p15_p4 = scmp.ge.s32.totalorder %s18_s24, 4  }
 0x2a4   :  { %17 = sbr.rel (!%p15_p4) target bundleno = 1 (0x1), region = 101 }

// kernel: esim_forward.14
= control target key start
LH: loop header
LB: loop body
LE: loop exit
PB: predicated region body
PF: predicated region fallthrough
CT: control target
= control target key end

     0   :  { %v1286_v16 = vmov 0.0   ;;  %vm40_vm0 = vcmask 1041408   ;;  %vm176_vm9 = vcmask 254976   ;;  %vm179_vm10 = vcmask 517376   ;;  %s1792_s2 = inlined_call_operand.vmem [shape: f32[64,256], index: 2, kind: input, shape index: {}]   ;;  %s1793_s3 = inlined_call_operand.vmem [shape: f32[1,256], index: 3, kind: input, shape index: {}]   ;;  %s1794_s0 = inlined_call_operand.vmem [shape: f32[8,2,256], index: 0, kind: input, shape index: {}]   ;;  %s1795_s1 = inlined_call_operand.vmem [shape: f32[8,2,64], index: 1, kind: input, shape index: {}]   ;;  %s1796_s4 = inlined_call_operand.vmem [shape: f32[8,2,64], index: 4, kind: output, shape index: {}]  }
   0x1   :  { %v1316_v0 = vld [vmem:[%s1792_s2 + $0x78] sm:$0xff]  ;;  %v1321_v1 = vld [vmem:[%s1792_s2 + $0x70] sm:$0xff]  ;;  %v1326_v2 = vld [vmem:[%s1792_s2 + $0x68] sm:$0xff]  ;;  %vm54_vm11 = vcmask 523264  }
   0x2   :  { %86 = vmatpush.msra.mxu1 %v1316_v0  ;;  %66 = vmatpush.msra.mxu0 %v1321_v1  ;;  %v1333_v3 = vld [vmem:[%s1792_s2 + $0x60] sm:$0xff]  ;;  %v1338_v4 = vld [vmem:[%s1792_s2 + $0x58] sm:$0xff]  ;;  %v1343_v5 = vld [vmem:[%s1792_s2 + $0x50] sm:$0xff] }
   0x3   :  { %199 = vmatpush.msra.mxu2 %v1321_v1  ;;  %219 = vmatpush.msra.mxu3 %v1316_v0  ;;  %v1352_v6 = vld [vmem:[%s1792_s2 + $0x48] sm:$0xff]  ;;  %v1357_v7 = vld [vmem:[%s1792_s2 + $0x40] sm:$0xff]  ;;  %v1366_v8 = vld [vmem:[%s1792_s2 + $0x38] sm:$0xff] }
   0x4   :  { %87 = vmatpush.msra.mxu1 %v1326_v2  ;;  %67 = vmatpush.msra.mxu0 %v1333_v3  ;;  %v1371_v9 = vld [vmem:[%s1792_s2 + $0x30] sm:$0xff]  ;;  %v1380_v10 = vld [vmem:[%s1792_s2 + $0x28] sm:$0xff]  ;;  %v1385_v11 = vld [vmem:[%s1792_s2 + $0x20] sm:$0xff] }
   0x5   :  { %200 = vmatpush.msra.mxu2 %v1333_v3  ;;  %220 = vmatpush.msra.mxu3 %v1326_v2  ;;  %v1394_v12 = vld [vmem:[%s1792_s2 + $0x18] sm:$0xff]  ;;  %v1399_v13 = vld [vmem:[%s1792_s2 + $0x10] sm:$0xff]  ;;  %v1408_v14 = vld [vmem:[%s1792_s2 + $0x8] sm:$0xff] }
   0x6   :  { %88 = vmatpush.msra.mxu1 %v1338_v4  ;;  %68 = vmatpush.msra.mxu0 %v1343_v5  ;;  %v1413_v15 = vld [vmem:[%s1792_s2] sm:$0xff]  ;;  %v1123_v27 = vld [vmem:[%s1794_s0 + $0x1c] sm:$0xf] }
   0x7   :  { %201 = vmatpush.msra.mxu2 %v1343_v5  ;;  %221 = vmatpush.msra.mxu3 %v1338_v4  ;;  %v33_v17 = vld [vmem:[%s1793_s3] sm:$0x3]  ;;  %s1287_s3 = smov 64  }
   0x8   :  { %89 = vmatpush.msra.mxu1 %v1352_v6  ;;  %69 = vmatpush.msra.mxu0 %v1357_v7  ;;  %v34_v18 = vsub.f32 1.0, %v33_v17  ;;  %v38_v19 = vperm.slane %v33_v17, 1  ;;  %v37_v21 = vperm.slane %v33_v17, 0  ;;  %v35_v25 = vld [vmem:[%s1794_s0] sm:$0xf] }
   0x9   :  { %202 = vmatpush.msra.mxu2 %v1357_v7  ;;  %222 = vmatpush.msra.mxu3 %v1352_v6 }
   0xa   :  { %90 = vmatpush.msra.mxu1 %v1366_v8  ;;  %70 = vmatpush.msra.mxu0 %v1371_v9  ;;  %v48_v20 = vperm.slane %v34_v18, 1  ;;  %v39_v22 = vrot.slane %v38_v19, 6  ;;  %v47_v23 = vperm.slane %v34_v18, 0 }
   0xb   :  { %203 = vmatpush.msra.mxu2 %v1371_v9  ;;  %223 = vmatpush.msra.mxu3 %v1366_v8 }
   0xc   :  { %91 = vmatpush.msra.mxu1 %v1380_v10  ;;  %71 = vmatpush.msra.mxu0 %v1385_v11  ;;  %v49_v24 = vrot.slane %v48_v20, 6  ;;  %v1480_v26 = vsel %vm40_vm0, %v37_v21, %v39_v22  ;;  %v163_v21 = vld [vmem:[%s1795_s1] sm:$0x3] }
   0xd   :  { %204 = vmatpush.msra.mxu2 %v1385_v11  ;;  %224 = vmatpush.msra.mxu3 %v1380_v10  ;;  %v43_v29 = vmul.f32 %v1480_v26, %v35_v25 }
   0xe   :  { %92 = vmatpush.msra.mxu1 %v1394_v12  ;;  %72 = vmatpush.msra.mxu0 %v1399_v13  ;;  %v1486_v28 = vsel %vm40_vm0, %v47_v23, %v49_v24  ;;  %v165_v24 = vsub.f32 1.0, %v163_v21 }
   0xf   :  { %205 = vmatpush.msra.mxu2 %v1399_v13  ;;  %225 = vmatpush.msra.mxu3 %v1394_v12  ;;  %v52_v30 = vmul.f32 %v1123_v27, %v1486_v28 }
  0x10   :  { %93 = vmatpush.msra.mxu1 %v1408_v14  ;;  %73 = vmatpush.msra.mxu0 %v1413_v15 }
  0x11   :  { %94 = vmatmul.f32.vlgmr.msra.gmra.mxu1 %v1286_v16  ;;  %74 = vmatmul.f32.vlgmr.msra.gmra.mxu0 %v1286_v16  ;;  %v53_v32 = vadd.f32 %v52_v30, %v43_v29 }
  0x12   :  { %206 = vmatpush.msra.mxu2 %v1413_v15  ;;  %226 = vmatpush.msra.mxu3 %v1408_v14 }
  0x13   :  { %337 = vmatpush.msrb.mxu0 %v1321_v1  ;;  %357 = vmatpush.msrb.mxu1 %v1316_v0 }
  0x14   :  { %475 = vmatpush.msrb.mxu2 %v1321_v1  ;;  %495 = vmatpush.msrb.mxu3 %v1316_v0 }
  0x15   :  { %338 = vmatpush.msrb.mxu0 %v1333_v3  ;;  %358 = vmatpush.msrb.mxu1 %v1326_v2 }
  0x16   :  { %476 = vmatpush.msrb.mxu2 %v1333_v3  ;;  %496 = vmatpush.msrb.mxu3 %v1326_v2 }
  0x17   :  { %339 = vmatpush.msrb.mxu0 %v1343_v5  ;;  %359 = vmatpush.msrb.mxu1 %v1338_v4 }
  0x18   :  { %477 = vmatpush.msrb.mxu2 %v1343_v5  ;;  %497 = vmatpush.msrb.mxu3 %v1338_v4 }
  0x19   :  { %340 = vmatpush.msrb.mxu0 %v1357_v7  ;;  %360 = vmatpush.msrb.mxu1 %v1352_v6 }
  0x1a   :  { %478 = vmatpush.msrb.mxu2 %v1357_v7  ;;  %498 = vmatpush.msrb.mxu3 %v1352_v6 }
  0x1b   :  { %341 = vmatpush.msrb.mxu0 %v1371_v9  ;;  %361 = vmatpush.msrb.mxu1 %v1366_v8 }
  0x1c   :  { %479 = vmatpush.msrb.mxu2 %v1371_v9  ;;  %499 = vmatpush.msrb.mxu3 %v1366_v8 }
  0x1d   :  { %342 = vmatpush.msrb.mxu0 %v1385_v11  ;;  %362 = vmatpush.msrb.mxu1 %v1380_v10 }
  0x1e   :  { %480 = vmatpush.msrb.mxu2 %v1385_v11  ;;  %500 = vmatpush.msrb.mxu3 %v1380_v10 }
  0x1f   :  { %343 = vmatpush.msrb.mxu0 %v1399_v13  ;;  %363 = vmatpush.msrb.mxu1 %v1394_v12 }
  0x20   :  { %481 = vmatpush.msrb.mxu2 %v1399_v13  ;;  %501 = vmatpush.msrb.mxu3 %v1394_v12 }
  0x21   :  { %344 = vmatpush.msrb.mxu0 %v1413_v15  ;;  %364 = vmatpush.msrb.mxu1 %v1408_v14 }
  0x22   :  { %482 = vmatpush.msrb.mxu2 %v1413_v15  ;;  %502 = vmatpush.msrb.mxu3 %v1408_v14 }
  0x23   :  { %611 = vmatpush.msra.mxu0 %v1321_v1  ;;  %631 = vmatpush.msra.mxu1 %v1316_v0 }
  0x25   :  { %612 = vmatpush.msra.mxu0 %v1333_v3  ;;  %632 = vmatpush.msra.mxu1 %v1326_v2 }
  0x27   :  { %613 = vmatpush.msra.mxu0 %v1343_v5  ;;  %633 = vmatpush.msra.mxu1 %v1338_v4 }
  0x29   :  { %614 = vmatpush.msra.mxu0 %v1357_v7  ;;  %634 = vmatpush.msra.mxu1 %v1352_v6 }
  0x2b   :  { %615 = vmatpush.msra.mxu0 %v1371_v9  ;;  %635 = vmatpush.msra.mxu1 %v1366_v8 }
  0x2d   :  { %616 = vmatpush.msra.mxu0 %v1385_v11  ;;  %636 = vmatpush.msra.mxu1 %v1380_v10 }
  0x2f   :  { %617 = vmatpush.msra.mxu0 %v1399_v13  ;;  %637 = vmatpush.msra.mxu1 %v1394_v12 }
  0x31   :  { %618 = vmatpush.msra.mxu0 %v1413_v15  ;;  %638 = vmatpush.msra.mxu1 %v1408_v14 }
  0x8e   :  { %v95_v31 = vpop.f32.mrf.mxu1  ;;  %v75_v33 = vpop.f32.mrf.mxu0 }
  0x8f   :  { %v100_v34 = vrot.slane %v95_v31, 6  ;;  %v166_v31 = vmul.f32 0.0, %v165_v24 }
  0x91   :  { %v101_v35 = vsel %vm40_vm0, %v75_v33, %v100_v34 }
  0x92   :  { %v103_v36 = vadd.f32 %v101_v35, %v53_v32 }
  0x94   :  { %v1124_v37 = vmul.f32 -1.442695, %v103_v36  ;;  %v124_v41 = vrot.slane %v103_v36, 2 }
  0x96   :  { %1190 = vpow2.f32 %v1124_v37  ;;  %v1127_v37 = vld [vmem:[%s1794_s0 + $0x4] sm:$0xf] }
  0x9c   :  { %v1191_v38 = vpop.eup %1190 }
  0x9d   :  { %v107_v39 = vadd.f32 1.0, %v1191_v38  ;;  %v1128_v38 = vld [vmem:[%s1794_s0 + $0x18] sm:$0xf] }
  0x9f   :  { %1192 = vrcp.f32 %v107_v39  ;;  %v119_v44 = vand.u32 2147483648, %v107_v39  ;;  %v117_v46 = vand.u32 2147483647, %v107_v39  ;;  %vm113_vm2 = vweird.f32 %v107_v39 }
  0xa0   :  { %1194 = vtanh.f32 %v124_v41 }
  0xa1   :  { %v120_v48 = vor.u32 1.1754944e-38, %v119_v44  ;;  %vm118_vm4 = vcmp.eq.f32.partialorder %v117_v46, 8.507059e+37 }
  0xa5   :  { %v1193_v40 = vpop.eup %1192 }
  0xa6   :  { %v109_v42 = vmul.f32 %v1193_v40, %v107_v39  ;;  %vm114_vm1 = vweird.f32 %v1193_v40  ;;  %v1195_v50 = vpop.eup %1194  ;;  %v183_v39 = vmul.f32 %v1127_v37, %v1480_v26 }
  0xa7   :  { %vm115_vm3 = vmor %vm113_vm2, %vm114_vm1 }
  0xa8   :  { %v110_v43 = vsub.f32 1.0, %v109_v42 }
  0xaa   :  { %v111_v45 = vmul.f32 %v1193_v40, %v110_v43 }
  0xac   :  { %v112_v47 = vadd.f32 %v1193_v40, %v111_v45 }
  0xae   :  { %v116_v49 = vsel %vm115_vm3, %v1193_v40, %v112_v47  ;;  %v186_v40 = vmul.f32 %v1128_v38, %v1486_v28 }
  0xaf   :  { %v121_v51 = vsel %vm118_vm4, %v120_v48, %v116_v49 }
  0xb0   :  { %v151_v52 = vmul.f32 %v1195_v50, %v121_v51  ;;  %v150_v53 = vmul.f32 0.0, %v121_v51  ;;  %v187_v42 = vadd.f32 %v186_v40, %v183_v39 }
  0xb2   :  { %153 = vrot.lane.b32.xlu0 %v151_v52, %s1287_s3 }
  0xba   :  { %127 = vrot.lane.b32.xlu0 %v103_v36, %s1287_s3 }
 0x124   :  { %v154_v54 = vpop.permute.xlu0 %153 }
 0x125   :  { %v156_v55 = vadd.f32 %v154_v54, %v150_v53 }
 0x127   :  { %1196 = vtanh.f32 %v156_v55  ;;  %169 = vst [vmem:[#allocation1] ss:$4 sm:$0xff] %v156_v55 }
 0x12c   :  { %v128_v58 = vpop.permute.xlu0 %127 }
 0x12d   :  { %v1197_v56 = vpop.eup %1196  ;;  %v129_v59 = vrot.slane %v128_v58, 2 }
 0x12e   :  { %159 = vrot.lane.b32.xlu1 %v1197_v56, %s1287_s3  ;;  %v170_v57 = vld.sshfl [vmem:[#allocation1] sm:$0xff pattern:$0x73625140] }
 0x12f   :  { %v1125_v60 = vmul.f32 -1.442695, %v129_v59 }
 0x131   :  { %1198 = vpow2.f32 %v1125_v60 }
 0x136   :  { %171 = vrot.lane.b32.xlu1 %v170_v57, %s1287_s3 }
 0x137   :  { %v1199_v61 = vpop.eup %1198 }
 0x138   :  { %v134_v62 = vadd.f32 1.0, %v1199_v61 }
 0x13a   :  { %1200 = vrcp.f32 %v134_v62  ;;  %v146_v20 = vand.u32 2147483648, %v134_v62  ;;  %vm140_vm6 = vweird.f32 %v134_v62  ;;  %v144_v22 = vand.u32 2147483647, %v134_v62 }
 0x13c   :  { %v147_v25 = vor.u32 1.1754944e-38, %v146_v20  ;;  %vm145_vm8 = vcmp.eq.f32.partialorder %v144_v22, 8.507059e+37 }
 0x140   :  { %v1201_v63 = vpop.eup %1200 }
 0x141   :  { %v136_v16 = vmul.f32 %v1201_v63, %v134_v62  ;;  %vm141_vm5 = vweird.f32 %v1201_v63 }
 0x142   :  { %vm142_vm7 = vmor %vm140_vm6, %vm141_vm5 }
 0x143   :  { %v137_v17 = vsub.f32 1.0, %v136_v16 }
 0x145   :  { %v138_v18 = vmul.f32 %v1201_v63, %v137_v17 }
 0x147   :  { %v139_v19 = vadd.f32 %v1201_v63, %v138_v18 }
 0x149   :  { %v143_v23 = vsel %vm142_vm7, %v1201_v63, %v139_v19 }
 0x14a   :  { %v148_v27 = vsel %vm145_vm8, %v147_v25, %v143_v23 }
 0x1a0   :  { %v160_v29 = vpop.permute.xlu1 %159 }
 0x1a1   :  { %v162_v30 = vmul.f32 %v160_v29, %v148_v27  ;;  %v1133_v27 = vld [vmem:[%s1795_s1 + $0x2] sm:$0x3] }
 0x1a2   :  { %v303_v29 = vsub.f32 1.0, %v1133_v27 }
 0x1a3   :  { %v164_v32 = vmul.f32 %v163_v21, %v162_v30 }
 0x1a5   :  { %177 = vst.msk [vmem:[%s1796_s4] sm:$0x3] %vm176_vm9, %v164_v32  ;;  %v1502_v33 = vadd.f32 %v166_v31, %v164_v32 }
 0x1a6   :  { %1126 = vst.msk [vmem:[%s1796_s4 + $0xe] sm:$0x3] %vm179_vm10, %v164_v32 }
 0x1a7   :  { %1129 = vmatmul.msk.f32.vlgmr.msra.gmra.mxu2 %vm54_vm11, %v1502_v33  ;;  %1130 = vmatmul.msk.f32.vlgmr.msra.gmra.mxu3 %vm54_vm11, %v1502_v33 }
 0x1a8   :  { %v172_v34 = vpop.permute.xlu1 %171  ;;  %745 = vmatpush.msra.mxu2 %v1321_v1  ;;  %765 = vmatpush.msra.mxu3 %v1316_v0 }
 0x1a9   :  { %v174_v35 = vmul.f32 %v172_v34, %v163_v21 }
 0x1aa   :  { %746 = vmatpush.msra.mxu2 %v1333_v3  ;;  %766 = vmatpush.msra.mxu3 %v1326_v2 }
 0x1ab   :  { %v1516_v36 = vadd.f32 %v174_v35, %v166_v31 }
 0x1ac   :  { %747 = vmatpush.msra.mxu2 %v1343_v5  ;;  %767 = vmatpush.msra.mxu3 %v1338_v4 }
 0x1ad   :  { %284 = vrot.lane.b32.xlu2 %v1516_v36, %s1287_s3  ;;  %v313_v34 = vmul.f32 %v303_v29, %v1516_v36 }
 0x1ae   :  { %748 = vmatpush.msra.mxu2 %v1357_v7  ;;  %768 = vmatpush.msra.mxu3 %v1352_v6 }
 0x1b0   :  { %749 = vmatpush.msra.mxu2 %v1371_v9  ;;  %769 = vmatpush.msra.mxu3 %v1366_v8 }
 0x1b2   :  { %750 = vmatpush.msra.mxu2 %v1385_v11  ;;  %770 = vmatpush.msra.mxu3 %v1380_v10 }
 0x1b4   :  { %751 = vmatpush.msra.mxu2 %v1399_v13  ;;  %771 = vmatpush.msra.mxu3 %v1394_v12 }
 0x1b6   :  { %752 = vmatpush.msra.mxu2 %v1413_v15  ;;  %772 = vmatpush.msra.mxu3 %v1408_v14 }
 0x207   :  { %v285_v63 = vpop.permute.xlu2 %284 }
 0x22a   :  { %v228_v41 = vpop.f32.mrf.mxu3  ;;  %v208_v44 = vpop.f32.mrf.mxu2 }
 0x22b   :  { %v233_v43 = vrot.slane %v228_v41, 6 }
 0x22d   :  { %v234_v45 = vsel %vm40_vm0, %v208_v44, %v233_v43 }
 0x22e   :  { %v236_v46 = vadd.f32 %v234_v45, %v187_v42 }
 0x230   :  { %260 = vrot.lane.b32.xlu0 %v236_v46, %s1287_s3  ;;  %v1131_v47 = vmul.f32 -1.442695, %v236_v46  ;;  %v257_v51 = vrot.slane %v236_v46, 2 }
 0x232   :  { %1202 = vpow2.f32 %v1131_v47  ;;  %v304_v47 = vmul.f32 %v303_v29, %v1502_v33  ;;  %v1136_v33 = vld [vmem:[%s1794_s0 + $0x8] sm:$0xf] }
 0x238   :  { %v1203_v48 = vpop.eup %1202 }
 0x239   :  { %v240_v49 = vadd.f32 1.0, %v1203_v48 }
 0x23b   :  { %1204 = vrcp.f32 %v240_v49  ;;  %v252_v54 = vand.u32 2147483648, %v240_v49  ;;  %v250_v56 = vand.u32 2147483647, %v240_v49  ;;  %vm246_vm13 = vweird.f32 %v240_v49 }
 0x23c   :  { %1206 = vtanh.f32 %v257_v51  ;;  %v321_v51 = vmul.f32 %v1136_v33, %v1480_v26  ;;  %v1142_v33 = vld [vmem:[%s1795_s1 + $0x4] sm:$0x3] }
 0x23d   :  { %v253_v58 = vor.u32 1.1754944e-38, %v252_v54  ;;  %vm251_vm15 = vcmp.eq.f32.partialorder %v250_v56, 8.507059e+37 }
 0x241   :  { %v1205_v50 = vpop.eup %1204 }
 0x242   :  { %v242_v52 = vmul.f32 %v1205_v50, %v240_v49  ;;  %vm247_vm12 = vweird.f32 %v1205_v50  ;;  %v1207_v60 = vpop.eup %1206 }
 0x243   :  { %vm248_vm14 = vmor %vm246_vm13, %vm247_vm12 }
 0x244   :  { %v243_v53 = vsub.f32 1.0, %v242_v52 }
 0x246   :  { %v244_v55 = vmul.f32 %v1205_v50, %v243_v53 }
 0x248   :  { %v245_v57 = vadd.f32 %v1205_v50, %v244_v55 }
 0x24a   :  { %v249_v59 = vsel %vm248_vm14, %v1205_v50, %v245_v57  ;;  %v1137_v50 = vld [vmem:[%s1794_s0 + $0x14] sm:$0xf] }
 0x24b   :  { %v254_v61 = vsel %vm251_vm15, %v253_v58, %v249_v59  ;;  %v324_v52 = vmul.f32 %v1137_v50, %v1486_v28 }
 0x24c   :  { %v288_v62 = vmul.f32 %v1207_v60, %v254_v61  ;;  %v287_v16 = vmul.f32 %v285_v63, %v254_v61 }
 0x24d   :  { %v325_v54 = vadd.f32 %v324_v52, %v321_v51  ;;  %v441_v52 = vsub.f32 1.0, %v1142_v33 }
 0x24e   :  { %290 = vrot.lane.b32.xlu2 %v288_v62, %s1287_s3 }
 0x2a2   :  { %v261_v21 = vpop.permute.xlu0 %260 }
 0x2a3   :  { %v262_v22 = vrot.slane %v261_v21, 2 }
 0x2a5   :  { %v1132_v23 = vmul.f32 -1.442695, %v262_v22 }
 0x2a8   :  { %v291_v17 = vpop.permute.xlu2 %290 }
 0x2a9   :  { %v293_v18 = vadd.f32 %v291_v17, %v287_v16 }
 0x2ab   :  { %1208 = vtanh.f32 %v293_v18  ;;  %307 = vst [vmem:[#allocation1] ss:$4 sm:$0xff] %v293_v18 }
 0x2ac   :  { %1210 = vpow2.f32 %v1132_v23 }
 0x2b1   :  { %v1209_v19 = vpop.eup %1208 }
 0x2b2   :  { %296 = vrot.lane.b32.xlu1 %v1209_v19, %s1287_s3  ;;  %v308_v20 = vld.sshfl [vmem:[#allocation1] sm:$0xff pattern:$0x73625140]  ;;  %v1211_v24 = vpop.eup %1210 }
 0x2b3   :  { %309 = vrot.lane.b32.xlu2 %v308_v20, %s1287_s3  ;;  %v267_v25 = vadd.f32 1.0, %v1211_v24 }
 0x2b5   :  { %1212 = vrcp.f32 %v267_v25  ;;  %v279_v41 = vand.u32 2147483648, %v267_v25  ;;  %vm273_vm2 = vweird.f32 %v267_v25  ;;  %v277_v42 = vand.u32 2147483647, %v267_v25 }
 0x2b7   :  { %v280_v44 = vor.u32 1.1754944e-38, %v279_v41  ;;  %vm278_vm4 = vcmp.eq.f32.partialorder %v277_v42, 8.507059e+37 }
 0x2bb   :  { %v1213_v31 = vpop.eup %1212 }
 0x2bc   :  { %v269_v37 = vmul.f32 %v1213_v31, %v267_v25  ;;  %vm274_vm1 = vweird.f32 %v1213_v31 }
 0x2bd   :  { %vm275_vm3 = vmor %vm273_vm2, %vm274_vm1 }
 0x2be   :  { %v270_v38 = vsub.f32 1.0, %v269_v37 }
 0x2c0   :  { %v271_v39 = vmul.f32 %v1213_v31, %v270_v38 }
 0x2c2   :  { %v272_v40 = vadd.f32 %v1213_v31, %v271_v39 }
 0x2c4   :  { %v276_v43 = vsel %vm275_vm3, %v1213_v31, %v272_v40 }
 0x2c5   :  { %v281_v45 = vsel %vm278_vm4, %v280_v44, %v276_v43 }
 0x30d   :  { %v310_v30 = vpop.permute.xlu2 %309 }
 0x30e   :  { %v312_v32 = vmul.f32 %v1133_v27, %v310_v30 }
 0x310   :  { %v1549_v35 = vadd.f32 %v313_v34, %v312_v32 }
 0x312   :  { %422 = vrot.lane.b32.xlu0 %v1549_v35, %s1287_s3 }
 0x324   :  { %v297_v46 = vpop.permute.xlu1 %296 }
 0x325   :  { %v299_v36 = vmul.f32 %v297_v46, %v281_v45 }
 0x327   :  { %v302_v48 = vmul.f32 %v1133_v27, %v299_v36 }
 0x329   :  { %v1554_v49 = vadd.f32 %v304_v47, %v302_v48  ;;  %1134 = vst.msk [vmem:[%s1796_s4 + $0x2] sm:$0x3] %vm176_vm9, %v302_v48 }
 0x32a   :  { %1135 = vst.msk [vmem:[%s1796_s4 + $0xc] sm:$0x3] %vm179_vm10, %v302_v48 }
 0x32b   :  { %1138 = vmatmul.msk.f32.vlgmr.msrb.gmra.mxu0 %vm54_vm11, %v1554_v49  ;;  %1139 = vmatmul.msk.f32.vlgmr.msrb.gmra.mxu1 %vm54_vm11, %v1554_v49 }
 0x32c   :  { %879 = vmatpush.msrb.mxu0 %v1321_v1  ;;  %899 = vmatpush.msrb.mxu1 %v1316_v0 }
 0x32e   :  { %880 = vmatpush.msrb.mxu0 %v1333_v3  ;;  %900 = vmatpush.msrb.mxu1 %v1326_v2 }
 0x330   :  { %881 = vmatpush.msrb.mxu0 %v1343_v5  ;;  %901 = vmatpush.msrb.mxu1 %v1338_v4 }
 0x332   :  { %882 = vmatpush.msrb.mxu0 %v1357_v7  ;;  %902 = vmatpush.msrb.mxu1 %v1352_v6 }
 0x334   :  { %883 = vmatpush.msrb.mxu0 %v1371_v9  ;;  %903 = vmatpush.msrb.mxu1 %v1366_v8 }
 0x336   :  { %884 = vmatpush.msrb.mxu0 %v1385_v11  ;;  %904 = vmatpush.msrb.mxu1 %v1380_v10 }
 0x338   :  { %885 = vmatpush.msrb.mxu0 %v1399_v13  ;;  %905 = vmatpush.msrb.mxu1 %v1394_v12 }
 0x33a   :  { %886 = vmatpush.msrb.mxu0 %v1413_v15  ;;  %906 = vmatpush.msrb.mxu1 %v1408_v14 }
 0x384   :  { %v423_v29 = vpop.permute.xlu0 %422 }
 0x3a8   :  { %v366_v53 = vpop.f32.mrf.mxu1  ;;  %v346_v56 = vpop.f32.mrf.mxu0 }
 0x3a9   :  { %v371_v55 = vrot.slane %v366_v53, 6 }
 0x3ab   :  { %v372_v57 = vsel %vm40_vm0, %v346_v56, %v371_v55 }
 0x3ac   :  { %v374_v58 = vadd.f32 %v372_v57, %v325_v54 }
 0x3ae   :  { %398 = vrot.lane.b32.xlu2 %v374_v58, %s1287_s3  ;;  %v1140_v59 = vmul.f32 -1.442695, %v374_v58  ;;  %v395_v63 = vrot.slane %v374_v58, 2  ;;  %v451_v58 = vmul.f32 %v441_v52, %v1549_v35 }
 0x3b0   :  { %1214 = vpow2.f32 %v1140_v59 }
 0x3b6   :  { %v1215_v60 = vpop.eup %1214 }
 0x3b7   :  { %v378_v61 = vadd.f32 1.0, %v1215_v60  ;;  %v442_v60 = vmul.f32 %v441_v52, %v1554_v49 }
 0x3b9   :  { %1216 = vrcp.f32 %v378_v61  ;;  %v390_v18 = vand.u32 2147483648, %v378_v61  ;;  %v388_v20 = vand.u32 2147483647, %v378_v61  ;;  %vm384_vm6 = vweird.f32 %v378_v61 }
 0x3ba   :  { %1218 = vtanh.f32 %v395_v63 }
 0x3bb   :  { %v391_v22 = vor.u32 1.1754944e-38, %v390_v18  ;;  %vm389_vm8 = vcmp.eq.f32.partialorder %v388_v20, 8.507059e+37 }
 0x3bf   :  { %v1217_v62 = vpop.eup %1216 }
 0x3c0   :  { %v380_v16 = vmul.f32 %v1217_v62, %v378_v61  ;;  %vm385_vm5 = vweird.f32 %v1217_v62  ;;  %v1219_v24 = vpop.eup %1218 }
 0x3c1   :  { %vm386_vm7 = vmor %vm384_vm6, %vm385_vm5 }
 0x3c2   :  { %v381_v17 = vsub.f32 1.0, %v380_v16 }
 0x3c4   :  { %v382_v19 = vmul.f32 %v1217_v62, %v381_v17 }
 0x3c6   :  { %v383_v21 = vadd.f32 %v1217_v62, %v382_v19 }
 0x3c8   :  { %v387_v23 = vsel %vm386_vm7, %v1217_v62, %v383_v21 }
 0x3c9   :  { %v392_v25 = vsel %vm389_vm8, %v391_v22, %v387_v23 }
 0x3ca   :  { %v426_v27 = vmul.f32 %v1219_v24, %v392_v25  ;;  %v425_v30 = vmul.f32 %v423_v29, %v392_v25 }
 0x3cc   :  { %428 = vrot.lane.b32.xlu1 %v426_v27, %s1287_s3 }
 0x408   :  { %v399_v38 = vpop.permute.xlu2 %398 }
 0x409   :  { %v400_v39 = vrot.slane %v399_v38, 2 }
 0x40b   :  { %v1141_v40 = vmul.f32 -1.442695, %v400_v39 }
 0x43e   :  { %v429_v31 = vpop.permute.xlu1 %428 }
 0x43f   :  { %v431_v32 = vadd.f32 %v429_v31, %v425_v30 }
 0x441   :  { %1220 = vtanh.f32 %v431_v32  ;;  %445 = vst [vmem:[#allocation1] ss:$4 sm:$0xff] %v431_v32 }
 0x442   :  { %1222 = vpow2.f32 %v1141_v40 }
 0x447   :  { %v1221_v34 = vpop.eup %1220 }
 0x448   :  { %434 = vrot.lane.b32.xlu0 %v1221_v34, %s1287_s3  ;;  %v446_v37 = vld.sshfl [vmem:[#allocation1] sm:$0xff pattern:$0x73625140]  ;;  %v1223_v41 = vpop.eup %1222 }
 0x449   :  { %447 = vrot.lane.b32.xlu1 %v446_v37, %s1287_s3  ;;  %v405_v42 = vadd.f32 1.0, %v1223_v41 }
 0x44b   :  { %1224 = vrcp.f32 %v405_v42  ;;  %v417_v47 = vand.u32 2147483648, %v405_v42  ;;  %vm411_vm13 = vweird.f32 %v405_v42  ;;  %v415_v48 = vand.u32 2147483647, %v405_v42 }
 0x44d   :  { %v418_v51 = vor.u32 1.1754944e-38, %v417_v47  ;;  %vm416_vm15 = vcmp.eq.f32.partialorder %v415_v48, 8.507059e+37 }
 0x451   :  { %v1225_v43 = vpop.eup %1224 }
 0x452   :  { %v407_v44 = vmul.f32 %v1225_v43, %v405_v42  ;;  %vm412_vm12 = vweird.f32 %v1225_v43 }
 0x453   :  { %vm413_vm14 = vmor %vm411_vm13, %vm412_vm12 }
 0x454   :  { %v408_v45 = vsub.f32 1.0, %v407_v44 }
 0x456   :  { %v409_v46 = vmul.f32 %v1225_v43, %v408_v45 }
 0x458   :  { %v410_v36 = vadd.f32 %v1225_v43, %v409_v46  ;;  %v1151_v46 = vld [vmem:[%s1795_s1 + $0x6] sm:$0x3] }
 0x459   :  { %v579_v48 = vsub.f32 1.0, %v1151_v46 }
 0x45a   :  { %v414_v50 = vsel %vm413_vm14, %v1225_v43, %v410_v36 }
 0x45b   :  { %v419_v53 = vsel %vm416_vm15, %v418_v51, %v414_v50 }
 0x4ba   :  { %v435_v54 = vpop.permute.xlu0 %434 }
 0x4bb   :  { %v437_v55 = vmul.f32 %v435_v54, %v419_v53  ;;  %v448_v56 = vpop.permute.xlu1 %447 }
 0x4bc   :  { %v450_v57 = vmul.f32 %v1142_v33, %v448_v56 }
 0x4bd   :  { %v440_v59 = vmul.f32 %v1142_v33, %v437_v55 }
 0x4be   :  { %v1602_v61 = vadd.f32 %v451_v58, %v450_v57 }
 0x4bf   :  { %1143 = vst.msk [vmem:[%s1796_s4 + $0x4] sm:$0x3] %vm176_vm9, %v440_v59  ;;  %v1608_v62 = vadd.f32 %v442_v60, %v440_v59  ;;  %v1155_v60 = vld [vmem:[%s1794_s0 + $0xc] sm:$0xf] }
 0x4c0   :  { %1144 = vst.msk [vmem:[%s1796_s4 + $0xa] sm:$0x3] %vm179_vm10, %v440_v59  ;;  %560 = vrot.lane.b32.xlu2 %v1602_v61, %s1287_s3  ;;  %v589_v57 = vmul.f32 %v579_v48, %v1602_v61  ;;  %v1154_v59 = vld [vmem:[%s1794_s0 + $0x10] sm:$0xf] }
 0x4c1   :  { %1147 = vmatmul.msk.f32.vlgmr.msrb.gmra.mxu2 %vm54_vm11, %v1608_v62  ;;  %1148 = vmatmul.msk.f32.vlgmr.msrb.gmra.mxu3 %vm54_vm11, %v1608_v62  ;;  %v580_v52 = vmul.f32 %v579_v48, %v1608_v62  ;;  %v596_v62 = vmul.f32 %v1154_v59, %v1480_v26 }
 0x4c2   :  { %1013 = vmatpush.msrb.mxu2 %v1321_v1  ;;  %1033 = vmatpush.msrb.mxu3 %v1316_v0  ;;  %v1145_v0 = vld [vmem:[%s1794_s0 + $0xc] sm:$0xf]  ;;  %v1146_v1 = vld [vmem:[%s1794_s0 + $0x10] sm:$0xf] }
 0x4c4   :  { %1014 = vmatpush.msrb.mxu2 %v1333_v3  ;;  %1034 = vmatpush.msrb.mxu3 %v1326_v2  ;;  %v459_v2 = vmul.f32 %v1145_v0, %v1480_v26  ;;  %v462_v3 = vmul.f32 %v1146_v1, %v1486_v28  ;;  %v598_v0 = vmul.f32 %v1155_v60, %v1486_v28 }
 0x4c6   :  { %1015 = vmatpush.msrb.mxu2 %v1343_v5  ;;  %1035 = vmatpush.msrb.mxu3 %v1338_v4  ;;  %v463_v5 = vadd.f32 %v462_v3, %v459_v2  ;;  %v599_v2 = vadd.f32 %v598_v0, %v596_v62 }
 0x4c8   :  { %1016 = vmatpush.msrb.mxu2 %v1357_v7  ;;  %1036 = vmatpush.msrb.mxu3 %v1352_v6 }
 0x4ca   :  { %1017 = vmatpush.msrb.mxu2 %v1371_v9  ;;  %1037 = vmatpush.msrb.mxu3 %v1366_v8 }
 0x4cc   :  { %1018 = vmatpush.msrb.mxu2 %v1385_v11  ;;  %1038 = vmatpush.msrb.mxu3 %v1380_v10 }
 0x4ce   :  { %1019 = vmatpush.msrb.mxu2 %v1399_v13  ;;  %1039 = vmatpush.msrb.mxu3 %v1394_v12 }
 0x4d0   :  { %1020 = vmatpush.msrb.mxu2 %v1413_v15  ;;  %1040 = vmatpush.msrb.mxu3 %v1408_v14 }
 0x51a   :  { %v561_v23 = vpop.permute.xlu2 %560 }
 0x544   :  { %v504_v4 = vpop.f32.mrf.mxu3  ;;  %v484_v7 = vpop.f32.mrf.mxu2 }
 0x545   :  { %v509_v6 = vrot.slane %v504_v4, 6 }
 0x547   :  { %v510_v8 = vsel %vm40_vm0, %v484_v7, %v509_v6 }
 0x548   :  { %v512_v9 = vadd.f32 %v510_v8, %v463_v5 }
 0x54a   :  { %536 = vrot.lane.b32.xlu1 %v512_v9, %s1287_s3  ;;  %v1149_v10 = vmul.f32 -1.442695, %v512_v9  ;;  %v533_v14 = vrot.slane %v512_v9, 2 }
 0x54c   :  { %1226 = vpow2.f32 %v1149_v10 }
 0x552   :  { %v1227_v11 = vpop.eup %1226 }
 0x553   :  { %v516_v12 = vadd.f32 1.0, %v1227_v11 }
 0x555   :  { %1228 = vrcp.f32 %v516_v12  ;;  %v528_v49 = vand.u32 2147483648, %v516_v12  ;;  %v526_v16 = vand.u32 2147483647, %v516_v12  ;;  %vm522_vm2 = vweird.f32 %v516_v12 }
 0x556   :  { %1230 = vtanh.f32 %v533_v14 }
 0x557   :  { %v529_v18 = vor.u32 1.1754944e-38, %v528_v49  ;;  %vm527_vm4 = vcmp.eq.f32.partialorder %v526_v16, 8.507059e+37 }
 0x55b   :  { %v1229_v13 = vpop.eup %1228 }
 0x55c   :  { %v518_v15 = vmul.f32 %v1229_v13, %v516_v12  ;;  %vm523_vm1 = vweird.f32 %v1229_v13  ;;  %v1231_v20 = vpop.eup %1230 }
 0x55d   :  { %vm524_vm3 = vmor %vm522_vm2, %vm523_vm1 }
 0x55e   :  { %v519_v35 = vsub.f32 1.0, %v518_v15 }
 0x560   :  { %v520_v63 = vmul.f32 %v1229_v13, %v519_v35 }
 0x562   :  { %v521_v17 = vadd.f32 %v1229_v13, %v520_v63 }
 0x564   :  { %v525_v19 = vsel %vm524_vm3, %v1229_v13, %v521_v17 }
 0x565   :  { %v530_v21 = vsel %vm527_vm4, %v529_v18, %v525_v19 }
 0x566   :  { %v564_v22 = vmul.f32 %v1231_v20, %v530_v21  ;;  %v563_v24 = vmul.f32 %v561_v23, %v530_v21 }
 0x568   :  { %566 = vrot.lane.b32.xlu0 %v564_v22, %s1287_s3 }
 0x5bc   :  { %v537_v31 = vpop.permute.xlu1 %536 }
 0x5bd   :  { %v538_v32 = vrot.slane %v537_v31, 2 }
 0x5bf   :  { %v1150_v34 = vmul.f32 -1.442695, %v538_v32  ;;  %v1160_v32 = vld [vmem:[%s1795_s1 + $0x8] sm:$0x3] }
 0x5da   :  { %v567_v25 = vpop.permute.xlu0 %566 }
 0x5db   :  { %v569_v27 = vadd.f32 %v567_v25, %v563_v24 }
 0x5dd   :  { %1232 = vtanh.f32 %v569_v27  ;;  %583 = vst [vmem:[#allocation1] ss:$4 sm:$0xff] %v569_v27 }
 0x5de   :  { %1234 = vpow2.f32 %v1150_v34  ;;  %v715_v34 = vsub.f32 1.0, %v1160_v32 }
 0x5e3   :  { %v1233_v29 = vpop.eup %1232 }
 0x5e4   :  { %572 = vrot.lane.b32.xlu2 %v1233_v29, %s1287_s3  ;;  %v584_v30 = vld.sshfl [vmem:[#allocation1] sm:$0xff pattern:$0x73625140]  ;;  %v1235_v37 = vpop.eup %1234 }
 0x5e5   :  { %585 = vrot.lane.b32.xlu0 %v584_v30, %s1287_s3  ;;  %v543_v38 = vadd.f32 1.0, %v1235_v37 }
 0x5e7   :  { %1236 = vrcp.f32 %v543_v38  ;;  %v555_v44 = vand.u32 2147483648, %v543_v38  ;;  %vm549_vm6 = vweird.f32 %v543_v38  ;;  %v553_v45 = vand.u32 2147483647, %v543_v38 }
 0x5e9   :  { %v556_v47 = vor.u32 1.1754944e-38, %v555_v44  ;;  %vm554_vm8 = vcmp.eq.f32.partialorder %v553_v45, 8.507059e+37 }
 0x5ed   :  { %v1237_v39 = vpop.eup %1236 }
 0x5ee   :  { %v545_v40 = vmul.f32 %v1237_v39, %v543_v38  ;;  %vm550_vm5 = vweird.f32 %v1237_v39 }
 0x5ef   :  { %vm551_vm7 = vmor %vm549_vm6, %vm550_vm5 }
 0x5f0   :  { %v546_v41 = vsub.f32 1.0, %v545_v40 }
 0x5f2   :  { %v547_v42 = vmul.f32 %v1237_v39, %v546_v41 }
 0x5f4   :  { %v548_v43 = vadd.f32 %v1237_v39, %v547_v42 }
 0x5f6   :  { %v552_v36 = vsel %vm551_vm7, %v1237_v39, %v548_v43 }
 0x5f7   :  { %v557_v33 = vsel %vm554_vm8, %v556_v47, %v552_v36 }
 0x63e   :  { %v573_v50 = vpop.permute.xlu2 %572 }
 0x63f   :  { %v575_v51 = vmul.f32 %v573_v50, %v557_v33 }
 0x641   :  { %v578_v53 = vmul.f32 %v1151_v46, %v575_v51 }
 0x643   :  { %v1653_v54 = vadd.f32 %v580_v52, %v578_v53  ;;  %1152 = vst.msk [vmem:[%s1796_s4 + $0x6] sm:$0x3] %vm176_vm9, %v578_v53 }
 0x644   :  { %1153 = vst.msk [vmem:[%s1796_s4 + $0x8] sm:$0x3] %vm179_vm10, %v578_v53 }
 0x645   :  { %1156 = vmatmul.msk.f32.vlgmr.msra.gmra.mxu0 %vm54_vm11, %v1653_v54  ;;  %1157 = vmatmul.msk.f32.vlgmr.msra.gmra.mxu1 %vm54_vm11, %v1653_v54  ;;  %v716_v52 = vmul.f32 %v715_v34, %v1653_v54  ;;  %v1163_v54 = vld [vmem:[%s1794_s0 + $0x14] sm:$0xf] }
 0x657   :  { %v586_v55 = vpop.permute.xlu0 %585 }
 0x658   :  { %v588_v56 = vmul.f32 %v1151_v46, %v586_v55 }
 0x65a   :  { %v590_v58 = vadd.f32 %v589_v57, %v588_v56  ;;  %v1164_v56 = vld [vmem:[%s1794_s0 + $0x8] sm:$0xf]  ;;  %v730_v57 = vmul.f32 %v1163_v54, %v1480_v26 }
 0x65c   :  { %696 = vrot.lane.b32.xlu1 %v590_v58, %s1287_s3  ;;  %v725_v40 = vmul.f32 %v715_v34, %v590_v58  ;;  %v732_v58 = vmul.f32 %v1164_v56, %v1486_v28 }
 0x65e   :  { %v733_v60 = vadd.f32 %v732_v58, %v730_v57 }
 0x6c2   :  { %v640_v1 = vpop.f32.mrf.mxu1  ;;  %v620_v4 = vpop.f32.mrf.mxu0 }
 0x6c3   :  { %v645_v3 = vrot.slane %v640_v1, 6 }
 0x6c5   :  { %v646_v61 = vsel %vm40_vm0, %v620_v4, %v645_v3 }
 0x6c6   :  { %v648_v5 = vadd.f32 %v646_v61, %v599_v2 }
 0x6c8   :  { %672 = vrot.lane.b32.xlu0 %v648_v5, %s1287_s3  ;;  %v1158_v6 = vmul.f32 -1.442695, %v648_v5  ;;  %v669_v10 = vrot.slane %v648_v5, 2 }
 0x6ca   :  { %1238 = vpow2.f32 %v1158_v6 }
 0x6ce   :  { %v697_v19 = vpop.permute.xlu1 %696 }
 0x6d0   :  { %v1239_v7 = vpop.eup %1238 }
 0x6d1   :  { %v652_v8 = vadd.f32 1.0, %v1239_v7 }
 0x6d3   :  { %1240 = vrcp.f32 %v652_v8  ;;  %v664_v13 = vand.u32 2147483648, %v652_v8  ;;  %v662_v15 = vand.u32 2147483647, %v652_v8  ;;  %vm658_vm13 = vweird.f32 %v652_v8 }
 0x6d4   :  { %1242 = vtanh.f32 %v669_v10 }
 0x6d5   :  { %v665_v49 = vor.u32 1.1754944e-38, %v664_v13  ;;  %vm663_vm15 = vcmp.eq.f32.partialorder %v662_v15, 8.507059e+37 }
 0x6d9   :  { %v1241_v9 = vpop.eup %1240 }
 0x6da   :  { %v654_v11 = vmul.f32 %v1241_v9, %v652_v8  ;;  %vm659_vm12 = vweird.f32 %v1241_v9  ;;  %v1243_v16 = vpop.eup %1242 }
 0x6db   :  { %vm660_vm14 = vmor %vm658_vm13, %vm659_vm12 }
 0x6dc   :  { %v655_v12 = vsub.f32 1.0, %v654_v11 }
 0x6de   :  { %v656_v14 = vmul.f32 %v1241_v9, %v655_v12 }
 0x6e0   :  { %v657_v35 = vadd.f32 %v1241_v9, %v656_v14 }
 0x6e2   :  { %v661_v63 = vsel %vm660_vm14, %v1241_v9, %v657_v35 }
 0x6e3   :  { %v666_v17 = vsel %vm663_vm15, %v665_v49, %v661_v63 }
 0x6e4   :  { %v700_v18 = vmul.f32 %v1243_v16, %v666_v17  ;;  %v699_v20 = vmul.f32 %v697_v19, %v666_v17 }
 0x6e6   :  { %702 = vrot.lane.b32.xlu2 %v700_v18, %s1287_s3 }
 0x73a   :  { %v673_v25 = vpop.permute.xlu0 %672 }
 0x73b   :  { %v674_v27 = vrot.slane %v673_v25, 2 }
 0x73d   :  { %v1159_v29 = vmul.f32 -1.442695, %v674_v27 }
 0x740   :  { %v703_v21 = vpop.permute.xlu2 %702 }
 0x741   :  { %v705_v22 = vadd.f32 %v703_v21, %v699_v20 }
 0x743   :  { %1244 = vtanh.f32 %v705_v22  ;;  %719 = vst [vmem:[#allocation1] ss:$4 sm:$0xff] %v705_v22 }
 0x744   :  { %1246 = vpow2.f32 %v1159_v29 }
 0x749   :  { %v1245_v23 = vpop.eup %1244 }
 0x74a   :  { %708 = vrot.lane.b32.xlu1 %v1245_v23, %s1287_s3  ;;  %v720_v24 = vld.sshfl [vmem:[#allocation1] sm:$0xff pattern:$0x73625140]  ;;  %v1247_v30 = vpop.eup %1246 }
 0x74b   :  { %721 = vrot.lane.b32.xlu2 %v720_v24, %s1287_s3  ;;  %v679_v31 = vadd.f32 1.0, %v1247_v30 }
 0x74d   :  { %1248 = vrcp.f32 %v679_v31  ;;  %v691_v46 = vand.u32 2147483648, %v679_v31  ;;  %vm685_vm2 = vweird.f32 %v679_v31  ;;  %v689_v36 = vand.u32 2147483647, %v679_v31 }
 0x74f   :  { %v692_v48 = vor.u32 1.1754944e-38, %v691_v46  ;;  %vm690_vm4 = vcmp.eq.f32.partialorder %v689_v36, 8.507059e+37 }
 0x753   :  { %v1249_v38 = vpop.eup %1248 }
 0x754   :  { %v681_v42 = vmul.f32 %v1249_v38, %v679_v31  ;;  %vm686_vm1 = vweird.f32 %v1249_v38 }
 0x755   :  { %vm687_vm3 = vmor %vm685_vm2, %vm686_vm1 }
 0x756   :  { %v682_v43 = vsub.f32 1.0, %v681_v42 }
 0x758   :  { %v683_v44 = vmul.f32 %v1249_v38, %v682_v43 }
 0x75a   :  { %v684_v45 = vadd.f32 %v1249_v38, %v683_v44 }
 0x75c   :  { %v688_v47 = vsel %vm687_vm3, %v1249_v38, %v684_v45  ;;  %v1169_v38 = vld [vmem:[%s1795_s1 + $0xa] sm:$0x3] }
 0x75d   :  { %v693_v33 = vsel %vm690_vm4, %v692_v48, %v688_v47  ;;  %v849_v42 = vsub.f32 1.0, %v1169_v38 }
 0x7a5   :  { %v722_v37 = vpop.permute.xlu2 %721 }
 0x7a6   :  { %v724_v39 = vmul.f32 %v1160_v32, %v722_v37 }
 0x7a8   :  { %v1685_v41 = vadd.f32 %v725_v40, %v724_v39 }
 0x7aa   :  { %830 = vrot.lane.b32.xlu0 %v1685_v41, %s1287_s3  ;;  %v859_v47 = vmul.f32 %v849_v42, %v1685_v41  ;;  %v1172_v41 = vld [vmem:[%s1794_s0 + $0x18] sm:$0xf] }
 0x7bc   :  { %v709_v50 = vpop.permute.xlu1 %708 }
 0x7bd   :  { %v711_v51 = vmul.f32 %v709_v50, %v693_v33 }
 0x7bf   :  { %v714_v53 = vmul.f32 %v1160_v32, %v711_v51 }
 0x7c1   :  { %v1690_v55 = vadd.f32 %v716_v52, %v714_v53  ;;  %1161 = vst.msk [vmem:[%s1796_s4 + $0x8] sm:$0x3] %vm176_vm9, %v714_v53  ;;  %v1173_v52 = vld [vmem:[%s1794_s0 + $0x4] sm:$0xf] }
 0x7c2   :  { %1162 = vst.msk [vmem:[%s1796_s4 + $0x6] sm:$0x3] %vm179_vm10, %v714_v53  ;;  %v864_v53 = vmul.f32 %v1172_v41, %v1480_v26 }
 0x7c3   :  { %1165 = vmatmul.msk.f32.vlgmr.msra.gmra.mxu2 %vm54_vm11, %v1690_v55  ;;  %1166 = vmatmul.msk.f32.vlgmr.msra.gmra.mxu3 %vm54_vm11, %v1690_v55  ;;  %v850_v33 = vmul.f32 %v849_v42, %v1690_v55  ;;  %v866_v55 = vmul.f32 %v1173_v52, %v1486_v28 }
 0x7c5   :  { %v867_v56 = vadd.f32 %v866_v55, %v864_v53 }
 0x81c   :  { %v831_v63 = vpop.permute.xlu0 %830 }
 0x846   :  { %v774_v59 = vpop.f32.mrf.mxu3  ;;  %v754_v0 = vpop.f32.mrf.mxu2 }
 0x847   :  { %v779_v62 = vrot.slane %v774_v59, 6 }
 0x849   :  { %v780_v1 = vsel %vm40_vm0, %v754_v0, %v779_v62 }
 0x84a   :  { %v782_v2 = vadd.f32 %v780_v1, %v733_v60 }
 0x84c   :  { %806 = vrot.lane.b32.xlu2 %v782_v2, %s1287_s3  ;;  %v1167_v3 = vmul.f32 -1.442695, %v782_v2  ;;  %v803_v6 = vrot.slane %v782_v2, 2 }
 0x84e   :  { %1250 = vpow2.f32 %v1167_v3 }
 0x854   :  { %v1251_v4 = vpop.eup %1250 }
 0x855   :  { %v786_v61 = vadd.f32 1.0, %v1251_v4 }
 0x857   :  { %1252 = vrcp.f32 %v786_v61  ;;  %v798_v9 = vand.u32 2147483648, %v786_v61  ;;  %v796_v11 = vand.u32 2147483647, %v786_v61  ;;  %vm792_vm6 = vweird.f32 %v786_v61 }
 0x858   :  { %1254 = vtanh.f32 %v803_v6 }
 0x859   :  { %v799_v13 = vor.u32 1.1754944e-38, %v798_v9  ;;  %vm797_vm8 = vcmp.eq.f32.partialorder %v796_v11, 8.507059e+37 }
 0x85d   :  { %v1253_v5 = vpop.eup %1252 }
 0x85e   :  { %v788_v7 = vmul.f32 %v1253_v5, %v786_v61  ;;  %vm793_vm5 = vweird.f32 %v1253_v5  ;;  %v1255_v15 = vpop.eup %1254 }
 0x85f   :  { %vm794_vm7 = vmor %vm792_vm6, %vm793_vm5 }
 0x860   :  { %v789_v8 = vsub.f32 1.0, %v788_v7 }
 0x862   :  { %v790_v10 = vmul.f32 %v1253_v5, %v789_v8 }
 0x864   :  { %v791_v12 = vadd.f32 %v1253_v5, %v790_v10 }
 0x866   :  { %v795_v14 = vsel %vm794_vm7, %v1253_v5, %v791_v12 }
 0x867   :  { %v800_v35 = vsel %vm797_vm8, %v799_v13, %v795_v14 }
 0x868   :  { %v834_v49 = vmul.f32 %v1255_v15, %v800_v35  ;;  %v833_v16 = vmul.f32 %v831_v63, %v800_v35 }
 0x86a   :  { %836 = vrot.lane.b32.xlu1 %v834_v49, %s1287_s3 }
 0x8a6   :  { %v807_v21 = vpop.permute.xlu2 %806 }
 0x8a7   :  { %v808_v22 = vrot.slane %v807_v21, 2 }
 0x8a9   :  { %v1168_v23 = vmul.f32 -1.442695, %v808_v22 }
 0x8dc   :  { %v837_v17 = vpop.permute.xlu1 %836 }
 0x8dd   :  { %v839_v18 = vadd.f32 %v837_v17, %v833_v16 }
 0x8df   :  { %1256 = vtanh.f32 %v839_v18  ;;  %853 = vst [vmem:[#allocation1] ss:$4 sm:$0xff] %v839_v18 }
 0x8e0   :  { %1258 = vpow2.f32 %v1168_v23 }
 0x8e5   :  { %v1257_v19 = vpop.eup %1256 }
 0x8e6   :  { %842 = vrot.lane.b32.xlu0 %v1257_v19, %s1287_s3  ;;  %v854_v20 = vld.sshfl [vmem:[#allocation1] sm:$0xff pattern:$0x73625140]  ;;  %v1259_v24 = vpop.eup %1258 }
 0x8e7   :  { %855 = vrot.lane.b32.xlu1 %v854_v20, %s1287_s3  ;;  %v813_v25 = vadd.f32 1.0, %v1259_v24 }
 0x8e9   :  { %1260 = vrcp.f32 %v813_v25  ;;  %v825_v34 = vand.u32 2147483648, %v813_v25  ;;  %vm819_vm13 = vweird.f32 %v813_v25  ;;  %v823_v37 = vand.u32 2147483647, %v813_v25 }
 0x8eb   :  { %v826_v40 = vor.u32 1.1754944e-38, %v825_v34  ;;  %vm824_vm15 = vcmp.eq.f32.partialorder %v823_v37, 8.507059e+37 }
 0x8ef   :  { %v1261_v27 = vpop.eup %1260 }
 0x8f0   :  { %v815_v29 = vmul.f32 %v1261_v27, %v813_v25  ;;  %vm820_vm12 = vweird.f32 %v1261_v27 }
 0x8f1   :  { %vm821_vm14 = vmor %vm819_vm13, %vm820_vm12 }
 0x8f2   :  { %v816_v30 = vsub.f32 1.0, %v815_v29 }
 0x8f4   :  { %v817_v31 = vmul.f32 %v1261_v27, %v816_v30 }
 0x8f6   :  { %v818_v32 = vadd.f32 %v1261_v27, %v817_v31  ;;  %v1178_v31 = vld [vmem:[%s1795_s1 + $0xc] sm:$0x3] }
 0x8f7   :  { %v983_v37 = vsub.f32 1.0, %v1178_v31 }
 0x8f8   :  { %v822_v39 = vsel %vm821_vm14, %v1261_v27, %v818_v32 }
 0x8f9   :  { %v827_v43 = vsel %vm824_vm15, %v826_v40, %v822_v39 }
 0x958   :  { %v843_v44 = vpop.permute.xlu0 %842 }
 0x959   :  { %v845_v45 = vmul.f32 %v843_v44, %v827_v43  ;;  %v856_v46 = vpop.permute.xlu1 %855 }
 0x95a   :  { %v858_v36 = vmul.f32 %v1169_v38, %v856_v46 }
 0x95b   :  { %v848_v48 = vmul.f32 %v1169_v38, %v845_v45 }
 0x95c   :  { %v1722_v50 = vadd.f32 %v859_v47, %v858_v36 }
 0x95d   :  { %1170 = vst.msk [vmem:[%s1796_s4 + $0xa] sm:$0x3] %vm176_vm9, %v848_v48  ;;  %v1728_v51 = vadd.f32 %v850_v33, %v848_v48  ;;  %v999_v33 = vld [vmem:[%s1794_s0] sm:$0xf] }
 0x95e   :  { %1171 = vst.msk [vmem:[%s1796_s4 + $0x4] sm:$0x3] %vm179_vm10, %v848_v48  ;;  %964 = vrot.lane.b32.xlu2 %v1722_v50, %s1287_s3  ;;  %v993_v36 = vmul.f32 %v983_v37, %v1722_v50  ;;  %v1181_v48 = vld [vmem:[%s1794_s0 + $0x1c] sm:$0xf]  ;;  %v1000_v41 = vmul.f32 %v999_v33, %v1486_v28 }
 0x95f   :  { %1174 = vmatmul.msk.f32.vlgmr.msrb.gmra.mxu0 %vm54_vm11, %v1728_v51  ;;  %1175 = vmatmul.msk.f32.vlgmr.msrb.gmra.mxu1 %vm54_vm11, %v1728_v51  ;;  %v984_v42 = vmul.f32 %v983_v37, %v1728_v51  ;;  %v998_v51 = vmul.f32 %v1181_v48, %v1480_v26 }
 0x961   :  { %v1001_v53 = vadd.f32 %v1000_v41, %v998_v51 }
 0x9b8   :  { %v965_v14 = vpop.permute.xlu2 %964 }
 0x9dc   :  { %v908_v54 = vpop.f32.mrf.mxu1  ;;  %v888_v58 = vpop.f32.mrf.mxu0 }
 0x9dd   :  { %v913_v57 = vrot.slane %v908_v54, 6 }
 0x9df   :  { %v914_v59 = vsel %vm40_vm0, %v888_v58, %v913_v57 }
 0x9e0   :  { %v916_v60 = vadd.f32 %v914_v59, %v867_v56 }
 0x9e2   :  { %940 = vrot.lane.b32.xlu1 %v916_v60, %s1287_s3  ;;  %v1176_v62 = vmul.f32 -1.442695, %v916_v60  ;;  %v937_v3 = vrot.slane %v916_v60, 2 }
 0x9e4   :  { %1262 = vpow2.f32 %v1176_v62 }
 0x9ea   :  { %v1263_v0 = vpop.eup %1262 }
 0x9eb   :  { %v920_v1 = vadd.f32 1.0, %v1263_v0 }
 0x9ed   :  { %1264 = vrcp.f32 %v920_v1  ;;  %v932_v5 = vand.u32 2147483648, %v920_v1  ;;  %v930_v7 = vand.u32 2147483647, %v920_v1  ;;  %vm926_vm2 = vweird.f32 %v920_v1 }
 0x9ee   :  { %1266 = vtanh.f32 %v937_v3 }
 0x9ef   :  { %v933_v9 = vor.u32 1.1754944e-38, %v932_v5  ;;  %vm931_vm4 = vcmp.eq.f32.partialorder %v930_v7, 8.507059e+37 }
 0x9f3   :  { %v1265_v2 = vpop.eup %1264 }
 0x9f4   :  { %v922_v4 = vmul.f32 %v1265_v2, %v920_v1  ;;  %vm927_vm1 = vweird.f32 %v1265_v2  ;;  %v1267_v11 = vpop.eup %1266 }
 0x9f5   :  { %vm928_vm3 = vmor %vm926_vm2, %vm927_vm1 }
 0x9f6   :  { %v923_v61 = vsub.f32 1.0, %v922_v4 }
 0x9f8   :  { %v924_v6 = vmul.f32 %v1265_v2, %v923_v61 }
 0x9fa   :  { %v925_v8 = vadd.f32 %v1265_v2, %v924_v6 }
 0x9fc   :  { %v929_v10 = vsel %vm928_vm3, %v1265_v2, %v925_v8 }
 0x9fd   :  { %v934_v12 = vsel %vm931_vm4, %v933_v9, %v929_v10 }
 0x9fe   :  { %v968_v13 = vmul.f32 %v1267_v11, %v934_v12  ;;  %v967_v15 = vmul.f32 %v965_v14, %v934_v12 }
 0xa00   :  { %970 = vrot.lane.b32.xlu0 %v968_v13, %s1287_s3 }
 0xa54   :  { %v941_v17 = vpop.permute.xlu1 %940 }
 0xa55   :  { %v942_v18 = vrot.slane %v941_v17, 2 }
 0xa57   :  { %v1177_v19 = vmul.f32 -1.442695, %v942_v18 }
 0xa72   :  { %v971_v35 = vpop.permute.xlu0 %970 }
 0xa73   :  { %v973_v49 = vadd.f32 %v971_v35, %v967_v15 }
 0xa75   :  { %1268 = vtanh.f32 %v973_v49  ;;  %987 = vst [vmem:[#allocation1] ss:$4 sm:$0xff] %v973_v49 }
 0xa76   :  { %1270 = vpow2.f32 %v1177_v19 }
 0xa7b   :  { %v1269_v63 = vpop.eup %1268 }
 0xa7c   :  { %976 = vrot.lane.b32.xlu2 %v1269_v63, %s1287_s3  ;;  %v988_v16 = vld.sshfl [vmem:[#allocation1] sm:$0xff pattern:$0x73625140]  ;;  %v1271_v20 = vpop.eup %1270 }
 0xa7d   :  { %989 = vrot.lane.b32.xlu0 %v988_v16, %s1287_s3  ;;  %v947_v21 = vadd.f32 1.0, %v1271_v20 }
 0xa7f   :  { %1272 = vrcp.f32 %v947_v21  ;;  %v959_v29 = vand.u32 2147483648, %v947_v21  ;;  %vm953_vm6 = vweird.f32 %v947_v21  ;;  %v957_v30 = vand.u32 2147483647, %v947_v21 }
 0xa81   :  { %v960_v34 = vor.u32 1.1754944e-38, %v959_v29  ;;  %vm958_vm8 = vcmp.eq.f32.partialorder %v957_v30, 8.507059e+37 }
 0xa85   :  { %v1273_v22 = vpop.eup %1272 }
 0xa86   :  { %v949_v23 = vmul.f32 %v1273_v22, %v947_v21  ;;  %vm954_vm5 = vweird.f32 %v1273_v22 }
 0xa87   :  { %vm955_vm7 = vmor %vm953_vm6, %vm954_vm5 }
 0xa88   :  { %v950_v24 = vsub.f32 1.0, %v949_v23 }
 0xa8a   :  { %v951_v25 = vmul.f32 %v1273_v22, %v950_v24 }
 0xa8c   :  { %v952_v27 = vadd.f32 %v1273_v22, %v951_v25  ;;  %v1186_v25 = vld [vmem:[%s1795_s1 + $0xe] sm:$0x3] }
 0xa8e   :  { %v956_v32 = vsel %vm955_vm7, %v1273_v22, %v952_v27 }
 0xa8f   :  { %v961_v38 = vsel %vm958_vm8, %v960_v34, %v956_v32 }
 0xad6   :  { %v977_v39 = vpop.permute.xlu2 %976 }
 0xad7   :  { %v979_v40 = vmul.f32 %v977_v39, %v961_v38 }
 0xad9   :  { %v982_v43 = vmul.f32 %v1178_v31, %v979_v40 }
 0xadb   :  { %v985_v44 = vadd.f32 %v984_v42, %v982_v43  ;;  %1179 = vst.msk [vmem:[%s1796_s4 + $0xc] sm:$0x3] %vm176_vm9, %v982_v43 }
 0xadc   :  { %1180 = vst.msk [vmem:[%s1796_s4 + $0x2] sm:$0x3] %vm179_vm10, %v982_v43 }
 0xadd   :  { %1182 = vmatmul.msk.f32.vlgmr.msrb.gmra.mxu2 %vm54_vm11, %v985_v44  ;;  %1183 = vmatmul.msk.f32.vlgmr.msrb.gmra.mxu3 %vm54_vm11, %v985_v44 }
 0xaef   :  { %v990_v45 = vpop.permute.xlu0 %989 }
 0xaf0   :  { %v992_v46 = vmul.f32 %v1178_v31, %v990_v45 }
 0xaf2   :  { %v994_v47 = vadd.f32 %v993_v36, %v992_v46 }
 0xaf4   :  { %1098 = vrot.lane.b32.xlu1 %v994_v47, %s1287_s3 }
 0xb60   :  { %v1042_v52 = vpop.f32.mrf.mxu3  ;;  %v1022_v54 = vpop.f32.mrf.mxu2 }
 0xb61   :  { %v1047_v55 = vrot.slane %v1042_v52, 6 }
 0xb63   :  { %v1048_v50 = vsel %vm40_vm0, %v1022_v54, %v1047_v55 }
 0xb64   :  { %v1050_v56 = vadd.f32 %v1048_v50, %v1001_v53 }
 0xb66   :  { %1074 = vrot.lane.b32.xlu0 %v1050_v56, %s1287_s3  ;;  %v1184_v57 = vmul.f32 -1.442695, %v1050_v56  ;;  %v1071_v62 = vrot.slane %v1050_v56, 2  ;;  %v1099_v8 = vpop.permute.xlu1 %1098 }
 0xb68   :  { %1274 = vpow2.f32 %v1184_v57 }
 0xb6e   :  { %v1275_v58 = vpop.eup %1274 }
 0xb6f   :  { %v1054_v59 = vadd.f32 1.0, %v1275_v58 }
 0xb71   :  { %1276 = vrcp.f32 %v1054_v59  ;;  %v1066_v28 = vand.u32 2147483648, %v1054_v59  ;;  %v1064_v2 = vand.u32 2147483647, %v1054_v59  ;;  %vm1060_vm12 = vweird.f32 %v1054_v59 }
 0xb72   :  { %1278 = vtanh.f32 %v1071_v62 }
 0xb73   :  { %v1067_v4 = vor.u32 1.1754944e-38, %v1066_v28  ;;  %vm1065_vm13 = vcmp.eq.f32.partialorder %v1064_v2, 8.507059e+37 }
 0xb77   :  { %v1277_v60 = vpop.eup %1276 }
 0xb78   :  { %v1056_v0 = vmul.f32 %v1277_v60, %v1054_v59  ;;  %vm1061_vm11 = vweird.f32 %v1277_v60  ;;  %v1279_v5 = vpop.eup %1278 }
 0xb79   :  { %vm1062_vm0 = vmor %vm1060_vm12, %vm1061_vm11 }
 0xb7a   :  { %v1057_v26 = vsub.f32 1.0, %v1056_v0 }
 0xb7c   :  { %v1058_v1 = vmul.f32 %v1277_v60, %v1057_v26 }
 0xb7e   :  { %v1059_v3 = vadd.f32 %v1277_v60, %v1058_v1 }
 0xb80   :  { %v1063_v61 = vsel %vm1062_vm0, %v1277_v60, %v1059_v3 }
 0xb81   :  { %v1068_v6 = vsel %vm1065_vm13, %v1067_v4, %v1063_v61 }
 0xb82   :  { %v1102_v7 = vmul.f32 %v1279_v5, %v1068_v6  ;;  %v1101_v9 = vmul.f32 %v1099_v8, %v1068_v6 }
 0xb84   :  { %1104 = vrot.lane.b32.xlu2 %v1102_v7, %s1287_s3 }
 0xbd8   :  { %v1075_v13 = vpop.permute.xlu0 %1074 }
 0xbd9   :  { %v1076_v14 = vrot.slane %v1075_v13, 2 }
 0xbdb   :  { %v1185_v15 = vmul.f32 -1.442695, %v1076_v14 }
 0xbde   :  { %v1105_v10 = vpop.permute.xlu2 %1104 }
 0xbdf   :  { %v1107_v11 = vadd.f32 %v1105_v10, %v1101_v9 }
 0xbe1   :  { %1280 = vtanh.f32 %v1107_v11 }
 0xbe2   :  { %1282 = vpow2.f32 %v1185_v15 }
 0xbe7   :  { %v1281_v12 = vpop.eup %1280 }
 0xbe8   :  { %1110 = vrot.lane.b32.xlu1 %v1281_v12, %s1287_s3  ;;  %v1283_v35 = vpop.eup %1282 }
 0xbe9   :  { %v1081_v49 = vadd.f32 1.0, %v1283_v35 }
 0xbeb   :  { %1284 = vrcp.f32 %v1081_v49  ;;  %v1093_v20 = vand.u32 2147483648, %v1081_v49  ;;  %vm1087_vm15 = vweird.f32 %v1081_v49  ;;  %v1091_v21 = vand.u32 2147483647, %v1081_v49 }
 0xbed   :  { %v1094_v23 = vor.u32 1.1754944e-38, %v1093_v20  ;;  %vm1092_vm2 = vcmp.eq.f32.partialorder %v1091_v21, 8.507059e+37 }
 0xbf1   :  { %v1285_v63 = vpop.eup %1284 }
 0xbf2   :  { %v1083_v16 = vmul.f32 %v1285_v63, %v1081_v49  ;;  %vm1088_vm14 = vweird.f32 %v1285_v63 }
 0xbf3   :  { %vm1089_vm1 = vmor %vm1087_vm15, %vm1088_vm14 }
 0xbf4   :  { %v1084_v17 = vsub.f32 1.0, %v1083_v16 }
 0xbf6   :  { %v1085_v18 = vmul.f32 %v1285_v63, %v1084_v17 }
 0xbf8   :  { %v1086_v19 = vadd.f32 %v1285_v63, %v1085_v18 }
 0xbfa   :  { %v1090_v22 = vsel %vm1089_vm1, %v1285_v63, %v1086_v19 }
 0xbfb   :  { %v1095_v24 = vsel %vm1092_vm2, %v1094_v23, %v1090_v22 }
 0xc5a   :  { %v1111_v27 = vpop.permute.xlu1 %1110 }
 0xc5b   :  { %v1113_v29 = vmul.f32 %v1111_v27, %v1095_v24 }
 0xc5d   :  { %v1116_v30 = vmul.f32 %v1186_v25, %v1113_v29 }
 0xc5f   :  { %1187 = vst.msk [vmem:[%s1796_s4 + $0xe] sm:$0x3] %vm176_vm9, %v1116_v30 }
 0xc60   :  { %1118 = vst.msk [vmem:[%s1796_s4] sm:$0x3] %vm179_vm10, %v1116_v30 }

</bundles_post_ra>
